<compile_context>
chip_gen: v7x
topology: tpu7x:2x2x1
jax: 0.10.0
libtpu: 0.0.40
codegen_flags: <defaults>
</compile_context>

<pallas_src>
import math

import jax
import jax.numpy as jnp
from jax.experimental import pallas as pl
from jax.experimental.pallas import tpu as pltpu

_TILE_M = 1024                       # mem-bound: bigger tiles amortize per-step cost
_VMEM_LIMIT = 32 * 1024 * 1024       # safe on v5e/v6e (128 MiB) and v7x (64 MiB)
_VMEM_FULL = pl.BlockSpec(memory_space=pltpu.MemorySpace.VMEM)


def _mosaic_params():
    return pltpu.CompilerParams(
        dimension_semantics=("parallel",),
        vmem_limit_bytes=_VMEM_LIMIT)


# ------------------------- Pallas kernels ------------------------- #

def _ms_conv_kernel(x_ref, w_ref, shift_ref, o_ref):
    # x: (TM, 2K) bf16 -- the two branch im2cols concatenated along K.
    # w: (2K, CO) bf16 block-diagonal weight with the BN scale pre-folded in.
    # shift: (1, CO) f32 BN shift.  One dot, one lane-dense bf16 store.
    acc = jnp.dot(x_ref[...], w_ref[...], preferred_element_type=jnp.float32)
    o_ref[...] = jnp.maximum(acc + shift_ref[...], 0.0).astype(o_ref.dtype)


def _short_conv_kernel(x_ref, w_ref, shift_ref, res_ref, o_ref):
    # x: (TM, K) bf16 -- pool-tap-averaged im2col (conv and 2x2 avg-pool are
    # both linear, so the 4-tap average is taken in the glue before the
    # matmul).  Conv bias + BN folded into shift; residual added in epilogue.
    acc = jnp.dot(x_ref[...], w_ref[...], preferred_element_type=jnp.float32)
    y = jnp.maximum(acc + shift_ref[...], 0.0)
    o_ref[...] = (res_ref[...].astype(jnp.float32) + y).astype(o_ref.dtype)


def _head_kernel(x_ref, w_ref, b_ref, o_ref):
    # x: (N, 16, 128) bf16; AvgPool2d(4,1) over 4x4 -> fc(128,1) -> sigmoid.
    pooled = jnp.mean(x_ref[...].astype(jnp.float32), axis=1)       # (N, 128)
    logit = jnp.dot(pooled, w_ref[...],
                    preferred_element_type=jnp.float32) + b_ref[...]
    o_ref[...] = jax.nn.sigmoid(logit)


# ------------------------- tiling helpers ------------------------- #

def _tile_rows(m):
    tm = min(m, _TILE_M)
    tm = ((tm + 15) // 16) * 16           # bf16 packs 16 rows per sublane pair
    # v7x megacore: ensure >= 2 grid steps (when possible) so both TensorCores
    # get work under the "parallel" grid axis.  No-op cost on v5e/v6e.
    if m > 16 and -(-m // tm) < 2:
        tm = ((-(-m // 2) + 15) // 16) * 16
    mpad = -(-m // tm) * tm
    return tm, mpad


def _pad_rows(x, rows, axis=0):
    pad = rows - x.shape[axis]
    if pad == 0:
        return x
    widths = [(0, 0)] * x.ndim
    widths[axis] = (0, pad)
    return jnp.pad(x, widths)


# ------------------------- conv plumbing (glue) ------------------------- #

def _im2col(x, kh, kw, stride, padding, dilation):
    # TODO(synk): stream the kh*kw taps through an in-kernel reduction grid
    # axis (Element/offset index_maps on the NHWC activation) to avoid
    # materializing im2col in HBM at all; blocked on expressing the stride-2
    # window access in a BlockSpec.
    N, H, W, C = x.shape
    xp = jnp.pad(x, ((0, 0), (padding, padding), (padding, padding), (0, 0)))
    OH = (H + 2 * padding - dilation * (kh - 1) - 1) // stride + 1
    OW = (W + 2 * padding - dilation * (kw - 1) - 1) // stride + 1
    cols = []
    for i in range(kh):
        for j in range(kw):
            r0, c0 = i * dilation, j * dilation
            patch = xp[:, r0:r0 + stride * (OH - 1) + 1:stride,
                          c0:c0 + stride * (OW - 1) + 1:stride, :]
            cols.append(patch)
    col = jnp.stack(cols, axis=3)                     # (N, OH, OW, kh*kw, C)
    return col.reshape(N, OH, OW, kh * kw * C), OH, OW


# ------------------------- fused blocks ------------------------- #

def multiscale_block(x, w1, w2, bn_scale, bn_shift, stride, pad):
    # MultiScaleConv2d + BatchNorm2d + ReLU (+ Dropout eval = identity) fused
    # into a single M-tiled Pallas kernel.  The two branches are merged along
    # K with a block-diagonal weight (conv is linear; BN/ReLU are per-channel
    # so they split cleanly across the channel concat).
    N = x.shape[0]
    KH, KW, CI, C1 = w1.shape
    C2 = w2.shape[-1]
    CO = C1 + C2
    K = KH * KW * CI
    K2 = 2 * K

    cols_a, OH, OW = _im2col(x, KH, KW, stride, pad, 1)
    cols_b, OH2, OW2 = _im2col(x, KH, KW, stride, 2 * pad, 2)
    assert (OH, OW) == (OH2, OW2)
    M = N * OH * OW

    xcat = jnp.concatenate([cols_a, cols_b], axis=-1)
    xcat = xcat.reshape(M, K2).astype(jnp.bfloat16)

    wa = (w1 * bn_scale[:C1]).reshape(K, C1)          # fold BN scale (f32)
    wb = (w2 * bn_scale[C1:]).reshape(K, C2)
    wcat = jnp.zeros((K2, CO), jnp.float32)
    wcat = wcat.at[:K, :C1].set(wa).at[K:, C1:].set(wb)
    wcat = wcat.astype(jnp.bfloat16)
    shift = bn_shift.reshape(1, CO).astype(jnp.float32)

    TM, Mpad = _tile_rows(M)
    xcat = _pad_rows(xcat, Mpad)

    cost = pl.CostEstimate(
        flops=int(2 * Mpad * K2 * CO), transcendentals=0,
        bytes_accessed=int(Mpad * K2 * 2 + K2 * CO * 2 + Mpad * CO * 2))

    out = pl.pallas_call(
        _ms_conv_kernel,
        out_shape=jax.ShapeDtypeStruct((Mpad, CO), jnp.bfloat16),
        grid=(Mpad // TM,),
        in_specs=[
            pl.BlockSpec((TM, K2), lambda i: (i, 0)),
            pl.BlockSpec((K2, CO), lambda i: (0, 0)),
            pl.BlockSpec((1, CO), lambda i: (0, 0)),
        ],
        out_specs=pl.BlockSpec((TM, CO), lambda i: (i, 0)),
        compiler_params=_mosaic_params(),
        cost_estimate=cost,
    )(xcat, wcat, shift)
    return out[:M].reshape(N, OH, OW, CO)


def short_residual_block(x_in, residual, w, bias, bn_scale, bn_shift,
                         stride, pad):
    # Conv2d(+bias) -> AvgPool2d(2,2) -> BatchNorm -> ReLU, then added to the
    # main-path `residual`, all inside one M-tiled Pallas kernel.
    N = x_in.shape[0]
    KH, KW, CI, CO = w.shape
    K = KH * KW * CI

    cols, OH, OW = _im2col(x_in, KH, KW, stride, pad, 1)   # (N, OH, OW, K)
    OHp, OWp = OH // 2, OW // 2
    Mp = N * OHp * OWp
    # Conv and 2x2 avg-pool are both linear: average the 4 pool tap-groups in
    # the glue (f32 accumulation, bf16 emit) so the kernel reads one (Mp, K)
    # slab -- 4x less HBM materialization / DMA and no in-kernel tap sum.
    cols = cols.reshape(N, OHp, 2, OWp, 2, K).astype(jnp.float32)
    cols = cols.mean(axis=(2, 4)).reshape(Mp, K).astype(jnp.bfloat16)

    w_eff = (w * bn_scale).reshape(K, CO).astype(jnp.bfloat16)
    shift = (bn_scale * bias + bn_shift).reshape(1, CO).astype(jnp.float32)
    res2d = residual.reshape(Mp, CO).astype(jnp.bfloat16)  # same (n,ohp,owp) order

    TM, Mpad = _tile_rows(Mp)
    cols = _pad_rows(cols, Mpad)
    res2d = _pad_rows(res2d, Mpad)

    cost = pl.CostEstimate(
        flops=int(2 * Mpad * K * CO), transcendentals=0,
        bytes_accessed=int(Mpad * K * 2 + K * CO * 2 + 2 * Mpad * CO * 2))

    out = pl.pallas_call(
        _short_conv_kernel,
        out_shape=jax.ShapeDtypeStruct((Mpad, CO), jnp.bfloat16),
        grid=(Mpad // TM,),
        in_specs=[
            pl.BlockSpec((TM, K), lambda i: (i, 0)),
            pl.BlockSpec((K, CO), lambda i: (0, 0)),
            pl.BlockSpec((1, CO), lambda i: (0, 0)),
            pl.BlockSpec((TM, CO), lambda i: (i, 0)),
        ],
        out_specs=pl.BlockSpec((TM, CO), lambda i: (i, 0)),
        compiler_params=_mosaic_params(),
        cost_estimate=cost,
    )(cols, w_eff, shift, res2d)
    return out[:Mp].reshape(N, OHp, OWp, CO)


# ------------------------- parameters ------------------------- #

def init_params(key):
    ks = iter(jax.random.split(key, 16))

    def conv_w(k, kh, kw, ci, co):
        std = math.sqrt(2.0 / (kh * kw * co))          # matches weight_init()
        return std * jax.random.normal(k, (kh, kw, ci, co), jnp.float32)

    p = {}
    p["l1_w1"] = conv_w(next(ks), 5, 5, 1, 8)
    p["l1_w2"] = conv_w(next(ks), 5, 5, 1, 8)
    p["l2_w1"] = conv_w(next(ks), 3, 3, 16, 32)
    p["l2_w2"] = conv_w(next(ks), 3, 3, 16, 32)
    p["l3_w1"] = conv_w(next(ks), 3, 3, 64, 32)
    p["l3_w2"] = conv_w(next(ks), 3, 3, 64, 32)
    p["l4_w1"] = conv_w(next(ks), 3, 3, 64, 64)
    p["l4_w2"] = conv_w(next(ks), 3, 3, 64, 64)
    p["s1_w"] = conv_w(next(ks), 7, 7, 1, 64)
    p["s1_b"] = 0.01 * jax.random.normal(next(ks), (64,), jnp.float32)
    p["s2_w"] = conv_w(next(ks), 3, 3, 64, 128)
    p["s2_b"] = 0.01 * jax.random.normal(next(ks), (128,), jnp.float32)
    p["fc_w"] = math.sqrt(2.0 / (128 * 1)) * jax.random.normal(
        next(ks), (128, 1), jnp.float32)
    p["fc_b"] = jnp.zeros((1,), jnp.float32)

    # BatchNorm2d in eval mode with fresh stats: gamma=1, beta=0, mean=0, var=1.
    # IMPORTANT: for a trained checkpoint, compute scale/shift from the real
    # running stats here -- the kernels fold these values into the weights.
    eps = 1e-5
    bn_s = 1.0 / math.sqrt(1.0 + eps)
    for name, c in [("bn1", 16), ("bn2", 64), ("bn3", 64), ("bn4", 128),
                    ("sbn1", 64), ("sbn2", 128)]:
        p[name + "_scale"] = jnp.full((c,), bn_s, jnp.float32)
        p[name + "_shift"] = jnp.zeros((c,), jnp.float32)
    return p


# ------------------------- model forward ------------------------- #

def disnet_forward(params, x_nchw):
    x = jnp.transpose(x_nchw, (0, 2, 3, 1)).astype(jnp.float32)      # -> NHWC
    shortcut = x

    # TODO(synk): Dropout(p=0.2) is training-only noise; eval forward is identity.
    x = multiscale_block(x, params["l1_w1"], params["l1_w2"],
                         params["bn1_scale"], params["bn1_shift"], 2, 2)
    x = multiscale_block(x, params["l2_w1"], params["l2_w2"],
                         params["bn2_scale"], params["bn2_shift"], 2, 1)
    x = short_residual_block(shortcut, x, params["s1_w"], params["s1_b"],
                             params["sbn1_scale"], params["sbn1_shift"], 2, 3)

    shortcut = x
    x = multiscale_block(x, params["l3_w1"], params["l3_w2"],
                         params["bn3_scale"], params["bn3_shift"], 2, 1)
    x = multiscale_block(x, params["l4_w1"], params["l4_w2"],
                         params["bn4_scale"], params["bn4_shift"], 2, 1)
    x = short_residual_block(shortcut, x, params["s2_w"], params["s2_b"],
                             params["sbn2_scale"], params["sbn2_shift"], 2, 1)
    # x: (N, 4, 4, 128) bf16

    N = x.shape[0]
    xf = x.reshape(N, 16, 128)
    out = pl.pallas_call(
        _head_kernel,
        out_shape=jax.ShapeDtypeStruct((N, 1), jnp.float32),
        in_specs=[_VMEM_FULL] * 3,
        out_specs=_VMEM_FULL,
    )(xf, params["fc_w"], params["fc_b"].reshape(1, 1))
    return out                                                       # (N, 1)


# ------------------------- pure-JAX f32 reference ------------------------- #

def _conv_ref(x, w, stride, padding, dilation=1, bias=None):
    y = jax.lax.conv_general_dilated(
        x, w, window_strides=(stride, stride),
        padding=[(padding, padding), (padding, padding)],
        rhs_dilation=(dilation, dilation),
        dimension_numbers=("NHWC", "HWIO", "NHWC"))
    if bias is not None:
        y = y + bias
    return y


def disnet_reference(params, x_nchw):
    x = jnp.transpose(x_nchw, (0, 2, 3, 1)).astype(jnp.float32)
    shortcut = x

    def ms(x, w1, w2, s, sh, stride, pad):
        a = _conv_ref(x, w1, stride, pad, 1)
        b = _conv_ref(x, w2, stride, 2 * pad, 2)
        return jnp.maximum(jnp.concatenate([a, b], -1) * s + sh, 0.0)

    def short(x, w, b, s, sh, stride, pad):
        y = _conv_ref(x, w, stride, pad, 1, b)
        N, H, W, C = y.shape
        y = y.reshape(N, H // 2, 2, W // 2, 2, C).mean(axis=(2, 4))
        return jnp.maximum(y * s + sh, 0.0)

    x = ms(x, params["l1_w1"], params["l1_w2"],
           params["bn1_scale"], params["bn1_shift"], 2, 2)
    x = ms(x, params["l2_w1"], params["l2_w2"],
           params["bn2_scale"], params["bn2_shift"], 2, 1)
    x = x + short(shortcut, params["s1_w"], params["s1_b"],
                  params["sbn1_scale"], params["sbn1_shift"], 2, 3)
    shortcut = x
    x = ms(x, params["l3_w1"], params["l3_w2"],
           params["bn3_scale"], params["bn3_shift"], 2, 1)
    x = ms(x, params["l4_w1"], params["l4_w2"],
           params["bn4_scale"], params["bn4_shift"], 2, 1)
    x = x + short(shortcut, params["s2_w"], params["s2_b"],
                  params["sbn2_scale"], params["sbn2_shift"], 2, 1)
    pooled = x.mean(axis=(1, 2))
    logit = pooled @ params["fc_w"] + params["fc_b"]
    return jax.nn.sigmoid(logit)


if __name__ == "__main__":
    key = jax.random.PRNGKey(0)
    pkey, xkey = jax.random.split(key)
    params = init_params(pkey)
    # Input must be 64x64 so that after /16 downsampling the 4x4 AvgPool
    # reduces to 1x1 and fc sees exactly 128 features (as the module implies).
    x = jax.random.normal(xkey, (2, 1, 64, 64), jnp.float32)         # NCHW
    y = jax.jit(disnet_forward)(params, x)
    jax.block_until_ready(y)
    assert y.shape == (2, 1)
    assert bool(jnp.all((y >= 0.0) & (y <= 1.0)))
    # Tolerance check against a pure-JAX f32 reference (bf16 operands/stores
    # introduce ~1e-2 relative deviations; 5e-2 on the sigmoid output is safe).
    y_ref = jax.jit(disnet_reference)(params, x)
    err = float(jnp.max(jnp.abs(y - y_ref)))
    assert err < 5e-2, f"mismatch vs f32 reference: {err}"
    print("KERNEL_OK")
</pallas_src>

<mosaic_0001>
module attributes {stable_mosaic.version = 11 : i64} {
  func.func @_ms_conv_kernel(%arg0: i32, %arg1: memref<1024x50xbf16, #tpu.memory_space<vmem>>, %arg2: memref<50x16xbf16, #tpu.memory_space<vmem>>, %arg3: memref<1x16xf32, #tpu.memory_space<vmem>>, %arg4: memref<1024x16xbf16, #tpu.memory_space<vmem>>) attributes {dimension_semantics = [#tpu.dimension_semantics<parallel>], iteration_bounds = array<i64: 2>, scalar_prefetch = 0 : i64, scratch_operands = 0 : i64, tpu.core_type = #tpu.core_type<tc>, window_params = [{transform_indices = @transform_0, window_bounds = array<i64: 1024, 50>}, {pipeline_mode = #tpu.pipeline_mode<synchronous>, transform_indices = @transform_1, window_bounds = array<i64: 50, 16>}, {pipeline_mode = #tpu.pipeline_mode<synchronous>, transform_indices = @transform_2, window_bounds = array<i64: 1, 16>}, {transform_indices = @transform_3, window_bounds = array<i64: 1024, 16>}]} {
    %c0 = arith.constant 0 : index
    %c0_0 = arith.constant 0 : index
    %0 = vector.load %arg1[%c0, %c0_0] : memref<1024x50xbf16, #tpu.memory_space<vmem>>, vector<1024x50xbf16>
    %c0_1 = arith.constant 0 : index
    %c0_2 = arith.constant 0 : index
    %1 = vector.load %arg2[%c0_1, %c0_2] : memref<50x16xbf16, #tpu.memory_space<vmem>>, vector<50x16xbf16>
    %cst = arith.constant dense<0.000000e+00> : vector<1024x16xf32>
    %2 = tpu.matmul %0, %1, %cst {dimension_numbers = #tpu.dot_dimension_numbers<[1], [0], [0], [1], [0, 0, 1, 1], [], []>} : vector<1024x50xbf16>, vector<50x16xbf16>, vector<1024x16xf32> -> vector<1024x16xf32>
    %c0_3 = arith.constant 0 : index
    %c0_4 = arith.constant 0 : index
    %3 = vector.load %arg3[%c0_3, %c0_4] : memref<1x16xf32, #tpu.memory_space<vmem>>, vector<1x16xf32>
    %4 = vector.broadcast %3 : vector<1x16xf32> to vector<1024x16xf32>
    %5 = arith.addf %2, %4 : vector<1024x16xf32>
    %cst_5 = arith.constant 0.000000e+00 : f32
    %6 = vector.broadcast %cst_5 : f32 to vector<1024x16xf32>
    %7 = arith.maximumf %5, %6 : vector<1024x16xf32>
    %8 = arith.truncf %7 : vector<1024x16xf32> to vector<1024x16xbf16>
    %c0_6 = arith.constant 0 : index
    %c0_7 = arith.constant 0 : index
    %9 = vector.load %arg4[%c0_6, %c0_7] : memref<1024x16xbf16, #tpu.memory_space<vmem>>, vector<1024x16xbf16>
    tpu.vector_store %arg4[%c0_6, %c0_7], %8 {strides = array<i32>} : memref<1024x16xbf16, #tpu.memory_space<vmem>>, vector<1024x16xbf16>,
    return
  }
  func.func @transform_0(%arg0: i32) -> (i32, i32) {
    %c0_i32 = arith.constant 0 : i32
    %c0_i32_0 = arith.constant 0 : i32
    return %arg0, %c0_i32 : i32, i32
  }
  func.func @transform_1(%arg0: i32) -> (i32, i32) {
    %c0_i32 = arith.constant 0 : i32
    %c0_i32_0 = arith.constant 0 : i32
    %c0_i32_1 = arith.constant 0 : i32
    return %c0_i32, %c0_i32_0 : i32, i32
  }
  func.func @transform_2(%arg0: i32) -> (i32, i32) {
    %c0_i32 = arith.constant 0 : i32
    %c0_i32_0 = arith.constant 0 : i32
    %c0_i32_1 = arith.constant 0 : i32
    return %c0_i32, %c0_i32_0 : i32, i32
  }
  func.func @transform_3(%arg0: i32) -> (i32, i32) {
    %c0_i32 = arith.constant 0 : i32
    %c0_i32_0 = arith.constant 0 : i32
    return %arg0, %c0_i32 : i32, i32
  }
}

module attributes {stable_mosaic.version = 11 : i64} {
  func.func @_ms_conv_kernel(%arg0: i32, %arg1: memref<256x288xbf16, #tpu.memory_space<vmem>>, %arg2: memref<288x64xbf16, #tpu.memory_space<vmem>>, %arg3: memref<1x64xf32, #tpu.memory_space<vmem>>, %arg4: memref<256x64xbf16, #tpu.memory_space<vmem>>) attributes {dimension_semantics = [#tpu.dimension_semantics<parallel>], iteration_bounds = array<i64: 2>, scalar_prefetch = 0 : i64, scratch_operands = 0 : i64, tpu.core_type = #tpu.core_type<tc>, window_params = [{transform_indices = @transform_0, window_bounds = array<i64: 256, 288>}, {pipeline_mode = #tpu.pipeline_mode<synchronous>, transform_indices = @transform_1, window_bounds = array<i64: 288, 64>}, {pipeline_mode = #tpu.pipeline_mode<synchronous>, transform_indices = @transform_2, window_bounds = array<i64: 1, 64>}, {transform_indices = @transform_3, window_bounds = array<i64: 256, 64>}]} {
    %c0 = arith.constant 0 : index
    %c0_0 = arith.constant 0 : index
    %0 = vector.load %arg1[%c0, %c0_0] : memref<256x288xbf16, #tpu.memory_space<vmem>>, vector<256x288xbf16>
    %c0_1 = arith.constant 0 : index
    %c0_2 = arith.constant 0 : index
    %1 = vector.load %arg2[%c0_1, %c0_2] : memref<288x64xbf16, #tpu.memory_space<vmem>>, vector<288x64xbf16>
    %cst = arith.constant dense<0.000000e+00> : vector<256x64xf32>
    %2 = tpu.matmul %0, %1, %cst {dimension_numbers = #tpu.dot_dimension_numbers<[1], [0], [0], [1], [0, 0, 1, 1], [], []>} : vector<256x288xbf16>, vector<288x64xbf16>, vector<256x64xf32> -> vector<256x64xf32>
    %c0_3 = arith.constant 0 : index
    %c0_4 = arith.constant 0 : index
    %3 = vector.load %arg3[%c0_3, %c0_4] : memref<1x64xf32, #tpu.memory_space<vmem>>, vector<1x64xf32>
    %4 = vector.broadcast %3 : vector<1x64xf32> to vector<256x64xf32>
    %5 = arith.addf %2, %4 : vector<256x64xf32>
    %cst_5 = arith.constant 0.000000e+00 : f32
    %6 = vector.broadcast %cst_5 : f32 to vector<256x64xf32>
    %7 = arith.maximumf %5, %6 : vector<256x64xf32>
    %8 = arith.truncf %7 : vector<256x64xf32> to vector<256x64xbf16>
    %c0_6 = arith.constant 0 : index
    %c0_7 = arith.constant 0 : index
    %9 = vector.load %arg4[%c0_6, %c0_7] : memref<256x64xbf16, #tpu.memory_space<vmem>>, vector<256x64xbf16>
    tpu.vector_store %arg4[%c0_6, %c0_7], %8 {strides = array<i32>} : memref<256x64xbf16, #tpu.memory_space<vmem>>, vector<256x64xbf16>,
    return
  }
  func.func @transform_0(%arg0: i32) -> (i32, i32) {
    %c0_i32 = arith.constant 0 : i32
    %c0_i32_0 = arith.constant 0 : i32
    return %arg0, %c0_i32 : i32, i32
  }
  func.func @transform_1(%arg0: i32) -> (i32, i32) {
    %c0_i32 = arith.constant 0 : i32
    %c0_i32_0 = arith.constant 0 : i32
    %c0_i32_1 = arith.constant 0 : i32
    return %c0_i32, %c0_i32_0 : i32, i32
  }
  func.func @transform_2(%arg0: i32) -> (i32, i32) {
    %c0_i32 = arith.constant 0 : i32
    %c0_i32_0 = arith.constant 0 : i32
    %c0_i32_1 = arith.constant 0 : i32
    return %c0_i32, %c0_i32_0 : i32, i32
  }
  func.func @transform_3(%arg0: i32) -> (i32, i32) {
    %c0_i32 = arith.constant 0 : i32
    %c0_i32_0 = arith.constant 0 : i32
    return %arg0, %c0_i32 : i32, i32
  }
}

module attributes {stable_mosaic.version = 11 : i64} {
  func.func @_short_conv_kernel(%arg0: i32, %arg1: memref<256x49xbf16, #tpu.memory_space<vmem>>, %arg2: memref<49x64xbf16, #tpu.memory_space<vmem>>, %arg3: memref<1x64xf32, #tpu.memory_space<vmem>>, %arg4: memref<256x64xbf16, #tpu.memory_space<vmem>>, %arg5: memref<256x64xbf16, #tpu.memory_space<vmem>>) attributes {dimension_semantics = [#tpu.dimension_semantics<parallel>], iteration_bounds = array<i64: 2>, scalar_prefetch = 0 : i64, scratch_operands = 0 : i64, tpu.core_type = #tpu.core_type<tc>, window_params = [{transform_indices = @transform_0, window_bounds = array<i64: 256, 49>}, {pipeline_mode = #tpu.pipeline_mode<synchronous>, transform_indices = @transform_1, window_bounds = array<i64: 49, 64>}, {pipeline_mode = #tpu.pipeline_mode<synchronous>, transform_indices = @transform_2, window_bounds = array<i64: 1, 64>}, {transform_indices = @transform_3, window_bounds = array<i64: 256, 64>}, {transform_indices = @transform_4, window_bounds = array<i64: 256, 64>}]} {
    %c0 = arith.constant 0 : index
    %c0_0 = arith.constant 0 : index
    %0 = vector.load %arg1[%c0, %c0_0] : memref<256x49xbf16, #tpu.memory_space<vmem>>, vector<256x49xbf16>
    %c0_1 = arith.constant 0 : index
    %c0_2 = arith.constant 0 : index
    %1 = vector.load %arg2[%c0_1, %c0_2] : memref<49x64xbf16, #tpu.memory_space<vmem>>, vector<49x64xbf16>
    %cst = arith.constant dense<0.000000e+00> : vector<256x64xf32>
    %2 = tpu.matmul %0, %1, %cst {dimension_numbers = #tpu.dot_dimension_numbers<[1], [0], [0], [1], [0, 0, 1, 1], [], []>} : vector<256x49xbf16>, vector<49x64xbf16>, vector<256x64xf32> -> vector<256x64xf32>
    %c0_3 = arith.constant 0 : index
    %c0_4 = arith.constant 0 : index
    %3 = vector.load %arg3[%c0_3, %c0_4] : memref<1x64xf32, #tpu.memory_space<vmem>>, vector<1x64xf32>
    %4 = vector.broadcast %3 : vector<1x64xf32> to vector<256x64xf32>
    %5 = arith.addf %2, %4 : vector<256x64xf32>
    %cst_5 = arith.constant 0.000000e+00 : f32
    %6 = vector.broadcast %cst_5 : f32 to vector<256x64xf32>
    %7 = arith.maximumf %5, %6 : vector<256x64xf32>
    %c0_6 = arith.constant 0 : index
    %c0_7 = arith.constant 0 : index
    %8 = vector.load %arg4[%c0_6, %c0_7] : memref<256x64xbf16, #tpu.memory_space<vmem>>, vector<256x64xbf16>
    %9 = arith.extf %8 : vector<256x64xbf16> to vector<256x64xf32>
    %10 = arith.addf %9, %7 : vector<256x64xf32>
    %11 = arith.truncf %10 : vector<256x64xf32> to vector<256x64xbf16>
    %c0_8 = arith.constant 0 : index
    %c0_9 = arith.constant 0 : index
    %12 = vector.load %arg5[%c0_8, %c0_9] : memref<256x64xbf16, #tpu.memory_space<vmem>>, vector<256x64xbf16>
    tpu.vector_store %arg5[%c0_8, %c0_9], %11 {strides = array<i32>} : memref<256x64xbf16, #tpu.memory_space<vmem>>, vector<256x64xbf16>,
    return
  }
  func.func @transform_0(%arg0: i32) -> (i32, i32) {
    %c0_i32 = arith.constant 0 : i32
    %c0_i32_0 = arith.constant 0 : i32
    return %arg0, %c0_i32 : i32, i32
  }
  func.func @transform_1(%arg0: i32) -> (i32, i32) {
    %c0_i32 = arith.constant 0 : i32
    %c0_i32_0 = arith.constant 0 : i32
    %c0_i32_1 = arith.constant 0 : i32
    return %c0_i32, %c0_i32_0 : i32, i32
  }
  func.func @transform_2(%arg0: i32) -> (i32, i32) {
    %c0_i32 = arith.constant 0 : i32
    %c0_i32_0 = arith.constant 0 : i32
    %c0_i32_1 = arith.constant 0 : i32
    return %c0_i32, %c0_i32_0 : i32, i32
  }
  func.func @transform_3(%arg0: i32) -> (i32, i32) {
    %c0_i32 = arith.constant 0 : i32
    %c0_i32_0 = arith.constant 0 : i32
    return %arg0, %c0_i32 : i32, i32
  }
  func.func @transform_4(%arg0: i32) -> (i32, i32) {
    %c0_i32 = arith.constant 0 : i32
    %c0_i32_0 = arith.constant 0 : i32
    return %arg0, %c0_i32 : i32, i32
  }
}

module attributes {stable_mosaic.version = 11 : i64} {
  func.func @_ms_conv_kernel(%arg0: i32, %arg1: memref<64x1152xbf16, #tpu.memory_space<vmem>>, %arg2: memref<1152x64xbf16, #tpu.memory_space<vmem>>, %arg3: memref<1x64xf32, #tpu.memory_space<vmem>>, %arg4: memref<64x64xbf16, #tpu.memory_space<vmem>>) attributes {dimension_semantics = [#tpu.dimension_semantics<parallel>], iteration_bounds = array<i64: 2>, scalar_prefetch = 0 : i64, scratch_operands = 0 : i64, tpu.core_type = #tpu.core_type<tc>, window_params = [{transform_indices = @transform_0, window_bounds = array<i64: 64, 1152>}, {pipeline_mode = #tpu.pipeline_mode<synchronous>, transform_indices = @transform_1, window_bounds = array<i64: 1152, 64>}, {pipeline_mode = #tpu.pipeline_mode<synchronous>, transform_indices = @transform_2, window_bounds = array<i64: 1, 64>}, {transform_indices = @transform_3, window_bounds = array<i64: 64, 64>}]} {
    %c0 = arith.constant 0 : index
    %c0_0 = arith.constant 0 : index
    %0 = vector.load %arg1[%c0, %c0_0] : memref<64x1152xbf16, #tpu.memory_space<vmem>>, vector<64x1152xbf16>
    %c0_1 = arith.constant 0 : index
    %c0_2 = arith.constant 0 : index
    %1 = vector.load %arg2[%c0_1, %c0_2] : memref<1152x64xbf16, #tpu.memory_space<vmem>>, vector<1152x64xbf16>
    %cst = arith.constant dense<0.000000e+00> : vector<64x64xf32>
    %2 = tpu.matmul %0, %1, %cst {dimension_numbers = #tpu.dot_dimension_numbers<[1], [0], [0], [1], [0, 0, 1, 1], [], []>} : vector<64x1152xbf16>, vector<1152x64xbf16>, vector<64x64xf32> -> vector<64x64xf32>
    %c0_3 = arith.constant 0 : index
    %c0_4 = arith.constant 0 : index
    %3 = vector.load %arg3[%c0_3, %c0_4] : memref<1x64xf32, #tpu.memory_space<vmem>>, vector<1x64xf32>
    %4 = vector.broadcast %3 : vector<1x64xf32> to vector<64x64xf32>
    %5 = arith.addf %2, %4 : vector<64x64xf32>
    %cst_5 = arith.constant 0.000000e+00 : f32
    %6 = vector.broadcast %cst_5 : f32 to vector<64x64xf32>
    %7 = arith.maximumf %5, %6 : vector<64x64xf32>
    %8 = arith.truncf %7 : vector<64x64xf32> to vector<64x64xbf16>
    %c0_6 = arith.constant 0 : index
    %c0_7 = arith.constant 0 : index
    %9 = vector.load %arg4[%c0_6, %c0_7] : memref<64x64xbf16, #tpu.memory_space<vmem>>, vector<64x64xbf16>
    tpu.vector_store %arg4[%c0_6, %c0_7], %8 {strides = array<i32>} : memref<64x64xbf16, #tpu.memory_space<vmem>>, vector<64x64xbf16>,
    return
  }
  func.func @transform_0(%arg0: i32) -> (i32, i32) {
    %c0_i32 = arith.constant 0 : i32
    %c0_i32_0 = arith.constant 0 : i32
    return %arg0, %c0_i32 : i32, i32
  }
  func.func @transform_1(%arg0: i32) -> (i32, i32) {
    %c0_i32 = arith.constant 0 : i32
    %c0_i32_0 = arith.constant 0 : i32
    %c0_i32_1 = arith.constant 0 : i32
    return %c0_i32, %c0_i32_0 : i32, i32
  }
  func.func @transform_2(%arg0: i32) -> (i32, i32) {
    %c0_i32 = arith.constant 0 : i32
    %c0_i32_0 = arith.constant 0 : i32
    %c0_i32_1 = arith.constant 0 : i32
    return %c0_i32, %c0_i32_0 : i32, i32
  }
  func.func @transform_3(%arg0: i32) -> (i32, i32) {
    %c0_i32 = arith.constant 0 : i32
    %c0_i32_0 = arith.constant 0 : i32
    return %arg0, %c0_i32 : i32, i32
  }
}

module attributes {stable_mosaic.version = 11 : i64} {
  func.func @_ms_conv_kernel(%arg0: i32, %arg1: memref<16x1152xbf16, #tpu.memory_space<vmem>>, %arg2: memref<1152x128xbf16, #tpu.memory_space<vmem>>, %arg3: memref<1x128xf32, #tpu.memory_space<vmem>>, %arg4: memref<16x128xbf16, #tpu.memory_space<vmem>>) attributes {dimension_semantics = [#tpu.dimension_semantics<parallel>], iteration_bounds = array<i64: 2>, scalar_prefetch = 0 : i64, scratch_operands = 0 : i64, tpu.core_type = #tpu.core_type<tc>, window_params = [{transform_indices = @transform_0, window_bounds = array<i64: 16, 1152>}, {pipeline_mode = #tpu.pipeline_mode<synchronous>, transform_indices = @transform_1, window_bounds = array<i64: 1152, 128>}, {pipeline_mode = #tpu.pipeline_mode<synchronous>, transform_indices = @transform_2, window_bounds = array<i64: 1, 128>}, {transform_indices = @transform_3, window_bounds = array<i64: 16, 128>}]} {
    %c0 = arith.constant 0 : index
    %c0_0 = arith.constant 0 : index
    %0 = vector.load %arg1[%c0, %c0_0] : memref<16x1152xbf16, #tpu.memory_space<vmem>>, vector<16x1152xbf16>
    %c0_1 = arith.constant 0 : index
    %c0_2 = arith.constant 0 : index
    %1 = vector.load %arg2[%c0_1, %c0_2] : memref<1152x128xbf16, #tpu.memory_space<vmem>>, vector<1152x128xbf16>
    %cst = arith.constant dense<0.000000e+00> : vector<16x128xf32>
    %2 = tpu.matmul %0, %1, %cst {dimension_numbers = #tpu.dot_dimension_numbers<[1], [0], [0], [1], [0, 0, 1, 1], [], []>} : vector<16x1152xbf16>, vector<1152x128xbf16>, vector<16x128xf32> -> vector<16x128xf32>
    %c0_3 = arith.constant 0 : index
    %c0_4 = arith.constant 0 : index
    %3 = vector.load %arg3[%c0_3, %c0_4] : memref<1x128xf32, #tpu.memory_space<vmem>>, vector<1x128xf32>
    %4 = vector.broadcast %3 : vector<1x128xf32> to vector<16x128xf32>
    %5 = arith.addf %2, %4 : vector<16x128xf32>
    %cst_5 = arith.constant 0.000000e+00 : f32
    %6 = vector.broadcast %cst_5 : f32 to vector<16x128xf32>
    %7 = arith.maximumf %5, %6 : vector<16x128xf32>
    %8 = arith.truncf %7 : vector<16x128xf32> to vector<16x128xbf16>
    %c0_6 = arith.constant 0 : index
    %c0_7 = arith.constant 0 : index
    %9 = vector.load %arg4[%c0_6, %c0_7] : memref<16x128xbf16, #tpu.memory_space<vmem>>, vector<16x128xbf16>
    tpu.vector_store %arg4[%c0_6, %c0_7], %8 {strides = array<i32>} : memref<16x128xbf16, #tpu.memory_space<vmem>>, vector<16x128xbf16>,
    return
  }
  func.func @transform_0(%arg0: i32) -> (i32, i32) {
    %c0_i32 = arith.constant 0 : i32
    %c0_i32_0 = arith.constant 0 : i32
    return %arg0, %c0_i32 : i32, i32
  }
  func.func @transform_1(%arg0: i32) -> (i32, i32) {
    %c0_i32 = arith.constant 0 : i32
    %c0_i32_0 = arith.constant 0 : i32
    %c0_i32_1 = arith.constant 0 : i32
    return %c0_i32, %c0_i32_0 : i32, i32
  }
  func.func @transform_2(%arg0: i32) -> (i32, i32) {
    %c0_i32 = arith.constant 0 : i32
    %c0_i32_0 = arith.constant 0 : i32
    %c0_i32_1 = arith.constant 0 : i32
    return %c0_i32, %c0_i32_0 : i32, i32
  }
  func.func @transform_3(%arg0: i32) -> (i32, i32) {
    %c0_i32 = arith.constant 0 : i32
    %c0_i32_0 = arith.constant 0 : i32
    return %arg0, %c0_i32 : i32, i32
  }
}

module attributes {stable_mosaic.version = 11 : i64} {
  func.func @_short_conv_kernel(%arg0: i32, %arg1: memref<16x576xbf16, #tpu.memory_space<vmem>>, %arg2: memref<576x128xbf16, #tpu.memory_space<vmem>>, %arg3: memref<1x128xf32, #tpu.memory_space<vmem>>, %arg4: memref<16x128xbf16, #tpu.memory_space<vmem>>, %arg5: memref<16x128xbf16, #tpu.memory_space<vmem>>) attributes {dimension_semantics = [#tpu.dimension_semantics<parallel>], iteration_bounds = array<i64: 2>, scalar_prefetch = 0 : i64, scratch_operands = 0 : i64, tpu.core_type = #tpu.core_type<tc>, window_params = [{transform_indices = @transform_0, window_bounds = array<i64: 16, 576>}, {pipeline_mode = #tpu.pipeline_mode<synchronous>, transform_indices = @transform_1, window_bounds = array<i64: 576, 128>}, {pipeline_mode = #tpu.pipeline_mode<synchronous>, transform_indices = @transform_2, window_bounds = array<i64: 1, 128>}, {transform_indices = @transform_3, window_bounds = array<i64: 16, 128>}, {transform_indices = @transform_4, window_bounds = array<i64: 16, 128>}]} {
    %c0 = arith.constant 0 : index
    %c0_0 = arith.constant 0 : index
    %0 = vector.load %arg1[%c0, %c0_0] : memref<16x576xbf16, #tpu.memory_space<vmem>>, vector<16x576xbf16>
    %c0_1 = arith.constant 0 : index
    %c0_2 = arith.constant 0 : index
    %1 = vector.load %arg2[%c0_1, %c0_2] : memref<576x128xbf16, #tpu.memory_space<vmem>>, vector<576x128xbf16>
    %cst = arith.constant dense<0.000000e+00> : vector<16x128xf32>
    %2 = tpu.matmul %0, %1, %cst {dimension_numbers = #tpu.dot_dimension_numbers<[1], [0], [0], [1], [0, 0, 1, 1], [], []>} : vector<16x576xbf16>, vector<576x128xbf16>, vector<16x128xf32> -> vector<16x128xf32>
    %c0_3 = arith.constant 0 : index
    %c0_4 = arith.constant 0 : index
    %3 = vector.load %arg3[%c0_3, %c0_4] : memref<1x128xf32, #tpu.memory_space<vmem>>, vector<1x128xf32>
    %4 = vector.broadcast %3 : vector<1x128xf32> to vector<16x128xf32>
    %5 = arith.addf %2, %4 : vector<16x128xf32>
    %cst_5 = arith.constant 0.000000e+00 : f32
    %6 = vector.broadcast %cst_5 : f32 to vector<16x128xf32>
    %7 = arith.maximumf %5, %6 : vector<16x128xf32>
    %c0_6 = arith.constant 0 : index
    %c0_7 = arith.constant 0 : index
    %8 = vector.load %arg4[%c0_6, %c0_7] : memref<16x128xbf16, #tpu.memory_space<vmem>>, vector<16x128xbf16>
    %9 = arith.extf %8 : vector<16x128xbf16> to vector<16x128xf32>
    %10 = arith.addf %9, %7 : vector<16x128xf32>
    %11 = arith.truncf %10 : vector<16x128xf32> to vector<16x128xbf16>
    %c0_8 = arith.constant 0 : index
    %c0_9 = arith.constant 0 : index
    %12 = vector.load %arg5[%c0_8, %c0_9] : memref<16x128xbf16, #tpu.memory_space<vmem>>, vector<16x128xbf16>
    tpu.vector_store %arg5[%c0_8, %c0_9], %11 {strides = array<i32>} : memref<16x128xbf16, #tpu.memory_space<vmem>>, vector<16x128xbf16>,
    return
  }
  func.func @transform_0(%arg0: i32) -> (i32, i32) {
    %c0_i32 = arith.constant 0 : i32
    %c0_i32_0 = arith.constant 0 : i32
    return %arg0, %c0_i32 : i32, i32
  }
  func.func @transform_1(%arg0: i32) -> (i32, i32) {
    %c0_i32 = arith.constant 0 : i32
    %c0_i32_0 = arith.constant 0 : i32
    %c0_i32_1 = arith.constant 0 : i32
    return %c0_i32, %c0_i32_0 : i32, i32
  }
  func.func @transform_2(%arg0: i32) -> (i32, i32) {
    %c0_i32 = arith.constant 0 : i32
    %c0_i32_0 = arith.constant 0 : i32
    %c0_i32_1 = arith.constant 0 : i32
    return %c0_i32, %c0_i32_0 : i32, i32
  }
  func.func @transform_3(%arg0: i32) -> (i32, i32) {
    %c0_i32 = arith.constant 0 : i32
    %c0_i32_0 = arith.constant 0 : i32
    return %arg0, %c0_i32 : i32, i32
  }
  func.func @transform_4(%arg0: i32) -> (i32, i32) {
    %c0_i32 = arith.constant 0 : i32
    %c0_i32_0 = arith.constant 0 : i32
    return %arg0, %c0_i32 : i32, i32
  }
}

module attributes {stable_mosaic.version = 11 : i64} {
  func.func @_head_kernel(%arg0: memref<2x16x128xbf16, #tpu.memory_space<vmem>>, %arg1: memref<128x1xf32, #tpu.memory_space<vmem>>, %arg2: memref<1x1xf32, #tpu.memory_space<vmem>>, %arg3: memref<2x1xf32, #tpu.memory_space<vmem>>) attributes {dimension_semantics = [], scalar_prefetch = 0 : i64, scratch_operands = 0 : i64, tpu.core_type = #tpu.core_type<tc>} {
    %c0 = arith.constant 0 : index
    %c0_0 = arith.constant 0 : index
    %c0_1 = arith.constant 0 : index
    %0 = vector.load %arg0[%c0, %c0_0, %c0_1] : memref<2x16x128xbf16, #tpu.memory_space<vmem>>, vector<2x16x128xbf16>
    %1 = arith.extf %0 : vector<2x16x128xbf16> to vector<2x16x128xf32>
    %cst = arith.constant dense<0.000000e+00> : vector<2x128xf32>
    %2 = vector.multi_reduction <add>, %1, %cst [1] : vector<2x16x128xf32> to vector<2x128xf32>
    %cst_2 = arith.constant 1.600000e+01 : f32
    %3 = vector.broadcast %cst_2 : f32 to vector<2x128xf32>
    %4 = arith.divf %2, %3 : vector<2x128xf32>
    %c0_3 = arith.constant 0 : index
    %c0_4 = arith.constant 0 : index
    %5 = vector.load %arg1[%c0_3, %c0_4] : memref<128x1xf32, #tpu.memory_space<vmem>>, vector<128x1xf32>
    %cst_5 = arith.constant dense<0.000000e+00> : vector<2x1xf32>
    %6 = tpu.matmul %4, %5, %cst_5 {dimension_numbers = #tpu.dot_dimension_numbers<[1], [0], [0], [1], [0, 0, 1, 1], [], []>} : vector<2x128xf32>, vector<128x1xf32>, vector<2x1xf32> -> vector<2x1xf32>
    %c0_6 = arith.constant 0 : index
    %c0_7 = arith.constant 0 : index
    %7 = vector.load %arg2[%c0_6, %c0_7] : memref<1x1xf32, #tpu.memory_space<vmem>>, vector<1x1xf32>
    %8 = vector.broadcast %7 : vector<1x1xf32> to vector<2x1xf32>
    %9 = arith.addf %6, %8 : vector<2x1xf32>
    %10 = arith.negf %9 : vector<2x1xf32>
    %11 = math.exp %10 : vector<2x1xf32>
    %cst_8 = arith.constant 1.000000e+00 : f32
    %12 = vector.broadcast %cst_8 : f32 to vector<2x1xf32>
    %13 = arith.addf %12, %11 : vector<2x1xf32>
    %14 = arith.divf %12, %13 : vector<2x1xf32>
    %c0_9 = arith.constant 0 : index
    %c0_10 = arith.constant 0 : index
    %15 = vector.load %arg3[%c0_9, %c0_10] : memref<2x1xf32, #tpu.memory_space<vmem>>, vector<2x1xf32>
    tpu.vector_store %arg3[%c0_9, %c0_10], %14 {strides = array<i32>} : memref<2x1xf32, #tpu.memory_space<vmem>>, vector<2x1xf32>,
    return
  }
}

</mosaic_0001>

<bundles_post_ra>
// kernel: disnet_forward.7
= control target key start
LH: loop header
LB: loop body
LE: loop exit
PB: predicated region body
PF: predicated region fallthrough
CT: control target
= control target key end

     0   :  { %s2944_s12 = smov 0   ;;  %s3506_s0 = inlined_call_operand.vmem [shape: bf16[2048,50], index: 0, kind: input, shape index: {}]   ;;  %s3507_s1 = inlined_call_operand.vmem [shape: bf16[50,16], index: 1, kind: input, shape index: {}]   ;;  %s3508_s2 = inlined_call_operand.vmem [shape: f32[1,16], index: 2, kind: input, shape index: {}]   ;;  %s3509_s3 = inlined_call_operand.vmem [shape: bf16[2048,16], index: 3, kind: output, shape index: {}]  }
   0x1 LB: > { %s2225_s13 = sadd.s32 4294967295, %s2922_s12   ;;  %p2229_p0 = scmp.ge.s32.totalorder %s2922_s12, 1  ;;  %s2922_s12 = sphi %s2944_s12, %s13_s12  }
   0x2   : > { %p138_p1 = scmp.lt.s32.totalorder %s2922_s12, 3 }
   0x4   : > { %p139_p2 = pnand %p2229_p0, %p138_p1 }
   0x5   : > { %v2847_v0 = vld [vmem:[%s3507_s1] sm:$0xff] (!%p139_p2)   ;;  %v2848_v1 = vld [vmem:[%s3507_s1 + $0x8] sm:$0xff] (!%p139_p2)   ;;  %s2230_s18 = sshll.u32 (!%p139_p2), %s2225_s13, 7  ;;  %v2849_v2 = vld [vmem:[%s3507_s1 + $0x10] sm:$0xff] (!%p139_p2)   ;;  %vm658_vm0 = vcmask (!%p139_p2), 408576   ;;  %vm851_vm1 = vcmask (!%p139_p2), 1040384  }
   0x6   : > { %142 = sbr.rel (%p139_p2) target bundleno = 364 (0x16c), region = 32  ;;  %2693 = vmatprep.subr.bf16.mxu0 (!%p139_p2), %v2847_v0  ;;  %2829 = vmatprep.subr.bf16.mxu1 (!%p139_p2), %v2847_v0  ;;  %p163_p3 = scmp.lt.s32.totalorder (!%p139_p2), %s2230_s18, 255  ;;  %v2850_v3 = vld [vmem:[%s3507_s1 + $0x18] ss:$0 sps:$4 sm:$0x11] (!%p139_p2)   ;;  %vm2040_vm2 = vcmask (!%p139_p2), 125952  }
   0x7   : > { %2694 = vmatpush3.bf16.msra.mxu0 (!%p139_p2), %v2847_v0  ;;  %2833 = vmatpush3.bf16.msra.mxu1 (!%p139_p2), %v2847_v0  ;;  %v853_v6 = vsel (!%p139_p2), %vm851_vm1, %v2850_v3, 0 }
   0x8   : > { %2695 = vmatprep.subr.bf16.mxu0 (!%p139_p2), %v2848_v1  ;;  %2830 = vmatprep.subr.bf16.mxu1 (!%p139_p2), %v2848_v1 }
   0xb   : > { %2696 = vmatpush3.bf16.msra.mxu0 (!%p139_p2), %v2848_v1  ;;  %2834 = vmatpush3.bf16.msra.mxu1 (!%p139_p2), %v2848_v1 }
   0xc   : > { %2697 = vmatprep.subr.bf16.mxu0 (!%p139_p2), %v2849_v2  ;;  %2831 = vmatprep.subr.bf16.mxu1 (!%p139_p2), %v2849_v2 }
   0xd   : > { %s3511_s18 = smov (!%p163_p3, %s2230_s18), 255 }
   0xe   : > { %s2231_s21 = sshll.u32 %s3511_s18, 2 }
   0xf   : > { %s2972_s26 = scalar_lea.vmem %s3506_s0, %s2231_s21  ;;  %2698 = vmatpush3.bf16.msra.mxu0 %v2849_v2  ;;  %2835 = vmatpush3.bf16.msra.mxu1 %v2849_v2  ;;  %s3118_s4 = scalar_lea.vmem %s3509_s3, %s2231_s21 }
  0x10   : > { %v2851_v4 = vld [vmem:[%s2972_s26] sm:$0xff]   ;;  %2837 = vmatprep.subr.msk.bf16.mxu0 %vm851_vm1, %v2850_v3  ;;  %2838 = vmatprep.subr.msk.bf16.mxu1 %vm851_vm1, %v2850_v3  ;;  %v2853_v7 = vld [vmem:[%s2972_s26 + $0x8] sm:$0xff]   ;;  %v2855_v9 = vld [vmem:[%s2972_s26 + $0x10] sm:$0xff]  }
  0x11   : > { %v2852_v5 = vld [vmem:[%s2972_s26 + $0x100] sm:$0xff]   ;;  %2701 = vmatprep.mubr.msk.bf16.mxu0 %vm658_vm0, %v2851_v4  ;;  %v2854_v8 = vld [vmem:[%s2972_s26 + $0x108] sm:$0xff]   ;;  %v2856_v10 = vld [vmem:[%s2972_s26 + $0x110] sm:$0xff]  }
  0x12   : > { %2765 = vmatprep.mubr.msk.bf16.mxu1 %vm658_vm0, %v2852_v5  ;;  %v2857_v11 = vld [vmem:[%s2972_s26 + $0x18] sm:$0xff]   ;;  %v2859_v13 = vld [vmem:[%s2972_s26 + $0x20] sm:$0xff]   ;;  %v2861_v15 = vld [vmem:[%s2972_s26 + $0x28] sm:$0xff]  }
  0x13   : > { %2700 = vmatpush3.bf16.msra.mxu0 %v853_v6  ;;  %2836 = vmatpush3.bf16.msra.mxu1 %v853_v6  ;;  %v2858_v12 = vld [vmem:[%s2972_s26 + $0x118] sm:$0xff]   ;;  %v2860_v14 = vld [vmem:[%s2972_s26 + $0x120] sm:$0xff]   ;;  %v2862_v16 = vld [vmem:[%s2972_s26 + $0x128] sm:$0xff]  }
  0x14   : > { %v2863_v17 = vld [vmem:[%s2972_s26 + $0x30] sm:$0xff]   ;;  %v2865_v19 = vld [vmem:[%s2972_s26 + $0x38] sm:$0xff]   ;;  %v2867_v21 = vld [vmem:[%s2972_s26 + $0x40] sm:$0xff]  }
  0x15   : > { %v2864_v18 = vld [vmem:[%s2972_s26 + $0x130] sm:$0xff]   ;;  %v2866_v20 = vld [vmem:[%s2972_s26 + $0x138] sm:$0xff]   ;;  %v2868_v22 = vld [vmem:[%s2972_s26 + $0x140] sm:$0xff]  }
  0x16   : > { %2702 = vmatmul.mubr.msk.bf16.vlgmr.msra.gmra.mrb[0].mxu0 %vm658_vm0, %v2853_v7  ;;  %2766 = vmatmul.mubr.msk.bf16.vlgmr.msra.gmra.mrb[0].mxu1 %vm658_vm0, %v2854_v8  ;;  %v2869_v23 = vld [vmem:[%s2972_s26 + $0x48] sm:$0xff]   ;;  %v2871_v25 = vld [vmem:[%s2972_s26 + $0x50] sm:$0xff]   ;;  %v2873_v27 = vld [vmem:[%s2972_s26 + $0x58] sm:$0xff]  }
  0x17   : > { %2705 = vmatprep.mubr.msk.bf16.mxu0 %vm658_vm0, %v2855_v9  ;;  %2769 = vmatprep.mubr.msk.bf16.mxu1 %vm658_vm0, %v2856_v10  ;;  %v2870_v24 = vld [vmem:[%s2972_s26 + $0x148] sm:$0xff]   ;;  %v2872_v26 = vld [vmem:[%s2972_s26 + $0x150] sm:$0xff]   ;;  %v2874_v28 = vld [vmem:[%s2972_s26 + $0x158] sm:$0xff]  }
  0x18   : > { %v2875_v29 = vld [vmem:[%s2972_s26 + $0x60] sm:$0xff]   ;;  %v2877_v31 = vld [vmem:[%s2972_s26 + $0x68] sm:$0xff]   ;;  %v2879_v33 = vld [vmem:[%s2972_s26 + $0x70] sm:$0xff]  }
  0x19   : > { %v2876_v30 = vld [vmem:[%s2972_s26 + $0x160] sm:$0xff]   ;;  %v2878_v32 = vld [vmem:[%s2972_s26 + $0x168] sm:$0xff]   ;;  %v2880_v34 = vld [vmem:[%s2972_s26 + $0x170] sm:$0xff]  }
  0x1a   : > { %v2881_v35 = vld [vmem:[%s2972_s26 + $0x78] sm:$0xff]   ;;  %v2883_v37 = vld [vmem:[%s2972_s26 + $0x80] sm:$0xff]   ;;  %v2885_v39 = vld [vmem:[%s2972_s26 + $0x88] sm:$0xff]  }
  0x1b   : > { %v2882_v36 = vld [vmem:[%s2972_s26 + $0x178] sm:$0xff]   ;;  %v2884_v38 = vld [vmem:[%s2972_s26 + $0x180] sm:$0xff]   ;;  %v2886_v40 = vld [vmem:[%s2972_s26 + $0x188] sm:$0xff]  }
  0x1c   : > { %v2887_v41 = vld [vmem:[%s2972_s26 + $0x90] sm:$0xff]   ;;  %v2889_v43 = vld [vmem:[%s2972_s26 + $0x98] sm:$0xff]   ;;  %v2891_v45 = vld [vmem:[%s2972_s26 + $0xa0] sm:$0xff]  }
  0x1d   : > { %v2888_v42 = vld [vmem:[%s2972_s26 + $0x190] sm:$0xff]   ;;  %v2890_v44 = vld [vmem:[%s2972_s26 + $0x198] sm:$0xff]   ;;  %v2892_v46 = vld [vmem:[%s2972_s26 + $0x1a0] sm:$0xff]  }
  0x1e   : > { %2706 = vmatmul.mubr.msk.bf16.gmra.mrb[4].mxu0 %vm658_vm0, %v2857_v11  ;;  %2770 = vmatmul.mubr.msk.bf16.gmra.mrb[4].mxu1 %vm658_vm0, %v2858_v12  ;;  %v2893_v47 = vld [vmem:[%s2972_s26 + $0xa8] sm:$0xff]   ;;  %v2895_v49 = vld [vmem:[%s2972_s26 + $0xb0] sm:$0xff]   ;;  %v2897_v51 = vld [vmem:[%s2972_s26 + $0xb8] sm:$0xff]  }
  0x1f   : > { %2709 = vmatprep.mubr.msk.bf16.mxu0 %vm658_vm0, %v2859_v13  ;;  %2773 = vmatprep.mubr.msk.bf16.mxu1 %vm658_vm0, %v2860_v14  ;;  %v2894_v48 = vld [vmem:[%s2972_s26 + $0x1a8] sm:$0xff]   ;;  %v2896_v50 = vld [vmem:[%s2972_s26 + $0x1b0] sm:$0xff]   ;;  %v2898_v52 = vld [vmem:[%s2972_s26 + $0x1b8] sm:$0xff]  }
  0x20   : > { %v2899_v53 = vld [vmem:[%s2972_s26 + $0xc0] sm:$0xff]   ;;  %v2901_v55 = vld [vmem:[%s2972_s26 + $0xc8] sm:$0xff]   ;;  %v2903_v57 = vld [vmem:[%s2972_s26 + $0xd0] sm:$0xff]  }
  0x21   : > { %v2900_v54 = vld [vmem:[%s2972_s26 + $0x1c0] sm:$0xff]   ;;  %v2902_v56 = vld [vmem:[%s2972_s26 + $0x1c8] sm:$0xff]   ;;  %v2904_v58 = vld [vmem:[%s2972_s26 + $0x1d0] sm:$0xff]  }
  0x22   : > { %v2905_v59 = vld [vmem:[%s2972_s26 + $0xd8] sm:$0xff]   ;;  %v2907_v61 = vld [vmem:[%s2972_s26 + $0xe0] sm:$0xff]   ;;  %v2909_v63 = vld [vmem:[%s2972_s26 + $0xe8] sm:$0xff]  }
  0x23   : > { %v2906_v60 = vld [vmem:[%s2972_s26 + $0x1d8] sm:$0xff]   ;;  %v2908_v62 = vld [vmem:[%s2972_s26 + $0x1e0] sm:$0xff]   ;;  %v2910_v0 = vld [vmem:[%s2972_s26 + $0x1e8] sm:$0xff]  }
  0x24   : > { %v2911_v1 = vld [vmem:[%s2972_s26 + $0xf0] sm:$0xff]   ;;  %v2913_v3 = vld [vmem:[%s2972_s26 + $0xf8] sm:$0xff]   ;;  %v3105_v5 = vld [vmem:[%s3508_s2] ss:$0 sm:$0xff] }
  0x25   : > { %v2912_v2 = vld [vmem:[%s2972_s26 + $0x1f0] sm:$0xff]   ;;  %v2914_v4 = vld [vmem:[%s2972_s26 + $0x1f8] sm:$0xff]  }
  0x26   : > { %2710 = vmatmul.mubr.msk.bf16.gmra.mrb[8].mxu0 %vm658_vm0, %v2861_v15  ;;  %2774 = vmatmul.mubr.msk.bf16.gmra.mrb[8].mxu1 %vm658_vm0, %v2862_v16 }
  0x27   : > { %2713 = vmatprep.mubr.msk.bf16.mxu0 %vm658_vm0, %v2863_v17  ;;  %2777 = vmatprep.mubr.msk.bf16.mxu1 %vm658_vm0, %v2864_v18 }
  0x2e   : > { %2714 = vmatmul.mubr.msk.bf16.gmra.mrb[12].mxu0 %vm658_vm0, %v2865_v19  ;;  %2778 = vmatmul.mubr.msk.bf16.gmra.mrb[12].mxu1 %vm658_vm0, %v2866_v20 }
  0x2f   : > { %2717 = vmatprep.mubr.msk.bf16.mxu0 %vm658_vm0, %v2867_v21  ;;  %2781 = vmatprep.mubr.msk.bf16.mxu1 %vm658_vm0, %v2868_v22 }
  0x36   : > { %2718 = vmatmul.mubr.msk.bf16.gmra.mrb[16].mxu0 %vm658_vm0, %v2869_v23  ;;  %2782 = vmatmul.mubr.msk.bf16.gmra.mrb[16].mxu1 %vm658_vm0, %v2870_v24 }
  0x37   : > { %2721 = vmatprep.mubr.msk.bf16.mxu0 %vm658_vm0, %v2871_v25  ;;  %2785 = vmatprep.mubr.msk.bf16.mxu1 %vm658_vm0, %v2872_v26 }
  0x3e   : > { %2722 = vmatmul.mubr.msk.bf16.gmra.mrb[20].mxu0 %vm658_vm0, %v2873_v27  ;;  %2786 = vmatmul.mubr.msk.bf16.gmra.mrb[20].mxu1 %vm658_vm0, %v2874_v28 }
  0x3f   : > { %2725 = vmatprep.mubr.msk.bf16.mxu0 %vm658_vm0, %v2875_v29  ;;  %2789 = vmatprep.mubr.msk.bf16.mxu1 %vm658_vm0, %v2876_v30 }
  0x46   : > { %2726 = vmatmul.mubr.msk.bf16.gmra.mrb[24].mxu0 %vm658_vm0, %v2877_v31  ;;  %2790 = vmatmul.mubr.msk.bf16.gmra.mrb[24].mxu1 %vm658_vm0, %v2878_v32 }
  0x47   : > { %2729 = vmatprep.mubr.msk.bf16.mxu0 %vm658_vm0, %v2879_v33  ;;  %2793 = vmatprep.mubr.msk.bf16.mxu1 %vm658_vm0, %v2880_v34 }
  0x4e   : > { %2730 = vmatmul.mubr.msk.bf16.gmra.mrb[28].mxu0 %vm658_vm0, %v2881_v35  ;;  %2794 = vmatmul.mubr.msk.bf16.gmra.mrb[28].mxu1 %vm658_vm0, %v2882_v36 }
  0x4f   : > { %2733 = vmatprep.mubr.msk.bf16.mxu0 %vm658_vm0, %v2883_v37  ;;  %2797 = vmatprep.mubr.msk.bf16.mxu1 %vm658_vm0, %v2884_v38 }
  0x56   : > { %2734 = vmatmul.mubr.msk.bf16.gmra.mrb[32].mxu0 %vm658_vm0, %v2885_v39  ;;  %2798 = vmatmul.mubr.msk.bf16.gmra.mrb[32].mxu1 %vm658_vm0, %v2886_v40 }
  0x57   : > { %2737 = vmatprep.mubr.msk.bf16.mxu0 %vm658_vm0, %v2887_v41  ;;  %2801 = vmatprep.mubr.msk.bf16.mxu1 %vm658_vm0, %v2888_v42 }
  0x5e   : > { %2738 = vmatmul.mubr.msk.bf16.gmra.mrb[36].mxu0 %vm658_vm0, %v2889_v43  ;;  %2802 = vmatmul.mubr.msk.bf16.gmra.mrb[36].mxu1 %vm658_vm0, %v2890_v44 }
  0x5f   : > { %2741 = vmatprep.mubr.msk.bf16.mxu0 %vm658_vm0, %v2891_v45  ;;  %2805 = vmatprep.mubr.msk.bf16.mxu1 %vm658_vm0, %v2892_v46 }
  0x66   : > { %2742 = vmatmul.mubr.msk.bf16.gmra.mrb[40].mxu0 %vm658_vm0, %v2893_v47  ;;  %2806 = vmatmul.mubr.msk.bf16.gmra.mrb[40].mxu1 %vm658_vm0, %v2894_v48 }
  0x67   : > { %2745 = vmatprep.mubr.msk.bf16.mxu0 %vm658_vm0, %v2895_v49  ;;  %2809 = vmatprep.mubr.msk.bf16.mxu1 %vm658_vm0, %v2896_v50 }
  0x6e   : > { %2746 = vmatmul.mubr.msk.bf16.gmra.mrb[44].mxu0 %vm658_vm0, %v2897_v51  ;;  %2810 = vmatmul.mubr.msk.bf16.gmra.mrb[44].mxu1 %vm658_vm0, %v2898_v52 }
  0x6f   : > { %2749 = vmatprep.mubr.msk.bf16.mxu0 %vm658_vm0, %v2899_v53  ;;  %2813 = vmatprep.mubr.msk.bf16.mxu1 %vm658_vm0, %v2900_v54 }
  0x76   : > { %2750 = vmatmul.mubr.msk.bf16.gmra.mrb[48].mxu0 %vm658_vm0, %v2901_v55  ;;  %2814 = vmatmul.mubr.msk.bf16.gmra.mrb[48].mxu1 %vm658_vm0, %v2902_v56 }
  0x77   : > { %2753 = vmatprep.mubr.msk.bf16.mxu0 %vm658_vm0, %v2903_v57  ;;  %2817 = vmatprep.mubr.msk.bf16.mxu1 %vm658_vm0, %v2904_v58 }
  0x7e   : > { %2754 = vmatmul.mubr.msk.bf16.gmra.mrb[52].mxu0 %vm658_vm0, %v2905_v59  ;;  %2818 = vmatmul.mubr.msk.bf16.gmra.mrb[52].mxu1 %vm658_vm0, %v2906_v60 }
  0x7f   : > { %2757 = vmatprep.mubr.msk.bf16.mxu0 %vm658_vm0, %v2907_v61  ;;  %2821 = vmatprep.mubr.msk.bf16.mxu1 %vm658_vm0, %v2908_v62 }
  0x86   : > { %2758 = vmatmul.mubr.msk.bf16.gmra.mrb[56].mxu0 %vm658_vm0, %v2909_v63  ;;  %2822 = vmatmul.mubr.msk.bf16.gmra.mrb[56].mxu1 %vm658_vm0, %v2910_v0 }
  0x87   : > { %2761 = vmatprep.mubr.msk.bf16.mxu0 %vm658_vm0, %v2911_v1  ;;  %2825 = vmatprep.mubr.msk.bf16.mxu1 %vm658_vm0, %v2912_v2 }
  0x8e   : > { %2762 = vmatmul.mubr.msk.bf16.gmra.mrb[60].mxu0 %vm658_vm0, %v2913_v3  ;;  %2826 = vmatmul.mubr.msk.bf16.gmra.mrb[60].mxu1 %vm658_vm0, %v2914_v4 }
  0xe9   : > { %v2703_v6 = vpop.f32.mrb[0].mxu0  ;;  %v2767_v7 = vpop.f32.mrb[0].mxu1 }
  0xea   : > { %v898_v8 = vadd.f32 %v2703_v6, %v3105_v5  ;;  %v1154_v9 = vadd.f32 %v2767_v7, %v3105_v5  ;;  %v889_v10 = vpop.f32.mrb[1].mxu0  ;;  %v1145_v11 = vpop.f32.mrb[1].mxu1 }
  0xeb   : > { %v890_v12 = vadd.f32 %v3105_v5, %v889_v10  ;;  %v1146_v13 = vadd.f32 %v3105_v5, %v1145_v11  ;;  %v2704_v14 = vpop.f32.mrb[2].mxu0  ;;  %v2768_v15 = vpop.f32.mrb[2].mxu1 }
  0xec   : > { %v1402_v16 = vmax.f32 %v898_v8, 0.0  ;;  %v1466_v17 = vmax.f32 %v1154_v9, 0.0  ;;  %v901_v18 = vadd.f32 %v2704_v14, %v3105_v5  ;;  %v1157_v19 = vadd.f32 %v2768_v15, %v3105_v5  ;;  %v892_v20 = vpop.f32.mrb[3].mxu0  ;;  %v1148_v21 = vpop.f32.mrb[3].mxu1 }
  0xed   : > { %v1400_v22 = vmax.f32 %v890_v12, 0.0  ;;  %v1464_v23 = vmax.f32 %v1146_v13, 0.0  ;;  %v893_v24 = vadd.f32 %v3105_v5, %v892_v20  ;;  %v1149_v25 = vadd.f32 %v3105_v5, %v1148_v21 }
  0xee   : > { %v2499_v26 = vpack.c.bf16 %v1402_v16, %v1402_v16  ;;  %v2563_v27 = vpack.c.bf16 %v1466_v17, %v1466_v17  ;;  %v1403_v28 = vmax.f32 %v901_v18, 0.0  ;;  %v1467_v29 = vmax.f32 %v1157_v19, 0.0 }
  0xef   : > { %v2497_v30 = vpack.c.bf16 %v1400_v22, %v1400_v22  ;;  %v2561_v31 = vpack.c.bf16 %v1464_v23, %v1464_v23  ;;  %v1401_v32 = vmax.f32 %v893_v24, 0.0  ;;  %v1465_v33 = vmax.f32 %v1149_v25, 0.0 }
  0xf0   : > { %2043 = vst.msk [vmem:[%s3118_s4 + $0x8] sm:$0xf] %vm2040_vm2, %v2499_v26  ;;  %2107 = vst.msk [vmem:[%s3118_s4 + $0x108] sm:$0xf] %vm2040_vm2, %v2563_v27  ;;  %v2500_v34 = vpack.c.bf16 %v1403_v28, %v1403_v28  ;;  %v2564_v35 = vpack.c.bf16 %v1467_v29, %v1467_v29 }
  0xf1   : > { %2041 = vst.msk [vmem:[%s3118_s4] sm:$0xf] %vm2040_vm2, %v2497_v30  ;;  %2105 = vst.msk [vmem:[%s3118_s4 + $0x100] sm:$0xf] %vm2040_vm2, %v2561_v31  ;;  %v2498_v36 = vpack.c.bf16 %v1401_v32, %v1401_v32  ;;  %v2562_v37 = vpack.c.bf16 %v1465_v33, %v1465_v33  ;;  %v2707_v38 = vpop.f32.mrb[4].mxu0  ;;  %v2771_v39 = vpop.f32.mrb[4].mxu1 }
  0xf2   : > { %2044 = vst.msk [vmem:[%s3118_s4 + $0xc] sm:$0xf] %vm2040_vm2, %v2500_v34  ;;  %2108 = vst.msk [vmem:[%s3118_s4 + $0x10c] sm:$0xf] %vm2040_vm2, %v2564_v35  ;;  %v914_v40 = vadd.f32 %v2707_v38, %v3105_v5  ;;  %v1170_v41 = vadd.f32 %v2771_v39, %v3105_v5  ;;  %v905_v42 = vpop.f32.mrb[5].mxu0  ;;  %v1161_v43 = vpop.f32.mrb[5].mxu1 }
  0xf3   : > { %2042 = vst.msk [vmem:[%s3118_s4 + $0x4] sm:$0xf] %vm2040_vm2, %v2498_v36  ;;  %2106 = vst.msk [vmem:[%s3118_s4 + $0x104] sm:$0xf] %vm2040_vm2, %v2562_v37  ;;  %v906_v44 = vadd.f32 %v3105_v5, %v905_v42  ;;  %v1162_v45 = vadd.f32 %v3105_v5, %v1161_v43  ;;  %v2708_v46 = vpop.f32.mrb[6].mxu0  ;;  %v2772_v47 = vpop.f32.mrb[6].mxu1 }
  0xf4   : > { %v1406_v48 = vmax.f32 %v914_v40, 0.0  ;;  %v1470_v49 = vmax.f32 %v1170_v41, 0.0  ;;  %v917_v50 = vadd.f32 %v2708_v46, %v3105_v5  ;;  %v1173_v51 = vadd.f32 %v2772_v47, %v3105_v5  ;;  %v908_v52 = vpop.f32.mrb[7].mxu0  ;;  %v1164_v53 = vpop.f32.mrb[7].mxu1 }
  0xf5   : > { %v1404_v54 = vmax.f32 %v906_v44, 0.0  ;;  %v1468_v55 = vmax.f32 %v1162_v45, 0.0  ;;  %v909_v56 = vadd.f32 %v3105_v5, %v908_v52  ;;  %v1165_v57 = vadd.f32 %v3105_v5, %v1164_v53 }
  0xf6   : > { %v2503_v58 = vpack.c.bf16 %v1406_v48, %v1406_v48  ;;  %v2567_v59 = vpack.c.bf16 %v1470_v49, %v1470_v49  ;;  %v1407_v60 = vmax.f32 %v917_v50, 0.0  ;;  %v1471_v61 = vmax.f32 %v1173_v51, 0.0 }
  0xf7   : > { %v2501_v62 = vpack.c.bf16 %v1404_v54, %v1404_v54  ;;  %v2565_v63 = vpack.c.bf16 %v1468_v55, %v1468_v55  ;;  %v1405_v0 = vmax.f32 %v909_v56, 0.0  ;;  %v1469_v1 = vmax.f32 %v1165_v57, 0.0 }
  0xf8   : > { %2047 = vst.msk [vmem:[%s3118_s4 + $0x18] sm:$0xf] %vm2040_vm2, %v2503_v58  ;;  %2111 = vst.msk [vmem:[%s3118_s4 + $0x118] sm:$0xf] %vm2040_vm2, %v2567_v59  ;;  %v2504_v2 = vpack.c.bf16 %v1407_v60, %v1407_v60  ;;  %v2568_v3 = vpack.c.bf16 %v1471_v61, %v1471_v61 }
  0xf9   : > { %2045 = vst.msk [vmem:[%s3118_s4 + $0x10] sm:$0xf] %vm2040_vm2, %v2501_v62  ;;  %2109 = vst.msk [vmem:[%s3118_s4 + $0x110] sm:$0xf] %vm2040_vm2, %v2565_v63  ;;  %v2502_v4 = vpack.c.bf16 %v1405_v0, %v1405_v0  ;;  %v2566_v6 = vpack.c.bf16 %v1469_v1, %v1469_v1  ;;  %v2711_v7 = vpop.f32.mrb[8].mxu0  ;;  %v2775_v8 = vpop.f32.mrb[8].mxu1 }
  0xfa   : > { %2048 = vst.msk [vmem:[%s3118_s4 + $0x1c] sm:$0xf] %vm2040_vm2, %v2504_v2  ;;  %2112 = vst.msk [vmem:[%s3118_s4 + $0x11c] sm:$0xf] %vm2040_vm2, %v2568_v3  ;;  %v930_v9 = vadd.f32 %v2711_v7, %v3105_v5  ;;  %v1186_v10 = vadd.f32 %v2775_v8, %v3105_v5  ;;  %v921_v11 = vpop.f32.mrb[9].mxu0  ;;  %v1177_v12 = vpop.f32.mrb[9].mxu1 }
  0xfb   : > { %2046 = vst.msk [vmem:[%s3118_s4 + $0x14] sm:$0xf] %vm2040_vm2, %v2502_v4  ;;  %2110 = vst.msk [vmem:[%s3118_s4 + $0x114] sm:$0xf] %vm2040_vm2, %v2566_v6  ;;  %v922_v13 = vadd.f32 %v3105_v5, %v921_v11  ;;  %v1178_v14 = vadd.f32 %v3105_v5, %v1177_v12  ;;  %v2712_v15 = vpop.f32.mrb[10].mxu0  ;;  %v2776_v16 = vpop.f32.mrb[10].mxu1 }
  0xfc   : > { %v1410_v17 = vmax.f32 %v930_v9, 0.0  ;;  %v1474_v18 = vmax.f32 %v1186_v10, 0.0  ;;  %v933_v19 = vadd.f32 %v2712_v15, %v3105_v5  ;;  %v1189_v20 = vadd.f32 %v2776_v16, %v3105_v5  ;;  %v924_v21 = vpop.f32.mrb[11].mxu0  ;;  %v1180_v22 = vpop.f32.mrb[11].mxu1 }
  0xfd   : > { %v1408_v23 = vmax.f32 %v922_v13, 0.0  ;;  %v1472_v24 = vmax.f32 %v1178_v14, 0.0  ;;  %v925_v25 = vadd.f32 %v3105_v5, %v924_v21  ;;  %v1181_v26 = vadd.f32 %v3105_v5, %v1180_v22 }
  0xfe   : > { %v2507_v27 = vpack.c.bf16 %v1410_v17, %v1410_v17  ;;  %v2571_v28 = vpack.c.bf16 %v1474_v18, %v1474_v18  ;;  %v1411_v29 = vmax.f32 %v933_v19, 0.0  ;;  %v1475_v30 = vmax.f32 %v1189_v20, 0.0 }
  0xff   : > { %v2505_v31 = vpack.c.bf16 %v1408_v23, %v1408_v23  ;;  %v2569_v32 = vpack.c.bf16 %v1472_v24, %v1472_v24  ;;  %v1409_v33 = vmax.f32 %v925_v25, 0.0  ;;  %v1473_v34 = vmax.f32 %v1181_v26, 0.0 }
 0x100   : > { %2051 = vst.msk [vmem:[%s3118_s4 + $0x28] sm:$0xf] %vm2040_vm2, %v2507_v27  ;;  %2115 = vst.msk [vmem:[%s3118_s4 + $0x128] sm:$0xf] %vm2040_vm2, %v2571_v28  ;;  %v2508_v35 = vpack.c.bf16 %v1411_v29, %v1411_v29  ;;  %v2572_v36 = vpack.c.bf16 %v1475_v30, %v1475_v30 }
 0x101   : > { %2049 = vst.msk [vmem:[%s3118_s4 + $0x20] sm:$0xf] %vm2040_vm2, %v2505_v31  ;;  %2113 = vst.msk [vmem:[%s3118_s4 + $0x120] sm:$0xf] %vm2040_vm2, %v2569_v32  ;;  %v2506_v37 = vpack.c.bf16 %v1409_v33, %v1409_v33  ;;  %v2570_v38 = vpack.c.bf16 %v1473_v34, %v1473_v34  ;;  %v2715_v39 = vpop.f32.mrb[12].mxu0  ;;  %v2779_v40 = vpop.f32.mrb[12].mxu1 }
 0x102   : > { %2052 = vst.msk [vmem:[%s3118_s4 + $0x2c] sm:$0xf] %vm2040_vm2, %v2508_v35  ;;  %2116 = vst.msk [vmem:[%s3118_s4 + $0x12c] sm:$0xf] %vm2040_vm2, %v2572_v36  ;;  %v946_v41 = vadd.f32 %v2715_v39, %v3105_v5  ;;  %v1202_v42 = vadd.f32 %v2779_v40, %v3105_v5  ;;  %v937_v43 = vpop.f32.mrb[13].mxu0  ;;  %v1193_v44 = vpop.f32.mrb[13].mxu1 }
 0x103   : > { %2050 = vst.msk [vmem:[%s3118_s4 + $0x24] sm:$0xf] %vm2040_vm2, %v2506_v37  ;;  %2114 = vst.msk [vmem:[%s3118_s4 + $0x124] sm:$0xf] %vm2040_vm2, %v2570_v38  ;;  %v938_v45 = vadd.f32 %v3105_v5, %v937_v43  ;;  %v1194_v46 = vadd.f32 %v3105_v5, %v1193_v44  ;;  %v2716_v47 = vpop.f32.mrb[14].mxu0  ;;  %v2780_v48 = vpop.f32.mrb[14].mxu1 }
 0x104   : > { %v1414_v49 = vmax.f32 %v946_v41, 0.0  ;;  %v1478_v50 = vmax.f32 %v1202_v42, 0.0  ;;  %v949_v51 = vadd.f32 %v2716_v47, %v3105_v5  ;;  %v1205_v52 = vadd.f32 %v2780_v48, %v3105_v5  ;;  %v940_v53 = vpop.f32.mrb[15].mxu0  ;;  %v1196_v54 = vpop.f32.mrb[15].mxu1 }
 0x105   : > { %v1412_v55 = vmax.f32 %v938_v45, 0.0  ;;  %v1476_v56 = vmax.f32 %v1194_v46, 0.0  ;;  %v941_v57 = vadd.f32 %v3105_v5, %v940_v53  ;;  %v1197_v58 = vadd.f32 %v3105_v5, %v1196_v54 }
 0x106   : > { %v2511_v59 = vpack.c.bf16 %v1414_v49, %v1414_v49  ;;  %v2575_v60 = vpack.c.bf16 %v1478_v50, %v1478_v50  ;;  %v1415_v61 = vmax.f32 %v949_v51, 0.0  ;;  %v1479_v62 = vmax.f32 %v1205_v52, 0.0 }
 0x107   : > { %v2509_v63 = vpack.c.bf16 %v1412_v55, %v1412_v55  ;;  %v2573_v0 = vpack.c.bf16 %v1476_v56, %v1476_v56  ;;  %v1413_v1 = vmax.f32 %v941_v57, 0.0  ;;  %v1477_v2 = vmax.f32 %v1197_v58, 0.0 }
 0x108   : > { %2055 = vst.msk [vmem:[%s3118_s4 + $0x38] sm:$0xf] %vm2040_vm2, %v2511_v59  ;;  %2119 = vst.msk [vmem:[%s3118_s4 + $0x138] sm:$0xf] %vm2040_vm2, %v2575_v60  ;;  %v2512_v3 = vpack.c.bf16 %v1415_v61, %v1415_v61  ;;  %v2576_v4 = vpack.c.bf16 %v1479_v62, %v1479_v62 }
 0x109   : > { %2053 = vst.msk [vmem:[%s3118_s4 + $0x30] sm:$0xf] %vm2040_vm2, %v2509_v63  ;;  %2117 = vst.msk [vmem:[%s3118_s4 + $0x130] sm:$0xf] %vm2040_vm2, %v2573_v0  ;;  %v2510_v6 = vpack.c.bf16 %v1413_v1, %v1413_v1  ;;  %v2574_v7 = vpack.c.bf16 %v1477_v2, %v1477_v2  ;;  %v2719_v8 = vpop.f32.mrb[16].mxu0  ;;  %v2783_v9 = vpop.f32.mrb[16].mxu1 }
 0x10a   : > { %2056 = vst.msk [vmem:[%s3118_s4 + $0x3c] sm:$0xf] %vm2040_vm2, %v2512_v3  ;;  %2120 = vst.msk [vmem:[%s3118_s4 + $0x13c] sm:$0xf] %vm2040_vm2, %v2576_v4  ;;  %v962_v10 = vadd.f32 %v2719_v8, %v3105_v5  ;;  %v1218_v11 = vadd.f32 %v2783_v9, %v3105_v5  ;;  %v953_v12 = vpop.f32.mrb[17].mxu0  ;;  %v1209_v13 = vpop.f32.mrb[17].mxu1 }
 0x10b   : > { %2054 = vst.msk [vmem:[%s3118_s4 + $0x34] sm:$0xf] %vm2040_vm2, %v2510_v6  ;;  %2118 = vst.msk [vmem:[%s3118_s4 + $0x134] sm:$0xf] %vm2040_vm2, %v2574_v7  ;;  %v954_v14 = vadd.f32 %v3105_v5, %v953_v12  ;;  %v1210_v15 = vadd.f32 %v3105_v5, %v1209_v13  ;;  %v2720_v16 = vpop.f32.mrb[18].mxu0  ;;  %v2784_v17 = vpop.f32.mrb[18].mxu1 }
 0x10c   : > { %v1418_v18 = vmax.f32 %v962_v10, 0.0  ;;  %v1482_v19 = vmax.f32 %v1218_v11, 0.0  ;;  %v965_v20 = vadd.f32 %v2720_v16, %v3105_v5  ;;  %v1221_v21 = vadd.f32 %v2784_v17, %v3105_v5  ;;  %v956_v22 = vpop.f32.mrb[19].mxu0  ;;  %v1212_v23 = vpop.f32.mrb[19].mxu1 }
 0x10d   : > { %v1416_v24 = vmax.f32 %v954_v14, 0.0  ;;  %v1480_v25 = vmax.f32 %v1210_v15, 0.0  ;;  %v957_v26 = vadd.f32 %v3105_v5, %v956_v22  ;;  %v1213_v27 = vadd.f32 %v3105_v5, %v1212_v23 }
 0x10e   : > { %v2515_v28 = vpack.c.bf16 %v1418_v18, %v1418_v18  ;;  %v2579_v29 = vpack.c.bf16 %v1482_v19, %v1482_v19  ;;  %v1419_v30 = vmax.f32 %v965_v20, 0.0  ;;  %v1483_v31 = vmax.f32 %v1221_v21, 0.0 }
 0x10f   : > { %v2513_v32 = vpack.c.bf16 %v1416_v24, %v1416_v24  ;;  %v2577_v33 = vpack.c.bf16 %v1480_v25, %v1480_v25  ;;  %v1417_v34 = vmax.f32 %v957_v26, 0.0  ;;  %v1481_v35 = vmax.f32 %v1213_v27, 0.0 }
 0x110   : > { %2059 = vst.msk [vmem:[%s3118_s4 + $0x48] sm:$0xf] %vm2040_vm2, %v2515_v28  ;;  %2123 = vst.msk [vmem:[%s3118_s4 + $0x148] sm:$0xf] %vm2040_vm2, %v2579_v29  ;;  %v2516_v36 = vpack.c.bf16 %v1419_v30, %v1419_v30  ;;  %v2580_v37 = vpack.c.bf16 %v1483_v31, %v1483_v31 }
 0x111   : > { %2057 = vst.msk [vmem:[%s3118_s4 + $0x40] sm:$0xf] %vm2040_vm2, %v2513_v32  ;;  %2121 = vst.msk [vmem:[%s3118_s4 + $0x140] sm:$0xf] %vm2040_vm2, %v2577_v33  ;;  %v2514_v38 = vpack.c.bf16 %v1417_v34, %v1417_v34  ;;  %v2578_v39 = vpack.c.bf16 %v1481_v35, %v1481_v35  ;;  %v2723_v40 = vpop.f32.mrb[20].mxu0  ;;  %v2787_v41 = vpop.f32.mrb[20].mxu1 }
 0x112   : > { %2060 = vst.msk [vmem:[%s3118_s4 + $0x4c] sm:$0xf] %vm2040_vm2, %v2516_v36  ;;  %2124 = vst.msk [vmem:[%s3118_s4 + $0x14c] sm:$0xf] %vm2040_vm2, %v2580_v37  ;;  %v978_v42 = vadd.f32 %v2723_v40, %v3105_v5  ;;  %v1234_v43 = vadd.f32 %v2787_v41, %v3105_v5  ;;  %v969_v44 = vpop.f32.mrb[21].mxu0  ;;  %v1225_v45 = vpop.f32.mrb[21].mxu1 }
 0x113   : > { %2058 = vst.msk [vmem:[%s3118_s4 + $0x44] sm:$0xf] %vm2040_vm2, %v2514_v38  ;;  %2122 = vst.msk [vmem:[%s3118_s4 + $0x144] sm:$0xf] %vm2040_vm2, %v2578_v39  ;;  %v970_v46 = vadd.f32 %v3105_v5, %v969_v44  ;;  %v1226_v47 = vadd.f32 %v3105_v5, %v1225_v45  ;;  %v2724_v48 = vpop.f32.mrb[22].mxu0  ;;  %v2788_v49 = vpop.f32.mrb[22].mxu1 }
 0x114   : > { %v1422_v50 = vmax.f32 %v978_v42, 0.0  ;;  %v1486_v51 = vmax.f32 %v1234_v43, 0.0  ;;  %v981_v52 = vadd.f32 %v2724_v48, %v3105_v5  ;;  %v1237_v53 = vadd.f32 %v2788_v49, %v3105_v5  ;;  %v972_v54 = vpop.f32.mrb[23].mxu0  ;;  %v1228_v55 = vpop.f32.mrb[23].mxu1 }
 0x115   : > { %v1420_v56 = vmax.f32 %v970_v46, 0.0  ;;  %v1484_v57 = vmax.f32 %v1226_v47, 0.0  ;;  %v973_v58 = vadd.f32 %v3105_v5, %v972_v54  ;;  %v1229_v59 = vadd.f32 %v3105_v5, %v1228_v55 }
 0x116   : > { %v2519_v60 = vpack.c.bf16 %v1422_v50, %v1422_v50  ;;  %v2583_v61 = vpack.c.bf16 %v1486_v51, %v1486_v51  ;;  %v1423_v62 = vmax.f32 %v981_v52, 0.0  ;;  %v1487_v63 = vmax.f32 %v1237_v53, 0.0 }
 0x117   : > { %v2517_v0 = vpack.c.bf16 %v1420_v56, %v1420_v56  ;;  %v2581_v1 = vpack.c.bf16 %v1484_v57, %v1484_v57  ;;  %v1421_v2 = vmax.f32 %v973_v58, 0.0  ;;  %v1485_v3 = vmax.f32 %v1229_v59, 0.0 }
 0x118   : > { %2063 = vst.msk [vmem:[%s3118_s4 + $0x58] sm:$0xf] %vm2040_vm2, %v2519_v60  ;;  %2127 = vst.msk [vmem:[%s3118_s4 + $0x158] sm:$0xf] %vm2040_vm2, %v2583_v61  ;;  %v2520_v4 = vpack.c.bf16 %v1423_v62, %v1423_v62  ;;  %v2584_v6 = vpack.c.bf16 %v1487_v63, %v1487_v63 }
 0x119   : > { %2061 = vst.msk [vmem:[%s3118_s4 + $0x50] sm:$0xf] %vm2040_vm2, %v2517_v0  ;;  %2125 = vst.msk [vmem:[%s3118_s4 + $0x150] sm:$0xf] %vm2040_vm2, %v2581_v1  ;;  %v2518_v7 = vpack.c.bf16 %v1421_v2, %v1421_v2  ;;  %v2582_v8 = vpack.c.bf16 %v1485_v3, %v1485_v3  ;;  %v2727_v9 = vpop.f32.mrb[24].mxu0  ;;  %v2791_v10 = vpop.f32.mrb[24].mxu1 }
 0x11a   : > { %2064 = vst.msk [vmem:[%s3118_s4 + $0x5c] sm:$0xf] %vm2040_vm2, %v2520_v4  ;;  %2128 = vst.msk [vmem:[%s3118_s4 + $0x15c] sm:$0xf] %vm2040_vm2, %v2584_v6  ;;  %v994_v11 = vadd.f32 %v2727_v9, %v3105_v5  ;;  %v1250_v12 = vadd.f32 %v2791_v10, %v3105_v5  ;;  %v985_v13 = vpop.f32.mrb[25].mxu0  ;;  %v1241_v14 = vpop.f32.mrb[25].mxu1 }
 0x11b   : > { %2062 = vst.msk [vmem:[%s3118_s4 + $0x54] sm:$0xf] %vm2040_vm2, %v2518_v7  ;;  %2126 = vst.msk [vmem:[%s3118_s4 + $0x154] sm:$0xf] %vm2040_vm2, %v2582_v8  ;;  %v986_v15 = vadd.f32 %v3105_v5, %v985_v13  ;;  %v1242_v16 = vadd.f32 %v3105_v5, %v1241_v14  ;;  %v2728_v17 = vpop.f32.mrb[26].mxu0  ;;  %v2792_v18 = vpop.f32.mrb[26].mxu1 }
 0x11c   : > { %v1426_v19 = vmax.f32 %v994_v11, 0.0  ;;  %v1490_v20 = vmax.f32 %v1250_v12, 0.0  ;;  %v997_v21 = vadd.f32 %v2728_v17, %v3105_v5  ;;  %v1253_v22 = vadd.f32 %v2792_v18, %v3105_v5  ;;  %v988_v23 = vpop.f32.mrb[27].mxu0  ;;  %v1244_v24 = vpop.f32.mrb[27].mxu1 }
 0x11d   : > { %v1424_v25 = vmax.f32 %v986_v15, 0.0  ;;  %v1488_v26 = vmax.f32 %v1242_v16, 0.0  ;;  %v989_v27 = vadd.f32 %v3105_v5, %v988_v23  ;;  %v1245_v28 = vadd.f32 %v3105_v5, %v1244_v24 }
 0x11e   : > { %v2523_v29 = vpack.c.bf16 %v1426_v19, %v1426_v19  ;;  %v2587_v30 = vpack.c.bf16 %v1490_v20, %v1490_v20  ;;  %v1427_v31 = vmax.f32 %v997_v21, 0.0  ;;  %v1491_v32 = vmax.f32 %v1253_v22, 0.0 }
 0x11f   : > { %v2521_v33 = vpack.c.bf16 %v1424_v25, %v1424_v25  ;;  %v2585_v34 = vpack.c.bf16 %v1488_v26, %v1488_v26  ;;  %v1425_v35 = vmax.f32 %v989_v27, 0.0  ;;  %v1489_v36 = vmax.f32 %v1245_v28, 0.0 }
 0x120   : > { %2067 = vst.msk [vmem:[%s3118_s4 + $0x68] sm:$0xf] %vm2040_vm2, %v2523_v29  ;;  %2131 = vst.msk [vmem:[%s3118_s4 + $0x168] sm:$0xf] %vm2040_vm2, %v2587_v30  ;;  %v2524_v37 = vpack.c.bf16 %v1427_v31, %v1427_v31  ;;  %v2588_v38 = vpack.c.bf16 %v1491_v32, %v1491_v32 }
 0x121   : > { %2065 = vst.msk [vmem:[%s3118_s4 + $0x60] sm:$0xf] %vm2040_vm2, %v2521_v33  ;;  %2129 = vst.msk [vmem:[%s3118_s4 + $0x160] sm:$0xf] %vm2040_vm2, %v2585_v34  ;;  %v2522_v39 = vpack.c.bf16 %v1425_v35, %v1425_v35  ;;  %v2586_v40 = vpack.c.bf16 %v1489_v36, %v1489_v36  ;;  %v2731_v41 = vpop.f32.mrb[28].mxu0  ;;  %v2795_v42 = vpop.f32.mrb[28].mxu1 }
 0x122   : > { %2068 = vst.msk [vmem:[%s3118_s4 + $0x6c] sm:$0xf] %vm2040_vm2, %v2524_v37  ;;  %2132 = vst.msk [vmem:[%s3118_s4 + $0x16c] sm:$0xf] %vm2040_vm2, %v2588_v38  ;;  %v1010_v43 = vadd.f32 %v2731_v41, %v3105_v5  ;;  %v1266_v44 = vadd.f32 %v2795_v42, %v3105_v5  ;;  %v1001_v45 = vpop.f32.mrb[29].mxu0  ;;  %v1257_v46 = vpop.f32.mrb[29].mxu1 }
 0x123   : > { %2066 = vst.msk [vmem:[%s3118_s4 + $0x64] sm:$0xf] %vm2040_vm2, %v2522_v39  ;;  %2130 = vst.msk [vmem:[%s3118_s4 + $0x164] sm:$0xf] %vm2040_vm2, %v2586_v40  ;;  %v1002_v47 = vadd.f32 %v3105_v5, %v1001_v45  ;;  %v1258_v48 = vadd.f32 %v3105_v5, %v1257_v46  ;;  %v2732_v49 = vpop.f32.mrb[30].mxu0  ;;  %v2796_v50 = vpop.f32.mrb[30].mxu1 }
 0x124   : > { %v1430_v51 = vmax.f32 %v1010_v43, 0.0  ;;  %v1494_v52 = vmax.f32 %v1266_v44, 0.0  ;;  %v1013_v53 = vadd.f32 %v2732_v49, %v3105_v5  ;;  %v1269_v54 = vadd.f32 %v2796_v50, %v3105_v5  ;;  %v1004_v55 = vpop.f32.mrb[31].mxu0  ;;  %v1260_v56 = vpop.f32.mrb[31].mxu1 }
 0x125   : > { %v1428_v57 = vmax.f32 %v1002_v47, 0.0  ;;  %v1492_v58 = vmax.f32 %v1258_v48, 0.0  ;;  %v1005_v59 = vadd.f32 %v3105_v5, %v1004_v55  ;;  %v1261_v60 = vadd.f32 %v3105_v5, %v1260_v56 }
 0x126   : > { %v2527_v61 = vpack.c.bf16 %v1430_v51, %v1430_v51  ;;  %v2591_v62 = vpack.c.bf16 %v1494_v52, %v1494_v52  ;;  %v1431_v63 = vmax.f32 %v1013_v53, 0.0  ;;  %v1495_v0 = vmax.f32 %v1269_v54, 0.0 }
 0x127   : > { %v2525_v1 = vpack.c.bf16 %v1428_v57, %v1428_v57  ;;  %v2589_v2 = vpack.c.bf16 %v1492_v58, %v1492_v58  ;;  %v1429_v3 = vmax.f32 %v1005_v59, 0.0  ;;  %v1493_v4 = vmax.f32 %v1261_v60, 0.0 }
 0x128   : > { %2071 = vst.msk [vmem:[%s3118_s4 + $0x78] sm:$0xf] %vm2040_vm2, %v2527_v61  ;;  %2135 = vst.msk [vmem:[%s3118_s4 + $0x178] sm:$0xf] %vm2040_vm2, %v2591_v62  ;;  %v2528_v6 = vpack.c.bf16 %v1431_v63, %v1431_v63  ;;  %v2592_v7 = vpack.c.bf16 %v1495_v0, %v1495_v0 }
 0x129   : > { %2069 = vst.msk [vmem:[%s3118_s4 + $0x70] sm:$0xf] %vm2040_vm2, %v2525_v1  ;;  %2133 = vst.msk [vmem:[%s3118_s4 + $0x170] sm:$0xf] %vm2040_vm2, %v2589_v2  ;;  %v2526_v8 = vpack.c.bf16 %v1429_v3, %v1429_v3  ;;  %v2590_v9 = vpack.c.bf16 %v1493_v4, %v1493_v4  ;;  %v2735_v10 = vpop.f32.mrb[32].mxu0  ;;  %v2799_v11 = vpop.f32.mrb[32].mxu1 }
 0x12a   : > { %2072 = vst.msk [vmem:[%s3118_s4 + $0x7c] sm:$0xf] %vm2040_vm2, %v2528_v6  ;;  %2136 = vst.msk [vmem:[%s3118_s4 + $0x17c] sm:$0xf] %vm2040_vm2, %v2592_v7  ;;  %v1026_v12 = vadd.f32 %v2735_v10, %v3105_v5  ;;  %v1282_v13 = vadd.f32 %v2799_v11, %v3105_v5  ;;  %v1017_v14 = vpop.f32.mrb[33].mxu0  ;;  %v1273_v15 = vpop.f32.mrb[33].mxu1 }
 0x12b   : > { %2070 = vst.msk [vmem:[%s3118_s4 + $0x74] sm:$0xf] %vm2040_vm2, %v2526_v8  ;;  %2134 = vst.msk [vmem:[%s3118_s4 + $0x174] sm:$0xf] %vm2040_vm2, %v2590_v9  ;;  %v1018_v16 = vadd.f32 %v3105_v5, %v1017_v14  ;;  %v1274_v17 = vadd.f32 %v3105_v5, %v1273_v15  ;;  %v2736_v18 = vpop.f32.mrb[34].mxu0  ;;  %v2800_v19 = vpop.f32.mrb[34].mxu1 }
 0x12c   : > { %v1434_v20 = vmax.f32 %v1026_v12, 0.0  ;;  %v1498_v21 = vmax.f32 %v1282_v13, 0.0  ;;  %v1029_v22 = vadd.f32 %v2736_v18, %v3105_v5  ;;  %v1285_v23 = vadd.f32 %v2800_v19, %v3105_v5  ;;  %v1020_v24 = vpop.f32.mrb[35].mxu0  ;;  %v1276_v25 = vpop.f32.mrb[35].mxu1 }
 0x12d   : > { %v1432_v26 = vmax.f32 %v1018_v16, 0.0  ;;  %v1496_v27 = vmax.f32 %v1274_v17, 0.0  ;;  %v1021_v28 = vadd.f32 %v3105_v5, %v1020_v24  ;;  %v1277_v29 = vadd.f32 %v3105_v5, %v1276_v25 }
 0x12e   : > { %v2531_v30 = vpack.c.bf16 %v1434_v20, %v1434_v20  ;;  %v2595_v31 = vpack.c.bf16 %v1498_v21, %v1498_v21  ;;  %v1435_v32 = vmax.f32 %v1029_v22, 0.0  ;;  %v1499_v33 = vmax.f32 %v1285_v23, 0.0 }
 0x12f   : > { %v2529_v34 = vpack.c.bf16 %v1432_v26, %v1432_v26  ;;  %v2593_v35 = vpack.c.bf16 %v1496_v27, %v1496_v27  ;;  %v1433_v36 = vmax.f32 %v1021_v28, 0.0  ;;  %v1497_v37 = vmax.f32 %v1277_v29, 0.0 }
 0x130   : > { %2075 = vst.msk [vmem:[%s3118_s4 + $0x88] sm:$0xf] %vm2040_vm2, %v2531_v30  ;;  %2139 = vst.msk [vmem:[%s3118_s4 + $0x188] sm:$0xf] %vm2040_vm2, %v2595_v31  ;;  %v2532_v38 = vpack.c.bf16 %v1435_v32, %v1435_v32  ;;  %v2596_v39 = vpack.c.bf16 %v1499_v33, %v1499_v33 }
 0x131   : > { %2073 = vst.msk [vmem:[%s3118_s4 + $0x80] sm:$0xf] %vm2040_vm2, %v2529_v34  ;;  %2137 = vst.msk [vmem:[%s3118_s4 + $0x180] sm:$0xf] %vm2040_vm2, %v2593_v35  ;;  %v2530_v40 = vpack.c.bf16 %v1433_v36, %v1433_v36  ;;  %v2594_v41 = vpack.c.bf16 %v1497_v37, %v1497_v37  ;;  %v2739_v42 = vpop.f32.mrb[36].mxu0  ;;  %v2803_v43 = vpop.f32.mrb[36].mxu1 }
 0x132   : > { %2076 = vst.msk [vmem:[%s3118_s4 + $0x8c] sm:$0xf] %vm2040_vm2, %v2532_v38  ;;  %2140 = vst.msk [vmem:[%s3118_s4 + $0x18c] sm:$0xf] %vm2040_vm2, %v2596_v39  ;;  %v1042_v44 = vadd.f32 %v2739_v42, %v3105_v5  ;;  %v1298_v45 = vadd.f32 %v2803_v43, %v3105_v5  ;;  %v1033_v46 = vpop.f32.mrb[37].mxu0  ;;  %v1289_v47 = vpop.f32.mrb[37].mxu1 }
 0x133   : > { %2074 = vst.msk [vmem:[%s3118_s4 + $0x84] sm:$0xf] %vm2040_vm2, %v2530_v40  ;;  %2138 = vst.msk [vmem:[%s3118_s4 + $0x184] sm:$0xf] %vm2040_vm2, %v2594_v41  ;;  %v1034_v48 = vadd.f32 %v3105_v5, %v1033_v46  ;;  %v1290_v49 = vadd.f32 %v3105_v5, %v1289_v47  ;;  %v2740_v50 = vpop.f32.mrb[38].mxu0  ;;  %v2804_v51 = vpop.f32.mrb[38].mxu1 }
 0x134   : > { %v1438_v52 = vmax.f32 %v1042_v44, 0.0  ;;  %v1502_v53 = vmax.f32 %v1298_v45, 0.0  ;;  %v1045_v54 = vadd.f32 %v2740_v50, %v3105_v5  ;;  %v1301_v55 = vadd.f32 %v2804_v51, %v3105_v5  ;;  %v1036_v56 = vpop.f32.mrb[39].mxu0  ;;  %v1292_v57 = vpop.f32.mrb[39].mxu1 }
 0x135   : > { %v1436_v58 = vmax.f32 %v1034_v48, 0.0  ;;  %v1500_v59 = vmax.f32 %v1290_v49, 0.0  ;;  %v1037_v60 = vadd.f32 %v3105_v5, %v1036_v56  ;;  %v1293_v61 = vadd.f32 %v3105_v5, %v1292_v57 }
 0x136   : > { %v2535_v62 = vpack.c.bf16 %v1438_v52, %v1438_v52  ;;  %v2599_v63 = vpack.c.bf16 %v1502_v53, %v1502_v53  ;;  %v1439_v0 = vmax.f32 %v1045_v54, 0.0  ;;  %v1503_v1 = vmax.f32 %v1301_v55, 0.0 }
 0x137   : > { %v2533_v2 = vpack.c.bf16 %v1436_v58, %v1436_v58  ;;  %v2597_v3 = vpack.c.bf16 %v1500_v59, %v1500_v59  ;;  %v1437_v4 = vmax.f32 %v1037_v60, 0.0  ;;  %v1501_v6 = vmax.f32 %v1293_v61, 0.0 }
 0x138   : > { %2079 = vst.msk [vmem:[%s3118_s4 + $0x98] sm:$0xf] %vm2040_vm2, %v2535_v62  ;;  %2143 = vst.msk [vmem:[%s3118_s4 + $0x198] sm:$0xf] %vm2040_vm2, %v2599_v63  ;;  %v2536_v7 = vpack.c.bf16 %v1439_v0, %v1439_v0  ;;  %v2600_v8 = vpack.c.bf16 %v1503_v1, %v1503_v1 }
 0x139   : > { %2077 = vst.msk [vmem:[%s3118_s4 + $0x90] sm:$0xf] %vm2040_vm2, %v2533_v2  ;;  %2141 = vst.msk [vmem:[%s3118_s4 + $0x190] sm:$0xf] %vm2040_vm2, %v2597_v3  ;;  %v2534_v9 = vpack.c.bf16 %v1437_v4, %v1437_v4  ;;  %v2598_v10 = vpack.c.bf16 %v1501_v6, %v1501_v6  ;;  %v2743_v11 = vpop.f32.mrb[40].mxu0  ;;  %v2807_v12 = vpop.f32.mrb[40].mxu1 }
 0x13a   : > { %2080 = vst.msk [vmem:[%s3118_s4 + $0x9c] sm:$0xf] %vm2040_vm2, %v2536_v7  ;;  %2144 = vst.msk [vmem:[%s3118_s4 + $0x19c] sm:$0xf] %vm2040_vm2, %v2600_v8  ;;  %v1058_v13 = vadd.f32 %v2743_v11, %v3105_v5  ;;  %v1314_v14 = vadd.f32 %v2807_v12, %v3105_v5  ;;  %v1049_v15 = vpop.f32.mrb[41].mxu0  ;;  %v1305_v16 = vpop.f32.mrb[41].mxu1 }
 0x13b   : > { %2078 = vst.msk [vmem:[%s3118_s4 + $0x94] sm:$0xf] %vm2040_vm2, %v2534_v9  ;;  %2142 = vst.msk [vmem:[%s3118_s4 + $0x194] sm:$0xf] %vm2040_vm2, %v2598_v10  ;;  %v1050_v17 = vadd.f32 %v3105_v5, %v1049_v15  ;;  %v1306_v18 = vadd.f32 %v3105_v5, %v1305_v16  ;;  %v2744_v19 = vpop.f32.mrb[42].mxu0  ;;  %v2808_v20 = vpop.f32.mrb[42].mxu1 }
 0x13c   : > { %v1442_v21 = vmax.f32 %v1058_v13, 0.0  ;;  %v1506_v22 = vmax.f32 %v1314_v14, 0.0  ;;  %v1061_v23 = vadd.f32 %v2744_v19, %v3105_v5  ;;  %v1317_v24 = vadd.f32 %v2808_v20, %v3105_v5  ;;  %v1052_v25 = vpop.f32.mrb[43].mxu0  ;;  %v1308_v26 = vpop.f32.mrb[43].mxu1 }
 0x13d   : > { %v1440_v27 = vmax.f32 %v1050_v17, 0.0  ;;  %v1504_v28 = vmax.f32 %v1306_v18, 0.0  ;;  %v1053_v29 = vadd.f32 %v3105_v5, %v1052_v25  ;;  %v1309_v30 = vadd.f32 %v3105_v5, %v1308_v26 }
 0x13e   : > { %v2539_v31 = vpack.c.bf16 %v1442_v21, %v1442_v21  ;;  %v2603_v32 = vpack.c.bf16 %v1506_v22, %v1506_v22  ;;  %v1443_v33 = vmax.f32 %v1061_v23, 0.0  ;;  %v1507_v34 = vmax.f32 %v1317_v24, 0.0 }
 0x13f   : > { %v2537_v35 = vpack.c.bf16 %v1440_v27, %v1440_v27  ;;  %v2601_v36 = vpack.c.bf16 %v1504_v28, %v1504_v28  ;;  %v1441_v37 = vmax.f32 %v1053_v29, 0.0  ;;  %v1505_v38 = vmax.f32 %v1309_v30, 0.0 }
 0x140   : > { %2083 = vst.msk [vmem:[%s3118_s4 + $0xa8] sm:$0xf] %vm2040_vm2, %v2539_v31  ;;  %2147 = vst.msk [vmem:[%s3118_s4 + $0x1a8] sm:$0xf] %vm2040_vm2, %v2603_v32  ;;  %v2540_v39 = vpack.c.bf16 %v1443_v33, %v1443_v33  ;;  %v2604_v40 = vpack.c.bf16 %v1507_v34, %v1507_v34 }
 0x141   : > { %2081 = vst.msk [vmem:[%s3118_s4 + $0xa0] sm:$0xf] %vm2040_vm2, %v2537_v35  ;;  %2145 = vst.msk [vmem:[%s3118_s4 + $0x1a0] sm:$0xf] %vm2040_vm2, %v2601_v36  ;;  %v2538_v41 = vpack.c.bf16 %v1441_v37, %v1441_v37  ;;  %v2602_v42 = vpack.c.bf16 %v1505_v38, %v1505_v38  ;;  %v2747_v43 = vpop.f32.mrb[44].mxu0  ;;  %v2811_v44 = vpop.f32.mrb[44].mxu1 }
 0x142   : > { %2084 = vst.msk [vmem:[%s3118_s4 + $0xac] sm:$0xf] %vm2040_vm2, %v2540_v39  ;;  %2148 = vst.msk [vmem:[%s3118_s4 + $0x1ac] sm:$0xf] %vm2040_vm2, %v2604_v40  ;;  %v1074_v45 = vadd.f32 %v2747_v43, %v3105_v5  ;;  %v1330_v46 = vadd.f32 %v2811_v44, %v3105_v5  ;;  %v1065_v47 = vpop.f32.mrb[45].mxu0  ;;  %v1321_v48 = vpop.f32.mrb[45].mxu1 }
 0x143   : > { %2082 = vst.msk [vmem:[%s3118_s4 + $0xa4] sm:$0xf] %vm2040_vm2, %v2538_v41  ;;  %2146 = vst.msk [vmem:[%s3118_s4 + $0x1a4] sm:$0xf] %vm2040_vm2, %v2602_v42  ;;  %v1066_v49 = vadd.f32 %v3105_v5, %v1065_v47  ;;  %v1322_v50 = vadd.f32 %v3105_v5, %v1321_v48  ;;  %v2748_v51 = vpop.f32.mrb[46].mxu0  ;;  %v2812_v52 = vpop.f32.mrb[46].mxu1 }
 0x144   : > { %v1446_v53 = vmax.f32 %v1074_v45, 0.0  ;;  %v1510_v54 = vmax.f32 %v1330_v46, 0.0  ;;  %v1077_v55 = vadd.f32 %v2748_v51, %v3105_v5  ;;  %v1333_v56 = vadd.f32 %v2812_v52, %v3105_v5  ;;  %v1068_v57 = vpop.f32.mrb[47].mxu0  ;;  %v1324_v58 = vpop.f32.mrb[47].mxu1  ;;  %v3425_v45 = vld [vmem:[%s3508_s2] ss:$0 sm:$0xff] }
 0x145   : > { %v1444_v59 = vmax.f32 %v1066_v49, 0.0  ;;  %v1508_v60 = vmax.f32 %v1322_v50, 0.0  ;;  %v1069_v61 = vadd.f32 %v3105_v5, %v1068_v57  ;;  %v1325_v62 = vadd.f32 %v3105_v5, %v1324_v58 }
 0x146   : > { %v2543_v63 = vpack.c.bf16 %v1446_v53, %v1446_v53  ;;  %v2607_v0 = vpack.c.bf16 %v1510_v54, %v1510_v54  ;;  %v1447_v1 = vmax.f32 %v1077_v55, 0.0  ;;  %v1511_v2 = vmax.f32 %v1333_v56, 0.0 }
 0x147   : > { %v2541_v3 = vpack.c.bf16 %v1444_v59, %v1444_v59  ;;  %v2605_v4 = vpack.c.bf16 %v1508_v60, %v1508_v60  ;;  %v1445_v6 = vmax.f32 %v1069_v61, 0.0  ;;  %v1509_v7 = vmax.f32 %v1325_v62, 0.0 }
 0x148   : > { %2087 = vst.msk [vmem:[%s3118_s4 + $0xb8] sm:$0xf] %vm2040_vm2, %v2543_v63  ;;  %2151 = vst.msk [vmem:[%s3118_s4 + $0x1b8] sm:$0xf] %vm2040_vm2, %v2607_v0  ;;  %v2544_v8 = vpack.c.bf16 %v1447_v1, %v1447_v1  ;;  %v2608_v9 = vpack.c.bf16 %v1511_v2, %v1511_v2 }
 0x149   : > { %2085 = vst.msk [vmem:[%s3118_s4 + $0xb0] sm:$0xf] %vm2040_vm2, %v2541_v3  ;;  %2149 = vst.msk [vmem:[%s3118_s4 + $0x1b0] sm:$0xf] %vm2040_vm2, %v2605_v4  ;;  %v2542_v10 = vpack.c.bf16 %v1445_v6, %v1445_v6  ;;  %v2606_v11 = vpack.c.bf16 %v1509_v7, %v1509_v7  ;;  %v2751_v12 = vpop.f32.mrb[48].mxu0  ;;  %v2815_v13 = vpop.f32.mrb[48].mxu1 }
 0x14a   : > { %2088 = vst.msk [vmem:[%s3118_s4 + $0xbc] sm:$0xf] %vm2040_vm2, %v2544_v8  ;;  %2152 = vst.msk [vmem:[%s3118_s4 + $0x1bc] sm:$0xf] %vm2040_vm2, %v2608_v9  ;;  %v1090_v14 = vadd.f32 %v2751_v12, %v3105_v5  ;;  %v1346_v15 = vadd.f32 %v2815_v13, %v3105_v5  ;;  %v1081_v16 = vpop.f32.mrb[49].mxu0  ;;  %v1337_v17 = vpop.f32.mrb[49].mxu1 }
 0x14b   : > { %2086 = vst.msk [vmem:[%s3118_s4 + $0xb4] sm:$0xf] %vm2040_vm2, %v2542_v10  ;;  %2150 = vst.msk [vmem:[%s3118_s4 + $0x1b4] sm:$0xf] %vm2040_vm2, %v2606_v11  ;;  %v1082_v18 = vadd.f32 %v3105_v5, %v1081_v16  ;;  %v1338_v19 = vadd.f32 %v3105_v5, %v1337_v17  ;;  %v2752_v20 = vpop.f32.mrb[50].mxu0  ;;  %v2816_v21 = vpop.f32.mrb[50].mxu1 }
 0x14c   : > { %v1450_v22 = vmax.f32 %v1090_v14, 0.0  ;;  %v1514_v23 = vmax.f32 %v1346_v15, 0.0  ;;  %v1093_v24 = vadd.f32 %v2752_v20, %v3105_v5  ;;  %v1349_v25 = vadd.f32 %v2816_v21, %v3105_v5  ;;  %v1084_v26 = vpop.f32.mrb[51].mxu0  ;;  %v1340_v27 = vpop.f32.mrb[51].mxu1 }
 0x14d   : > { %v1448_v28 = vmax.f32 %v1082_v18, 0.0  ;;  %v1512_v29 = vmax.f32 %v1338_v19, 0.0  ;;  %v1085_v30 = vadd.f32 %v3105_v5, %v1084_v26  ;;  %v1341_v31 = vadd.f32 %v3105_v5, %v1340_v27 }
 0x14e   : > { %v2547_v32 = vpack.c.bf16 %v1450_v22, %v1450_v22  ;;  %v2611_v33 = vpack.c.bf16 %v1514_v23, %v1514_v23  ;;  %v1451_v34 = vmax.f32 %v1093_v24, 0.0  ;;  %v1515_v35 = vmax.f32 %v1349_v25, 0.0 }
 0x14f   : > { %v2545_v36 = vpack.c.bf16 %v1448_v28, %v1448_v28  ;;  %v2609_v37 = vpack.c.bf16 %v1512_v29, %v1512_v29  ;;  %v1449_v38 = vmax.f32 %v1085_v30, 0.0  ;;  %v1513_v39 = vmax.f32 %v1341_v31, 0.0 }
 0x150   : > { %2091 = vst.msk [vmem:[%s3118_s4 + $0xc8] sm:$0xf] %vm2040_vm2, %v2547_v32  ;;  %2155 = vst.msk [vmem:[%s3118_s4 + $0x1c8] sm:$0xf] %vm2040_vm2, %v2611_v33  ;;  %v2548_v40 = vpack.c.bf16 %v1451_v34, %v1451_v34  ;;  %v2612_v41 = vpack.c.bf16 %v1515_v35, %v1515_v35 }
 0x151   : > { %2089 = vst.msk [vmem:[%s3118_s4 + $0xc0] sm:$0xf] %vm2040_vm2, %v2545_v36  ;;  %2153 = vst.msk [vmem:[%s3118_s4 + $0x1c0] sm:$0xf] %vm2040_vm2, %v2609_v37  ;;  %v2546_v5 = vpack.c.bf16 %v1449_v38, %v1449_v38  ;;  %v2610_v42 = vpack.c.bf16 %v1513_v39, %v1513_v39  ;;  %v2755_v43 = vpop.f32.mrb[52].mxu0  ;;  %v2819_v44 = vpop.f32.mrb[52].mxu1 }
 0x152   : > { %2092 = vst.msk [vmem:[%s3118_s4 + $0xcc] sm:$0xf] %vm2040_vm2, %v2548_v40  ;;  %2156 = vst.msk [vmem:[%s3118_s4 + $0x1cc] sm:$0xf] %vm2040_vm2, %v2612_v41  ;;  %v1106_v46 = vadd.f32 %v3425_v45, %v2755_v43  ;;  %v1362_v47 = vadd.f32 %v3425_v45, %v2819_v44  ;;  %v1097_v48 = vpop.f32.mrb[53].mxu0  ;;  %v1353_v49 = vpop.f32.mrb[53].mxu1 }
 0x153   : > { %2090 = vst.msk [vmem:[%s3118_s4 + $0xc4] sm:$0xf] %vm2040_vm2, %v2546_v5  ;;  %2154 = vst.msk [vmem:[%s3118_s4 + $0x1c4] sm:$0xf] %vm2040_vm2, %v2610_v42  ;;  %v1098_v50 = vadd.f32 %v3425_v45, %v1097_v48  ;;  %v1354_v51 = vadd.f32 %v3425_v45, %v1353_v49  ;;  %v2756_v52 = vpop.f32.mrb[54].mxu0  ;;  %v2820_v53 = vpop.f32.mrb[54].mxu1 }
 0x154   : > { %v1454_v54 = vmax.f32 %v1106_v46, 0.0  ;;  %v1518_v55 = vmax.f32 %v1362_v47, 0.0  ;;  %v1109_v56 = vadd.f32 %v3425_v45, %v2756_v52  ;;  %v1365_v57 = vadd.f32 %v3425_v45, %v2820_v53  ;;  %v1100_v58 = vpop.f32.mrb[55].mxu0  ;;  %v1356_v59 = vpop.f32.mrb[55].mxu1 }
 0x155   : > { %v1452_v60 = vmax.f32 %v1098_v50, 0.0  ;;  %v1516_v61 = vmax.f32 %v1354_v51, 0.0  ;;  %v1101_v62 = vadd.f32 %v3425_v45, %v1100_v58  ;;  %v1357_v63 = vadd.f32 %v3425_v45, %v1356_v59 }
 0x156   : > { %v2551_v0 = vpack.c.bf16 %v1454_v54, %v1454_v54  ;;  %v2615_v1 = vpack.c.bf16 %v1518_v55, %v1518_v55  ;;  %v1455_v2 = vmax.f32 %v1109_v56, 0.0  ;;  %v1519_v3 = vmax.f32 %v1365_v57, 0.0 }
 0x157   : > { %v2549_v4 = vpack.c.bf16 %v1452_v60, %v1452_v60  ;;  %v2613_v6 = vpack.c.bf16 %v1516_v61, %v1516_v61  ;;  %v1453_v7 = vmax.f32 %v1101_v62, 0.0  ;;  %v1517_v8 = vmax.f32 %v1357_v63, 0.0 }
 0x158   : > { %2095 = vst.msk [vmem:[%s3118_s4 + $0xd8] sm:$0xf] %vm2040_vm2, %v2551_v0  ;;  %2159 = vst.msk [vmem:[%s3118_s4 + $0x1d8] sm:$0xf] %vm2040_vm2, %v2615_v1  ;;  %v2552_v9 = vpack.c.bf16 %v1455_v2, %v1455_v2  ;;  %v2616_v10 = vpack.c.bf16 %v1519_v3, %v1519_v3 }
 0x159   : > { %2093 = vst.msk [vmem:[%s3118_s4 + $0xd0] sm:$0xf] %vm2040_vm2, %v2549_v4  ;;  %2157 = vst.msk [vmem:[%s3118_s4 + $0x1d0] sm:$0xf] %vm2040_vm2, %v2613_v6  ;;  %v2550_v11 = vpack.c.bf16 %v1453_v7, %v1453_v7  ;;  %v2614_v12 = vpack.c.bf16 %v1517_v8, %v1517_v8  ;;  %v2759_v13 = vpop.f32.mrb[56].mxu0  ;;  %v2823_v14 = vpop.f32.mrb[56].mxu1 }
 0x15a   : > { %2096 = vst.msk [vmem:[%s3118_s4 + $0xdc] sm:$0xf] %vm2040_vm2, %v2552_v9  ;;  %2160 = vst.msk [vmem:[%s3118_s4 + $0x1dc] sm:$0xf] %vm2040_vm2, %v2616_v10  ;;  %v1122_v15 = vadd.f32 %v3425_v45, %v2759_v13  ;;  %v1378_v16 = vadd.f32 %v3425_v45, %v2823_v14  ;;  %v1113_v17 = vpop.f32.mrb[57].mxu0  ;;  %v1369_v18 = vpop.f32.mrb[57].mxu1 }
 0x15b   : > { %2094 = vst.msk [vmem:[%s3118_s4 + $0xd4] sm:$0xf] %vm2040_vm2, %v2550_v11  ;;  %2158 = vst.msk [vmem:[%s3118_s4 + $0x1d4] sm:$0xf] %vm2040_vm2, %v2614_v12  ;;  %v1114_v19 = vadd.f32 %v3425_v45, %v1113_v17  ;;  %v1370_v20 = vadd.f32 %v3425_v45, %v1369_v18  ;;  %v2760_v21 = vpop.f32.mrb[58].mxu0  ;;  %v2824_v22 = vpop.f32.mrb[58].mxu1 }
 0x15c   : > { %v1458_v23 = vmax.f32 %v1122_v15, 0.0  ;;  %v1522_v24 = vmax.f32 %v1378_v16, 0.0  ;;  %v1125_v25 = vadd.f32 %v3425_v45, %v2760_v21  ;;  %v1381_v26 = vadd.f32 %v3425_v45, %v2824_v22  ;;  %v1116_v27 = vpop.f32.mrb[59].mxu0  ;;  %v1372_v28 = vpop.f32.mrb[59].mxu1 }
 0x15d   : > { %v1456_v29 = vmax.f32 %v1114_v19, 0.0  ;;  %v1520_v30 = vmax.f32 %v1370_v20, 0.0  ;;  %v1117_v31 = vadd.f32 %v3425_v45, %v1116_v27  ;;  %v1373_v32 = vadd.f32 %v3425_v45, %v1372_v28 }
 0x15e   : > { %v2555_v33 = vpack.c.bf16 %v1458_v23, %v1458_v23  ;;  %v2619_v34 = vpack.c.bf16 %v1522_v24, %v1522_v24  ;;  %v1459_v35 = vmax.f32 %v1125_v25, 0.0  ;;  %v1523_v36 = vmax.f32 %v1381_v26, 0.0 }
 0x15f   : > { %v2553_v37 = vpack.c.bf16 %v1456_v29, %v1456_v29  ;;  %v2617_v38 = vpack.c.bf16 %v1520_v30, %v1520_v30  ;;  %v1457_v39 = vmax.f32 %v1117_v31, 0.0  ;;  %v1521_v40 = vmax.f32 %v1373_v32, 0.0 }
 0x160   : > { %2099 = vst.msk [vmem:[%s3118_s4 + $0xe8] sm:$0xf] %vm2040_vm2, %v2555_v33  ;;  %2163 = vst.msk [vmem:[%s3118_s4 + $0x1e8] sm:$0xf] %vm2040_vm2, %v2619_v34  ;;  %v2556_v41 = vpack.c.bf16 %v1459_v35, %v1459_v35  ;;  %v2620_v5 = vpack.c.bf16 %v1523_v36, %v1523_v36 }
 0x161   : > { %2097 = vst.msk [vmem:[%s3118_s4 + $0xe0] sm:$0xf] %vm2040_vm2, %v2553_v37  ;;  %2161 = vst.msk [vmem:[%s3118_s4 + $0x1e0] sm:$0xf] %vm2040_vm2, %v2617_v38  ;;  %v2554_v42 = vpack.c.bf16 %v1457_v39, %v1457_v39  ;;  %v2618_v43 = vpack.c.bf16 %v1521_v40, %v1521_v40  ;;  %v2763_v44 = vpop.f32.mrb[60].mxu0  ;;  %v2827_v46 = vpop.f32.mrb[60].mxu1 }
 0x162   : > { %2100 = vst.msk [vmem:[%s3118_s4 + $0xec] sm:$0xf] %vm2040_vm2, %v2556_v41  ;;  %2164 = vst.msk [vmem:[%s3118_s4 + $0x1ec] sm:$0xf] %vm2040_vm2, %v2620_v5  ;;  %v1138_v47 = vadd.f32 %v3425_v45, %v2763_v44  ;;  %v1394_v48 = vadd.f32 %v3425_v45, %v2827_v46  ;;  %v1129_v49 = vpop.f32.mrb[61].mxu0  ;;  %v1385_v50 = vpop.f32.mrb[61].mxu1 }
 0x163   : > { %2098 = vst.msk [vmem:[%s3118_s4 + $0xe4] sm:$0xf] %vm2040_vm2, %v2554_v42  ;;  %2162 = vst.msk [vmem:[%s3118_s4 + $0x1e4] sm:$0xf] %vm2040_vm2, %v2618_v43  ;;  %v1130_v51 = vadd.f32 %v3425_v45, %v1129_v49  ;;  %v1386_v52 = vadd.f32 %v3425_v45, %v1385_v50  ;;  %v2764_v53 = vpop.f32.mrb[62].mxu0  ;;  %v2828_v54 = vpop.f32.mrb[62].mxu1 }
 0x164   : > { %v1462_v55 = vmax.f32 %v1138_v47, 0.0  ;;  %v1526_v56 = vmax.f32 %v1394_v48, 0.0  ;;  %v1141_v57 = vadd.f32 %v3425_v45, %v2764_v53  ;;  %v1397_v58 = vadd.f32 %v3425_v45, %v2828_v54  ;;  %v1132_v59 = vpop.f32.mrb[63].mxu0  ;;  %v1388_v60 = vpop.f32.mrb[63].mxu1 }
 0x165   : > { %v1460_v61 = vmax.f32 %v1130_v51, 0.0  ;;  %v1524_v62 = vmax.f32 %v1386_v52, 0.0  ;;  %v1133_v63 = vadd.f32 %v3425_v45, %v1132_v59  ;;  %v1389_v0 = vadd.f32 %v3425_v45, %v1388_v60 }
 0x166   : > { %v2559_v1 = vpack.c.bf16 %v1462_v55, %v1462_v55  ;;  %v2623_v2 = vpack.c.bf16 %v1526_v56, %v1526_v56  ;;  %v1463_v3 = vmax.f32 %v1141_v57, 0.0  ;;  %v1527_v4 = vmax.f32 %v1397_v58, 0.0 }
 0x167   : > { %v2557_v6 = vpack.c.bf16 %v1460_v61, %v1460_v61  ;;  %v2621_v7 = vpack.c.bf16 %v1524_v62, %v1524_v62  ;;  %v1461_v8 = vmax.f32 %v1133_v63, 0.0  ;;  %v1525_v9 = vmax.f32 %v1389_v0, 0.0 }
 0x168   : > { %2103 = vst.msk [vmem:[%s3118_s4 + $0xf8] sm:$0xf] %vm2040_vm2, %v2559_v1  ;;  %2167 = vst.msk [vmem:[%s3118_s4 + $0x1f8] sm:$0xf] %vm2040_vm2, %v2623_v2  ;;  %v2560_v10 = vpack.c.bf16 %v1463_v3, %v1463_v3  ;;  %v2624_v11 = vpack.c.bf16 %v1527_v4, %v1527_v4 }
 0x169   : > { %2101 = vst.msk [vmem:[%s3118_s4 + $0xf0] sm:$0xf] %vm2040_vm2, %v2557_v6  ;;  %2165 = vst.msk [vmem:[%s3118_s4 + $0x1f0] sm:$0xf] %vm2040_vm2, %v2621_v7  ;;  %v2558_v45 = vpack.c.bf16 %v1461_v8, %v1461_v8  ;;  %v2622_v12 = vpack.c.bf16 %v1525_v9, %v1525_v9 }
 0x16a   : > { %2104 = vst.msk [vmem:[%s3118_s4 + $0xfc] sm:$0xf] %vm2040_vm2, %v2560_v10  ;;  %2168 = vst.msk [vmem:[%s3118_s4 + $0x1fc] sm:$0xf] %vm2040_vm2, %v2624_v11 }
 0x16b   : > { %2102 = vst.msk [vmem:[%s3118_s4 + $0xf4] sm:$0xf] %vm2040_vm2, %v2558_v45  ;;  %2166 = vst.msk [vmem:[%s3118_s4 + $0x1f4] sm:$0xf] %vm2040_vm2, %v2622_v12 }
 0x16c PF: > { %s13_s12 = sadd.s32 1, %s2922_s12  }
 0x16d   : > { %p10_p4 = scmp.ge.s32.totalorder %s13_s12, 4  }
 0x16f   :  { %12 = sbr.rel (!%p10_p4) target bundleno = 1 (0x1), region = 62 }

// kernel: disnet_forward.8
= control target key start
LH: loop header
LB: loop body
LE: loop exit
PB: predicated region body
PF: predicated region fallthrough
CT: control target
= control target key end

     0   :  { %s1712_s12 = smov 0   ;;  %s1986_s0 = inlined_call_operand.vmem [shape: bf16[512,288], index: 0, kind: input, shape index: {}]   ;;  %s1987_s1 = inlined_call_operand.vmem [shape: bf16[288,64], index: 1, kind: input, shape index: {}]   ;;  %s1988_s2 = inlined_call_operand.vmem [shape: f32[1,64], index: 2, kind: input, shape index: {}]   ;;  %s1989_s3 = inlined_call_operand.vmem [shape: bf16[512,64], index: 3, kind: output, shape index: {}]  }
   0x1 LB: > { %s1253_s13 = sadd.s32 4294967295, %s1690_s12   ;;  %p1257_p0 = scmp.ge.s32.totalorder %s1690_s12, 1  ;;  %s1690_s12 = sphi %s1712_s12, %s13_s12  }
   0x2   : > { %p139_p1 = scmp.lt.s32.totalorder %s1690_s12, 3 }
   0x4   : > { %p140_p2 = pnand %p1257_p0, %p139_p1 }
   0x5   : > { %v1602_v0 = vld [vmem:[%s1987_s1 + $0x40] sm:$0xff] (!%p140_p2)   ;;  %s1258_s16 = sshll.u32 (!%p140_p2), %s1253_s13, 5  ;;  %v1604_v2 = vld [vmem:[%s1987_s1 + $0x48] sm:$0xff] (!%p140_p2)   ;;  %v1606_v4 = vld [vmem:[%s1987_s1 + $0x50] sm:$0xff] (!%p140_p2)   ;;  %vm633_vm0 = vcmask (!%p140_p2), 261120   ;;  %vm1164_vm1 = vcmask (!%p140_p2), 519168  }
   0x6   : > { %143 = sbr.rel (%p140_p2) target bundleno = 352 (0x160), region = 32  ;;  %v1603_v1 = vld [vmem:[%s1987_s1] sm:$0xff] (!%p140_p2)   ;;  %1411 = vmatprep.subr.bf16.mxu0 (!%p140_p2), %v1602_v0  ;;  %1577 = vmatprep.subr.bf16.mxu1 (!%p140_p2), %v1602_v0  ;;  %p165_p3 = scmp.lt.s32.totalorder (!%p140_p2), %s1258_s16, 63  ;;  %v1605_v3 = vld [vmem:[%s1987_s1 + $0x8] sm:$0xff] (!%p140_p2)   ;;  %v1607_v5 = vld [vmem:[%s1987_s1 + $0x10] sm:$0xff] (!%p140_p2)  }
   0x7   : > { %1412 = vmatpush3.bf16.msra.mxu0 (!%p140_p2), %v1603_v1  ;;  %1585 = vmatpush3.bf16.msra.mxu1 (!%p140_p2), %v1603_v1  ;;  %v1608_v6 = vld [vmem:[%s1987_s1 + $0x58] sm:$0xff] (!%p140_p2)   ;;  %v1610_v8 = vld [vmem:[%s1987_s1 + $0x60] sm:$0xff] (!%p140_p2)   ;;  %v1612_v10 = vld [vmem:[%s1987_s1 + $0x68] sm:$0xff] (!%p140_p2)  }
   0x8   : > { %1413 = vmatprep.subr.bf16.mxu0 (!%p140_p2), %v1604_v2  ;;  %1578 = vmatprep.subr.bf16.mxu1 (!%p140_p2), %v1604_v2  ;;  %v1609_v7 = vld [vmem:[%s1987_s1 + $0x18] sm:$0xff] (!%p140_p2)   ;;  %v1611_v9 = vld [vmem:[%s1987_s1 + $0x20] sm:$0xff] (!%p140_p2)   ;;  %v1613_v13 = vld [vmem:[%s1987_s1 + $0x28] sm:$0xff] (!%p140_p2)  }
   0x9   : > { %v1614_v14 = vld [vmem:[%s1987_s1 + $0x70] sm:$0xff] (!%p140_p2)   ;;  %v1616_v16 = vld [vmem:[%s1987_s1 + $0x78] sm:$0xff] (!%p140_p2)   ;;  %v1624_v18 = vld [vmem:[%s1987_s1 + $0x80] sm:$0xff] (!%p140_p2)  }
   0xa   : > { %v1615_v15 = vld [vmem:[%s1987_s1 + $0x30] sm:$0xff] (!%p140_p2)   ;;  %v1617_v17 = vld [vmem:[%s1987_s1 + $0x38] sm:$0xff] (!%p140_p2)   ;;  %v1637_v23 = vld [vmem:[%s1987_s1 + $0x88] sm:$0xff] (!%p140_p2)  }
   0xb   : > { %1414 = vmatpush3.bf16.msra.mxu0 (!%p140_p2), %v1605_v3  ;;  %1586 = vmatpush3.bf16.msra.mxu1 (!%p140_p2), %v1605_v3 }
   0xc   : > { %1415 = vmatprep.subr.bf16.mxu0 (!%p140_p2), %v1606_v4  ;;  %1579 = vmatprep.subr.bf16.mxu1 (!%p140_p2), %v1606_v4 }
   0xd   : > { %s1991_s16 = smov (!%p165_p3, %s1258_s16), 63 }
   0xe   : > { %s1593_s29 = smul.u32 12, %s1991_s16  ;;  %s1261_s5 = sshll.u32 %s1991_s16, 2 }
   0xf   : > { %1416 = vmatpush3.bf16.msra.mxu0 %v1607_v5  ;;  %1587 = vmatpush3.bf16.msra.mxu1 %v1607_v5  ;;  %s1875_s8 = scalar_lea.vmem %s1989_s3, %s1261_s5 }
  0x10   : > { %1417 = vmatprep.subr.bf16.mxu0 %v1608_v6  ;;  %1580 = vmatprep.subr.bf16.mxu1 %v1608_v6  ;;  %s1753_s9 = scalar_lea.vmem %s1986_s0, %s1593_s29 }
  0x11   : > { %v1620_v11 = vld [vmem:[%s1753_s9 + $0x4] ss:$12 sps:$4 sm:$0xff]   ;;  %v1618_v19 = vld [vmem:[%s1753_s9] ss:$12 sps:$4 sm:$0xff]   ;;  %v1625_v21 = vld [vmem:[%s1753_s9 + $0x1c] ss:$12 sps:$4 sm:$0xff]  }
  0x12   : > { %v1623_v12 = vld [vmem:[%s1753_s9 + $0x124] ss:$12 sps:$4 sm:$0xff]   ;;  %714 = vmatprep.mubr.bf16.mxu0 %v1620_v11  ;;  %v1621_v20 = vld [vmem:[%s1753_s9 + $0x120] ss:$12 sps:$4 sm:$0xff]   ;;  %v1627_v22 = vld [vmem:[%s1753_s9 + $0x13c] ss:$12 sps:$4 sm:$0xff]  }
  0x13   : > { %1418 = vmatpush3.bf16.msra.mxu0 %v1609_v7  ;;  %1588 = vmatpush3.bf16.msra.mxu1 %v1609_v7  ;;  %v1629_v24 = vld [vmem:[%s1753_s9 + $0x18] ss:$12 sps:$4 sm:$0xff]   ;;  %v1631_v26 = vld [vmem:[%s1753_s9 + $0x34] ss:$12 sps:$4 sm:$0xff]   ;;  %v1635_v28 = vld [vmem:[%s1753_s9 + $0x30] ss:$12 sps:$4 sm:$0xff]  }
  0x14   : > { %1419 = vmatprep.subr.bf16.mxu0 %v1610_v8  ;;  %1581 = vmatprep.subr.bf16.mxu1 %v1610_v8  ;;  %v1630_v25 = vld [vmem:[%s1753_s9 + $0x138] ss:$12 sps:$4 sm:$0xff]   ;;  %v1633_v27 = vld [vmem:[%s1753_s9 + $0x154] ss:$12 sps:$4 sm:$0xff]   ;;  %v1636_v29 = vld [vmem:[%s1753_s9 + $0x150] ss:$12 sps:$4 sm:$0xff]  }
  0x15   : > { %810 = vmatprep.mubr.bf16.mxu1 %v1623_v12  ;;  %v1638_v30 = vld [vmem:[%s1753_s9 + $0x4c] ss:$12 sps:$4 sm:$0xff]   ;;  %v1642_v32 = vld [vmem:[%s1753_s9 + $0x48] ss:$12 sps:$4 sm:$0xff]   ;;  %v1644_v34 = vld [vmem:[%s1753_s9 + $0x64] ss:$12 sps:$4 sm:$0xff]  }
  0x16   : > { %v1640_v31 = vld [vmem:[%s1753_s9 + $0x16c] ss:$12 sps:$4 sm:$0xff]   ;;  %v1643_v33 = vld [vmem:[%s1753_s9 + $0x168] ss:$12 sps:$4 sm:$0xff]   ;;  %v1653_v41 = vld [vmem:[%s1753_s9 + $0x50] ss:$12 sps:$4 sm:$0xff]  }
  0x17   : > { %1420 = vmatpush3.bf16.msra.mxu0 %v1611_v9  ;;  %1589 = vmatpush3.bf16.msra.mxu1 %v1611_v9  ;;  %v1646_v35 = vld [vmem:[%s1753_s9 + $0x8] ss:$12 sps:$4 sm:$0xff]   ;;  %v1647_v36 = vld [vmem:[%s1753_s9 + $0x60] ss:$12 sps:$4 sm:$0xff]   ;;  %v1651_v39 = vld [vmem:[%s1753_s9 + $0x38] ss:$12 sps:$4 sm:$0xff]  }
  0x18   : > { %1421 = vmatprep.subr.bf16.mxu0 %v1612_v10  ;;  %1582 = vmatprep.subr.bf16.mxu1 %v1612_v10  ;;  %v1648_v37 = vld [vmem:[%s1753_s9 + $0x20] ss:$12 sps:$4 sm:$0xff]   ;;  %v1649_v38 = vld [vmem:[%s1753_s9 + $0x7c] ss:$12 sps:$4 sm:$0xff]   ;;  %v1652_v40 = vld [vmem:[%s1753_s9 + $0x78] ss:$12 sps:$4 sm:$0xff]  }
  0x19   : > { %v1654_v42 = vld [vmem:[%s1753_s9 + $0x94] ss:$12 sps:$4 sm:$0xff]   ;;  %v1657_v44 = vld [vmem:[%s1753_s9 + $0x90] ss:$12 sps:$4 sm:$0xff]   ;;  %v1659_v46 = vld [vmem:[%s1753_s9 + $0xac] ss:$12 sps:$4 sm:$0xff]  }
  0x1a   : > { %v1656_v43 = vld [vmem:[%s1753_s9 + $0x68] ss:$12 sps:$4 sm:$0xff]   ;;  %v1658_v45 = vld [vmem:[%s1753_s9 + $0x80] ss:$12 sps:$4 sm:$0xff]   ;;  %v1661_v47 = vld [vmem:[%s1753_s9 + $0x98] ss:$12 sps:$4 sm:$0xff]  }
  0x1b   : > { %1422 = vmatpush3.bf16.msra.mxu0 %v1613_v13  ;;  %1590 = vmatpush3.bf16.msra.mxu1 %v1613_v13  ;;  %v1662_v48 = vld [vmem:[%s1753_s9 + $0xa8] ss:$12 sps:$4 sm:$0xff]   ;;  %v1663_v49 = vld [vmem:[%s1753_s9 + $0xb0] ss:$12 sps:$4 sm:$0xff]   ;;  %v1667_v52 = vld [vmem:[%s1753_s9 + $0xc0] ss:$12 sps:$4 sm:$0xff]  }
  0x1c   : > { %1423 = vmatprep.subr.bf16.mxu0 %v1614_v14  ;;  %1583 = vmatprep.subr.bf16.mxu1 %v1614_v14  ;;  %v1664_v50 = vld [vmem:[%s1753_s9 + $0xc4] ss:$12 sps:$4 sm:$0xff]   ;;  %v1666_v51 = vld [vmem:[%s1753_s9 + $0xc8] ss:$12 sps:$4 sm:$0xff]   ;;  %v1668_v53 = vld [vmem:[%s1753_s9 + $0xe0] ss:$12 sps:$4 sm:$0xff]  }
  0x1d   : > { %v1669_v54 = vld [vmem:[%s1753_s9 + $0xdc] ss:$12 sps:$4 sm:$0xff]   ;;  %v1671_v55 = vld [vmem:[%s1753_s9 + $0xf8] ss:$12 sps:$4 sm:$0xff]   ;;  %v1674_v58 = vld [vmem:[%s1753_s9 + $0xf4] ss:$12 sps:$4 sm:$0xff]  }
  0x1e   : > { %v1672_v56 = vld [vmem:[%s1753_s9 + $0xd8] ss:$12 sps:$4 sm:$0xff]   ;;  %v1673_v57 = vld [vmem:[%s1753_s9 + $0x110] ss:$12 sps:$4 sm:$0xff]   ;;  %v1676_v59 = vld [vmem:[%s1753_s9 + $0x128] ss:$12 sps:$4 sm:$0xff]  }
  0x1f   : > { %1424 = vmatpush3.bf16.msra.mxu0 %v1615_v15  ;;  %1591 = vmatpush3.bf16.msra.mxu1 %v1615_v15  ;;  %v1677_v60 = vld [vmem:[%s1753_s9 + $0xf0] ss:$12 sps:$4 sm:$0xff]   ;;  %v1678_v61 = vld [vmem:[%s1753_s9 + $0x140] ss:$12 sps:$4 sm:$0xff]   ;;  %v1681_v63 = vld [vmem:[%s1753_s9 + $0x158] ss:$12 sps:$4 sm:$0xff]  }
  0x20   : > { %1425 = vmatprep.subr.bf16.mxu0 %v1616_v16  ;;  %1584 = vmatprep.subr.bf16.mxu1 %v1616_v16  ;;  %v1679_v62 = vld [vmem:[%s1753_s9 + $0x10c] ss:$12 sps:$4 sm:$0xff]   ;;  %v1682_v0 = vld [vmem:[%s1753_s9 + $0x108] ss:$12 sps:$4 sm:$0xff]   ;;  %v1683_v1 = vld [vmem:[%s1753_s9 + $0x170] ss:$12 sps:$4 sm:$0xff]  }
  0x23   : > { %1426 = vmatpush3.bf16.msra.mxu0 %v1617_v17  ;;  %1592 = vmatpush3.bf16.msra.mxu1 %v1617_v17 }
  0x24   : > { %1541 = vmatprep.subr.bf16.mxu1 %v1624_v18 }
  0x26   : > { %715 = vmatmul.mubr.bf16.vlgmr.msra.gmra.mrb[0].mxu0 %v1618_v19  ;;  %811 = vmatmul.mubr.bf16.vlgmr.msra.gmra.mrb[0].mxu1 %v1621_v20 }
  0x27   : > { %1542 = vmatpush3.bf16.msra.mxu1 %v1624_v18  ;;  %722 = vmatprep.mubr.bf16.mxu0 %v1625_v21 }
  0x28   : > { %818 = vmatprep.mubr.bf16.mxu1 %v1627_v22  ;;  %1543 = vmatprep.subr.bf16.mxu1 %v1637_v23 }
  0x2b   : > { %1544 = vmatpush3.bf16.msra.mxu1 %v1637_v23 }
  0x2e   : > { %723 = vmatmul.mubr.bf16.gmra.mrb[4].mxu0 %v1629_v24  ;;  %819 = vmatmul.mubr.bf16.gmra.mrb[4].mxu1 %v1630_v25 }
  0x2f   : > { %730 = vmatprep.mubr.bf16.mxu0 %v1631_v26  ;;  %826 = vmatprep.mubr.bf16.mxu1 %v1633_v27 }
  0x36   : > { %731 = vmatmul.mubr.bf16.gmra.mrb[8].mxu0 %v1635_v28  ;;  %827 = vmatmul.mubr.bf16.gmra.mrb[8].mxu1 %v1636_v29 }
  0x37   : > { %738 = vmatprep.mubr.bf16.mxu0 %v1638_v30  ;;  %834 = vmatprep.mubr.bf16.mxu1 %v1640_v31 }
  0x3e   : > { %739 = vmatmul.mubr.bf16.gmra.mrb[12].mxu0 %v1642_v32  ;;  %835 = vmatmul.mubr.bf16.gmra.mrb[12].mxu1 %v1643_v33 }
  0x3f   : > { %746 = vmatprep.mubr.bf16.mxu0 %v1644_v34  ;;  %1545 = vmatprep.mubr.msk.bf16.mxu1 %vm633_vm0, %v1646_v35 }
  0x46   : > { %747 = vmatmul.mubr.bf16.gmra.mrb[16].mxu0 %v1647_v36  ;;  %1546 = vmatmul.mubr.msk.bf16.vlgmr.msra.gmra.mrb[16].mxu1 %vm633_vm0, %v1648_v37 }
  0x47   : > { %754 = vmatprep.mubr.bf16.mxu0 %v1649_v38  ;;  %1549 = vmatprep.mubr.msk.bf16.mxu1 %vm633_vm0, %v1651_v39 }
  0x4e   : > { %755 = vmatmul.mubr.bf16.gmra.mrb[20].mxu0 %v1652_v40  ;;  %1550 = vmatmul.mubr.msk.bf16.gmra.mrb[20].mxu1 %vm633_vm0, %v1653_v41 }
  0x4f   : > { %762 = vmatprep.mubr.bf16.mxu0 %v1654_v42  ;;  %1553 = vmatprep.mubr.msk.bf16.mxu1 %vm633_vm0, %v1656_v43 }
  0x56   : > { %763 = vmatmul.mubr.bf16.gmra.mrb[24].mxu0 %v1657_v44  ;;  %1554 = vmatmul.mubr.msk.bf16.gmra.mrb[24].mxu1 %vm633_vm0, %v1658_v45 }
  0x57   : > { %770 = vmatprep.mubr.bf16.mxu0 %v1659_v46  ;;  %1557 = vmatprep.mubr.msk.bf16.mxu1 %vm633_vm0, %v1661_v47 }
  0x5e   : > { %771 = vmatmul.mubr.bf16.gmra.mrb[28].mxu0 %v1662_v48  ;;  %1558 = vmatmul.mubr.msk.bf16.gmra.mrb[28].mxu1 %vm633_vm0, %v1663_v49 }
  0x5f   : > { %778 = vmatprep.mubr.bf16.mxu0 %v1664_v50  ;;  %1561 = vmatprep.mubr.msk.bf16.mxu1 %vm633_vm0, %v1666_v51  ;;  %v1865_v50 = vld [vmem:[%s1988_s2] ss:$0 sm:$0xff] }
  0x66   : > { %779 = vmatmul.mubr.bf16.gmra.mrb[32].mxu0 %v1667_v52  ;;  %1562 = vmatmul.mubr.msk.bf16.gmra.mrb[32].mxu1 %vm633_vm0, %v1668_v53 }
  0x67   : > { %786 = vmatprep.mubr.bf16.mxu0 %v1669_v54  ;;  %1565 = vmatprep.mubr.msk.bf16.mxu1 %vm633_vm0, %v1671_v55 }
  0x6e   : > { %787 = vmatmul.mubr.bf16.gmra.mrb[36].mxu0 %v1672_v56  ;;  %1566 = vmatmul.mubr.msk.bf16.gmra.mrb[36].mxu1 %vm633_vm0, %v1673_v57 }
  0x6f   : > { %794 = vmatprep.mubr.bf16.mxu0 %v1674_v58  ;;  %1569 = vmatprep.mubr.msk.bf16.mxu1 %vm633_vm0, %v1676_v59 }
  0x76   : > { %795 = vmatmul.mubr.bf16.gmra.mrb[40].mxu0 %v1677_v60  ;;  %1570 = vmatmul.mubr.msk.bf16.gmra.mrb[40].mxu1 %vm633_vm0, %v1678_v61 }
  0x77   : > { %802 = vmatprep.mubr.bf16.mxu0 %v1679_v62  ;;  %1573 = vmatprep.mubr.msk.bf16.mxu1 %vm633_vm0, %v1681_v63 }
  0x7e   : > { %803 = vmatmul.mubr.bf16.gmra.mrb[44].mxu0 %v1682_v0  ;;  %1574 = vmatmul.mubr.msk.bf16.gmra.mrb[44].mxu1 %vm633_vm0, %v1683_v1 }
  0xf9   : > { %v1427_v2 = vpop.f32.mrb[0].mxu0  ;;  %v1499_v3 = vpop.f32.mrb[0].mxu1 }
  0xfa   : > { %v1428_v4 = vpop.f32.mrb[1].mxu0  ;;  %v1500_v5 = vpop.f32.mrb[1].mxu1 }
  0xfb   : > { %v1429_v6 = vadd.f32 %v1428_v4, %v1427_v2  ;;  %v1430_v7 = vpop.f32.mrb[2].mxu0  ;;  %v1846_v8 = vadd.f32 %v1500_v5, %v1499_v3  ;;  %v1502_v9 = vpop.f32.mrb[2].mxu1 }
  0xfc   : > { %v1431_v10 = vpop.f32.mrb[3].mxu0  ;;  %v1503_v11 = vpop.f32.mrb[3].mxu1 }
  0xfd   : > { %v1432_v12 = vadd.f32 %v1431_v10, %v1430_v7  ;;  %v1848_v13 = vadd.f32 %v1503_v11, %v1502_v9  ;;  %v717_v54 = vadd.f32 %v1429_v6, %v1865_v50 }
  0xff   : > { %v720_v63 = vadd.f32 %v1432_v12, %v1865_v50 }
 0x101   : > { %v1433_v14 = vpop.f32.mrb[4].mxu0  ;;  %v1505_v15 = vpop.f32.mrb[4].mxu1 }
 0x102   : > { %v1434_v16 = vpop.f32.mrb[5].mxu0  ;;  %v1506_v17 = vpop.f32.mrb[5].mxu1 }
 0x103   : > { %v1435_v18 = vadd.f32 %v1434_v16, %v1433_v14  ;;  %v1436_v19 = vpop.f32.mrb[6].mxu0  ;;  %v1850_v20 = vadd.f32 %v1506_v17, %v1505_v15  ;;  %v1508_v21 = vpop.f32.mrb[6].mxu1 }
 0x104   : > { %v1437_v22 = vpop.f32.mrb[7].mxu0  ;;  %v1509_v23 = vpop.f32.mrb[7].mxu1 }
 0x105   : > { %v1438_v24 = vadd.f32 %v1437_v22, %v1436_v19  ;;  %v1852_v25 = vadd.f32 %v1509_v23, %v1508_v21  ;;  %v725_v51 = vadd.f32 %v1435_v18, %v1865_v50 }
 0x107   : > { %v728_v58 = vadd.f32 %v1438_v24, %v1865_v50 }
 0x109   : > { %v1439_v26 = vpop.f32.mrb[8].mxu0  ;;  %v1511_v27 = vpop.f32.mrb[8].mxu1 }
 0x10a   : > { %v1440_v28 = vpop.f32.mrb[9].mxu0  ;;  %v1512_v29 = vpop.f32.mrb[9].mxu1 }
 0x10b   : > { %v1441_v30 = vadd.f32 %v1440_v28, %v1439_v26  ;;  %v1442_v31 = vpop.f32.mrb[10].mxu0  ;;  %v1854_v32 = vadd.f32 %v1512_v29, %v1511_v27  ;;  %v1514_v33 = vpop.f32.mrb[10].mxu1 }
 0x10c   : > { %v1443_v34 = vpop.f32.mrb[11].mxu0  ;;  %v1515_v35 = vpop.f32.mrb[11].mxu1 }
 0x10d   : > { %v1444_v36 = vadd.f32 %v1443_v34, %v1442_v31  ;;  %v1856_v37 = vadd.f32 %v1515_v35, %v1514_v33  ;;  %v733_v18 = vadd.f32 %v1441_v30, %v1865_v50 }
 0x10f   : > { %v736_v29 = vadd.f32 %v1444_v36, %v1865_v50 }
 0x111   : > { %v1445_v38 = vpop.f32.mrb[12].mxu0  ;;  %v1517_v39 = vpop.f32.mrb[12].mxu1 }
 0x112   : > { %v1446_v40 = vpop.f32.mrb[13].mxu0  ;;  %v1518_v41 = vpop.f32.mrb[13].mxu1 }
 0x113   : > { %v1447_v42 = vadd.f32 %v1446_v40, %v1445_v38  ;;  %v1448_v43 = vpop.f32.mrb[14].mxu0  ;;  %v1858_v44 = vadd.f32 %v1518_v41, %v1517_v39  ;;  %v1520_v45 = vpop.f32.mrb[14].mxu1 }
 0x114   : > { %v1449_v46 = vpop.f32.mrb[15].mxu0  ;;  %v1521_v47 = vpop.f32.mrb[15].mxu1 }
 0x115   : > { %v1450_v48 = vadd.f32 %v1449_v46, %v1448_v43  ;;  %v1860_v49 = vadd.f32 %v1521_v47, %v1520_v45  ;;  %v741_v14 = vadd.f32 %v1447_v42, %v1865_v50 }
 0x117   : > { %v744_v23 = vadd.f32 %v1450_v48, %v1865_v50 }
 0x119   : > { %v1451_v52 = vpop.f32.mrb[16].mxu0  ;;  %v1547_v53 = vpop.f32.mrb[16].mxu1 }
 0x11a   : > { %v886_v55 = vadd.f32 %v1547_v53, %v725_v51  ;;  %v1452_v56 = vpop.f32.mrb[17].mxu0  ;;  %v877_v57 = vpop.f32.mrb[17].mxu1 }
 0x11b   : > { %v1453_v59 = vadd.f32 %v1452_v56, %v1451_v52  ;;  %v878_v60 = vadd.f32 %v877_v57, %v717_v54  ;;  %v1454_v61 = vpop.f32.mrb[18].mxu0  ;;  %v1548_v62 = vpop.f32.mrb[18].mxu1 }
 0x11c   : > { %v1006_v0 = vmax.f32 %v886_v55, 0.0  ;;  %v889_v1 = vadd.f32 %v1548_v62, %v728_v58  ;;  %v1455_v2 = vpop.f32.mrb[19].mxu0  ;;  %v880_v3 = vpop.f32.mrb[19].mxu1 }
 0x11d   : > { %v1004_v4 = vmax.f32 %v878_v60, 0.0  ;;  %v1456_v5 = vadd.f32 %v1455_v2, %v1454_v61  ;;  %v881_v6 = vadd.f32 %v880_v3, %v720_v63  ;;  %v749_v51 = vadd.f32 %v1453_v59, %v1865_v50 }
 0x11e   : > { %v1381_v7 = vpack.c.bf16 %v1006_v0, %v1006_v0  ;;  %v1007_v9 = vmax.f32 %v889_v1, 0.0 }
 0x11f   : > { %v1379_v10 = vpack.c.bf16 %v1004_v4, %v1004_v4  ;;  %v1005_v11 = vmax.f32 %v881_v6, 0.0  ;;  %v752_v61 = vadd.f32 %v1456_v5, %v1865_v50 }
 0x120   : > { %1167 = vst.msk [vmem:[%s1875_s8 + $0x8] sm:$0xf] %vm1164_vm1, %v1381_v7  ;;  %v1382_v12 = vpack.c.bf16 %v1007_v9, %v1007_v9 }
 0x121   : > { %1165 = vst.msk [vmem:[%s1875_s8] sm:$0xf] %vm1164_vm1, %v1379_v10  ;;  %v1380_v15 = vpack.c.bf16 %v1005_v11, %v1005_v11  ;;  %v1457_v16 = vpop.f32.mrb[20].mxu0  ;;  %v1551_v17 = vpop.f32.mrb[20].mxu1 }
 0x122   : > { %1168 = vst.msk [vmem:[%s1875_s8 + $0xc] sm:$0xf] %vm1164_vm1, %v1382_v12  ;;  %v902_v19 = vadd.f32 %v1551_v17, %v741_v14  ;;  %v1458_v21 = vpop.f32.mrb[21].mxu0  ;;  %v893_v22 = vpop.f32.mrb[21].mxu1 }
 0x123   : > { %1166 = vst.msk [vmem:[%s1875_s8 + $0x4] sm:$0xf] %vm1164_vm1, %v1380_v15  ;;  %v1459_v24 = vadd.f32 %v1458_v21, %v1457_v16  ;;  %v894_v26 = vadd.f32 %v893_v22, %v733_v18  ;;  %v1460_v27 = vpop.f32.mrb[22].mxu0  ;;  %v1552_v28 = vpop.f32.mrb[22].mxu1 }
 0x124   : > { %v1010_v31 = vmax.f32 %v902_v19, 0.0  ;;  %v905_v33 = vadd.f32 %v1552_v28, %v744_v23  ;;  %v1461_v30 = vpop.f32.mrb[23].mxu0  ;;  %v896_v34 = vpop.f32.mrb[23].mxu1 }
 0x125   : > { %v1008_v35 = vmax.f32 %v894_v26, 0.0  ;;  %v1462_v38 = vadd.f32 %v1461_v30, %v1460_v27  ;;  %v897_v39 = vadd.f32 %v896_v34, %v736_v29  ;;  %v757_v46 = vadd.f32 %v1459_v24, %v1865_v50 }
 0x126   : > { %v1385_v40 = vpack.c.bf16 %v1010_v31, %v1010_v31  ;;  %v1011_v41 = vmax.f32 %v905_v33, 0.0 }
 0x127   : > { %v1383_v42 = vpack.c.bf16 %v1008_v35, %v1008_v35  ;;  %v1009_v43 = vmax.f32 %v897_v39, 0.0  ;;  %v760_v55 = vadd.f32 %v1462_v38, %v1865_v50 }
 0x128   : > { %1171 = vst.msk [vmem:[%s1875_s8 + $0x18] sm:$0xf] %vm1164_vm1, %v1385_v40  ;;  %v1386_v45 = vpack.c.bf16 %v1011_v41, %v1011_v41 }
 0x129   : > { %1169 = vst.msk [vmem:[%s1875_s8 + $0x10] sm:$0xf] %vm1164_vm1, %v1383_v42  ;;  %v1384_v36 = vpack.c.bf16 %v1009_v43, %v1009_v43  ;;  %v1463_v47 = vpop.f32.mrb[24].mxu0  ;;  %v1555_v48 = vpop.f32.mrb[24].mxu1 }
 0x12a   : > { %1172 = vst.msk [vmem:[%s1875_s8 + $0x1c] sm:$0xf] %vm1164_vm1, %v1386_v45  ;;  %v918_v52 = vadd.f32 %v1555_v48, %v757_v46  ;;  %v1464_v53 = vpop.f32.mrb[25].mxu0  ;;  %v909_v54 = vpop.f32.mrb[25].mxu1 }
 0x12b   : > { %1170 = vst.msk [vmem:[%s1875_s8 + $0x14] sm:$0xf] %vm1164_vm1, %v1384_v36  ;;  %v1465_v56 = vadd.f32 %v1464_v53, %v1463_v47  ;;  %v910_v57 = vadd.f32 %v909_v54, %v749_v51  ;;  %v1466_v58 = vpop.f32.mrb[26].mxu0  ;;  %v1556_v60 = vpop.f32.mrb[26].mxu1 }
 0x12c   : > { %v1014_v62 = vmax.f32 %v918_v52, 0.0  ;;  %v921_v63 = vadd.f32 %v1556_v60, %v760_v55  ;;  %v1467_v59 = vpop.f32.mrb[27].mxu0  ;;  %v912_v0 = vpop.f32.mrb[27].mxu1 }
 0x12d   : > { %v1012_v1 = vmax.f32 %v910_v57, 0.0  ;;  %v1468_v2 = vadd.f32 %v1467_v59, %v1466_v58  ;;  %v913_v3 = vadd.f32 %v912_v0, %v752_v61  ;;  %v765_v14 = vadd.f32 %v1465_v56, %v1865_v50 }
 0x12e   : > { %v1389_v4 = vpack.c.bf16 %v1014_v62, %v1014_v62  ;;  %v1015_v6 = vmax.f32 %v921_v63, 0.0 }
 0x12f   : > { %v1387_v7 = vpack.c.bf16 %v1012_v1, %v1012_v1  ;;  %v1013_v9 = vmax.f32 %v913_v3, 0.0  ;;  %v768_v22 = vadd.f32 %v1468_v2, %v1865_v50 }
 0x130   : > { %1175 = vst.msk [vmem:[%s1875_s8 + $0x28] sm:$0xf] %vm1164_vm1, %v1389_v4  ;;  %v1390_v10 = vpack.c.bf16 %v1015_v6, %v1015_v6 }
 0x131   : > { %1173 = vst.msk [vmem:[%s1875_s8 + $0x20] sm:$0xf] %vm1164_vm1, %v1387_v7  ;;  %v1388_v11 = vpack.c.bf16 %v1013_v9, %v1013_v9  ;;  %v1469_v5 = vpop.f32.mrb[28].mxu0  ;;  %v1559_v12 = vpop.f32.mrb[28].mxu1 }
 0x132   : > { %1176 = vst.msk [vmem:[%s1875_s8 + $0x2c] sm:$0xf] %vm1164_vm1, %v1390_v10  ;;  %v1470_v15 = vpop.f32.mrb[29].mxu0  ;;  %v925_v16 = vpop.f32.mrb[29].mxu1 }
 0x133   : > { %1174 = vst.msk [vmem:[%s1875_s8 + $0x24] sm:$0xf] %vm1164_vm1, %v1388_v11  ;;  %v1471_v17 = vadd.f32 %v1470_v15, %v1469_v5  ;;  %v926_v18 = vadd.f32 %v925_v16, %v765_v14  ;;  %v1472_v19 = vpop.f32.mrb[30].mxu0  ;;  %v1560_v21 = vpop.f32.mrb[30].mxu1  ;;  %v821_v14 = vadd.f32 %v1850_v20, %v1865_v50 }
 0x134   : > { %v1473_v23 = vpop.f32.mrb[31].mxu0  ;;  %v928_v24 = vpop.f32.mrb[31].mxu1 }
 0x135   : > { %v773_v26 = vadd.f32 %v1471_v17, %v1865_v50  ;;  %v1016_v27 = vmax.f32 %v926_v18, 0.0  ;;  %v1474_v28 = vadd.f32 %v1473_v23, %v1472_v19  ;;  %v929_v29 = vadd.f32 %v928_v24, %v768_v22 }
 0x136   : > { %v813_v19 = vadd.f32 %v1846_v8, %v1865_v50  ;;  %v824_v24 = vadd.f32 %v1852_v25, %v1865_v50  ;;  %v816_v8 = vadd.f32 %v1848_v13, %v1865_v50 }
 0x137   : > { %v934_v31 = vadd.f32 %v1559_v12, %v773_v26  ;;  %v1391_v33 = vpack.c.bf16 %v1016_v27, %v1016_v27  ;;  %v776_v30 = vadd.f32 %v1474_v28, %v1865_v50  ;;  %v1017_v34 = vmax.f32 %v929_v29, 0.0 }
 0x139   : > { %v1018_v35 = vmax.f32 %v934_v31, 0.0  ;;  %1177 = vst.msk [vmem:[%s1875_s8 + $0x30] sm:$0xf] %vm1164_vm1, %v1391_v33  ;;  %v937_v38 = vadd.f32 %v1560_v21, %v776_v30  ;;  %v1392_v39 = vpack.c.bf16 %v1017_v34, %v1017_v34  ;;  %v1475_v40 = vpop.f32.mrb[32].mxu0  ;;  %v1563_v41 = vpop.f32.mrb[32].mxu1 }
 0x13a   : > { %v1476_v42 = vpop.f32.mrb[33].mxu0  ;;  %v941_v43 = vpop.f32.mrb[33].mxu1 }
 0x13b   : > { %v1393_v45 = vpack.c.bf16 %v1018_v35, %v1018_v35  ;;  %v1019_v46 = vmax.f32 %v937_v38, 0.0  ;;  %1178 = vst.msk [vmem:[%s1875_s8 + $0x34] sm:$0xf] %vm1164_vm1, %v1392_v39  ;;  %v1477_v36 = vadd.f32 %v1476_v42, %v1475_v40  ;;  %v1478_v47 = vpop.f32.mrb[34].mxu0  ;;  %v1564_v48 = vpop.f32.mrb[34].mxu1 }
 0x13c   : > { %v1479_v51 = vpop.f32.mrb[35].mxu0  ;;  %v944_v52 = vpop.f32.mrb[35].mxu1 }
 0x13d   : > { %1179 = vst.msk [vmem:[%s1875_s8 + $0x38] sm:$0xf] %vm1164_vm1, %v1393_v45  ;;  %v1394_v53 = vpack.c.bf16 %v1019_v46, %v1019_v46  ;;  %v781_v54 = vadd.f32 %v1477_v36, %v1865_v50  ;;  %v1480_v55 = vadd.f32 %v1479_v51, %v1478_v47 }
 0x13f   : > { %1180 = vst.msk [vmem:[%s1875_s8 + $0x3c] sm:$0xf] %vm1164_vm1, %v1394_v53  ;;  %v942_v56 = vadd.f32 %v941_v43, %v781_v54  ;;  %v784_v57 = vadd.f32 %v1480_v55, %v1865_v50  ;;  %v829_v55 = vadd.f32 %v1854_v32, %v1865_v50 }
 0x141   : > { %v1020_v58 = vmax.f32 %v942_v56, 0.0  ;;  %v945_v60 = vadd.f32 %v944_v52, %v784_v57  ;;  %v1481_v61 = vpop.f32.mrb[36].mxu0  ;;  %v1923_v62 = vpop.f32.mrb[36].mxu1 }
 0x142   : > { %v1482_v63 = vpop.f32.mrb[37].mxu0  ;;  %v957_v59 = vpop.f32.mrb[37].mxu1 }
 0x143   : > { %v1395_v0 = vpack.c.bf16 %v1020_v58, %v1020_v58  ;;  %v1021_v1 = vmax.f32 %v945_v60, 0.0  ;;  %v1483_v2 = vadd.f32 %v1482_v63, %v1481_v61  ;;  %v1484_v3 = vpop.f32.mrb[38].mxu0  ;;  %v1925_v4 = vpop.f32.mrb[38].mxu1 }
 0x144   : > { %v1485_v6 = vpop.f32.mrb[39].mxu0  ;;  %v960_v7 = vpop.f32.mrb[39].mxu1 }
 0x145   : > { %1181 = vst.msk [vmem:[%s1875_s8 + $0x40] sm:$0xf] %vm1164_vm1, %v1395_v0  ;;  %v1396_v9 = vpack.c.bf16 %v1021_v1, %v1021_v1  ;;  %v789_v10 = vadd.f32 %v1483_v2, %v1865_v50  ;;  %v1486_v11 = vadd.f32 %v1485_v6, %v1484_v3 }
 0x147   : > { %1182 = vst.msk [vmem:[%s1875_s8 + $0x44] sm:$0xf] %vm1164_vm1, %v1396_v9  ;;  %v950_v5 = vadd.f32 %v1563_v41, %v789_v10  ;;  %v792_v12 = vadd.f32 %v1486_v11, %v1865_v50 }
 0x149   : > { %v1022_v15 = vmax.f32 %v950_v5, 0.0  ;;  %v953_v16 = vadd.f32 %v1564_v48, %v792_v12  ;;  %v1487_v17 = vpop.f32.mrb[40].mxu0  ;;  %v1571_v18 = vpop.f32.mrb[40].mxu1  ;;  %v837_v48 = vadd.f32 %v1858_v44, %v1865_v50  ;;  %v840_v44 = vadd.f32 %v1860_v49, %v1865_v50 }
 0x14a   : > { %v982_v21 = vadd.f32 %v1571_v18, %v821_v14  ;;  %v1488_v22 = vpop.f32.mrb[41].mxu0  ;;  %v973_v23 = vpop.f32.mrb[41].mxu1 }
 0x14b   : > { %v1397_v26 = vpack.c.bf16 %v1022_v15, %v1022_v15  ;;  %v1023_v27 = vmax.f32 %v953_v16, 0.0  ;;  %v1489_v28 = vadd.f32 %v1488_v22, %v1487_v17  ;;  %v974_v29 = vadd.f32 %v973_v23, %v813_v19  ;;  %v1490_v20 = vpop.f32.mrb[42].mxu0  ;;  %v1572_v31 = vpop.f32.mrb[42].mxu1 }
 0x14c   : > { %v1030_v33 = vmax.f32 %v982_v21, 0.0  ;;  %v985_v30 = vadd.f32 %v1572_v31, %v824_v24  ;;  %v1491_v34 = vpop.f32.mrb[43].mxu0  ;;  %v976_v35 = vpop.f32.mrb[43].mxu1 }
 0x14d   : > { %1183 = vst.msk [vmem:[%s1875_s8 + $0x48] sm:$0xf] %vm1164_vm1, %v1397_v26  ;;  %v1398_v38 = vpack.c.bf16 %v1023_v27, %v1023_v27  ;;  %v797_v25 = vadd.f32 %v1489_v28, %v1865_v50  ;;  %v1028_v39 = vmax.f32 %v974_v29, 0.0  ;;  %v1492_v40 = vadd.f32 %v1491_v34, %v1490_v20 }
 0x14e   : > { %v1405_v41 = vpack.c.bf16 %v1030_v33, %v1030_v33  ;;  %v1031_v42 = vmax.f32 %v985_v30, 0.0  ;;  %v977_v43 = vadd.f32 %v976_v35, %v816_v8 }
 0x14f   : > { %1184 = vst.msk [vmem:[%s1875_s8 + $0x4c] sm:$0xf] %vm1164_vm1, %v1398_v38  ;;  %v958_v45 = vadd.f32 %v957_v59, %v797_v25  ;;  %v1403_v46 = vpack.c.bf16 %v1028_v39, %v1028_v39  ;;  %v800_v36 = vadd.f32 %v1492_v40, %v1865_v50 }
 0x150   : > { %1191 = vst.msk [vmem:[%s1875_s8 + $0x68] sm:$0xf] %vm1164_vm1, %v1405_v41  ;;  %v1406_v13 = vpack.c.bf16 %v1031_v42, %v1031_v42  ;;  %v1029_v47 = vmax.f32 %v977_v43, 0.0 }
 0x151   : > { %v1024_v51 = vmax.f32 %v958_v45, 0.0  ;;  %1189 = vst.msk [vmem:[%s1875_s8 + $0x60] sm:$0xf] %vm1164_vm1, %v1403_v46  ;;  %v961_v52 = vadd.f32 %v960_v7, %v800_v36  ;;  %v1493_v53 = vpop.f32.mrb[44].mxu0  ;;  %v1575_v54 = vpop.f32.mrb[44].mxu1  ;;  %v832_v7 = vadd.f32 %v1856_v37, %v1865_v50 }
 0x152   : > { %1192 = vst.msk [vmem:[%s1875_s8 + $0x6c] sm:$0xf] %vm1164_vm1, %v1406_v13  ;;  %v1404_v56 = vpack.c.bf16 %v1029_v47, %v1029_v47  ;;  %v998_v57 = vadd.f32 %v1575_v54, %v837_v48  ;;  %v1494_v58 = vpop.f32.mrb[45].mxu0  ;;  %v989_v60 = vpop.f32.mrb[45].mxu1 }
 0x153   : > { %v1399_v61 = vpack.c.bf16 %v1024_v51, %v1024_v51  ;;  %v1025_v63 = vmax.f32 %v961_v52, 0.0  ;;  %v1495_v59 = vadd.f32 %v1494_v58, %v1493_v53  ;;  %v990_v0 = vadd.f32 %v989_v60, %v829_v55  ;;  %v1496_v1 = vpop.f32.mrb[46].mxu0  ;;  %v1576_v2 = vpop.f32.mrb[46].mxu1 }
 0x154   : > { %1190 = vst.msk [vmem:[%s1875_s8 + $0x64] sm:$0xf] %vm1164_vm1, %v1404_v56  ;;  %v1034_v32 = vmax.f32 %v998_v57, 0.0  ;;  %v1001_v3 = vadd.f32 %v1576_v2, %v840_v44  ;;  %v1497_v6 = vpop.f32.mrb[47].mxu0  ;;  %v992_v9 = vpop.f32.mrb[47].mxu1 }
 0x155   : > { %1185 = vst.msk [vmem:[%s1875_s8 + $0x50] sm:$0xf] %vm1164_vm1, %v1399_v61  ;;  %v1400_v49 = vpack.c.bf16 %v1025_v63, %v1025_v63  ;;  %v805_v10 = vadd.f32 %v1495_v59, %v1865_v50  ;;  %v1032_v11 = vmax.f32 %v990_v0, 0.0  ;;  %v1498_v5 = vadd.f32 %v1497_v6, %v1496_v1 }
 0x156   : > { %v1409_v12 = vpack.c.bf16 %v1034_v32, %v1034_v32  ;;  %v1035_v14 = vmax.f32 %v1001_v3, 0.0  ;;  %v993_v15 = vadd.f32 %v992_v9, %v832_v7 }
 0x157   : > { %1186 = vst.msk [vmem:[%s1875_s8 + $0x54] sm:$0xf] %vm1164_vm1, %v1400_v49  ;;  %v966_v16 = vadd.f32 %v1923_v62, %v805_v10  ;;  %v1407_v37 = vpack.c.bf16 %v1032_v11, %v1032_v11  ;;  %v808_v17 = vadd.f32 %v1498_v5, %v1865_v50 }
 0x158   : > { %1195 = vst.msk [vmem:[%s1875_s8 + $0x78] sm:$0xf] %vm1164_vm1, %v1409_v12  ;;  %v1410_v18 = vpack.c.bf16 %v1035_v14, %v1035_v14  ;;  %v1033_v19 = vmax.f32 %v993_v15, 0.0 }
 0x159   : > { %v1026_v21 = vmax.f32 %v966_v16, 0.0  ;;  %1193 = vst.msk [vmem:[%s1875_s8 + $0x70] sm:$0xf] %vm1164_vm1, %v1407_v37  ;;  %v969_v22 = vadd.f32 %v1925_v4, %v808_v17 }
 0x15a   : > { %1196 = vst.msk [vmem:[%s1875_s8 + $0x7c] sm:$0xf] %vm1164_vm1, %v1410_v18  ;;  %v1408_v23 = vpack.c.bf16 %v1033_v19, %v1033_v19 }
 0x15b   : > { %v1401_v24 = vpack.c.bf16 %v1026_v21, %v1026_v21  ;;  %v1027_v26 = vmax.f32 %v969_v22, 0.0 }
 0x15c   : > { %1194 = vst.msk [vmem:[%s1875_s8 + $0x74] sm:$0xf] %vm1164_vm1, %v1408_v23 }
 0x15d   : > { %1187 = vst.msk [vmem:[%s1875_s8 + $0x58] sm:$0xf] %vm1164_vm1, %v1401_v24  ;;  %v1402_v62 = vpack.c.bf16 %v1027_v26, %v1027_v26 }
 0x15f   : > { %1188 = vst.msk [vmem:[%s1875_s8 + $0x5c] sm:$0xf] %vm1164_vm1, %v1402_v62 }
 0x160 PF: > { %s13_s12 = sadd.s32 1, %s1690_s12  }
 0x161   : > { %p10_p4 = scmp.ge.s32.totalorder %s13_s12, 4  }
 0x163   :  { %12 = sbr.rel (!%p10_p4) target bundleno = 1 (0x1), region = 62 }

// kernel: disnet_forward.9
= control target key start
LH: loop header
LB: loop body
LE: loop exit
PB: predicated region body
PF: predicated region fallthrough
CT: control target
= control target key end

     0   :  { %s1268_s15 = smov 0   ;;  %s1584_s0 = inlined_call_operand.vmem [shape: bf16[512,49], index: 0, kind: input, shape index: {}]   ;;  %s1585_s1 = inlined_call_operand.vmem [shape: bf16[49,64], index: 1, kind: input, shape index: {}]   ;;  %s1586_s2 = inlined_call_operand.vmem [shape: f32[1,64], index: 2, kind: input, shape index: {}]   ;;  %s1587_s3 = inlined_call_operand.vmem [shape: bf16[512,64], index: 3, kind: input, shape index: {}]   ;;  %s1588_s4 = inlined_call_operand.vmem [shape: bf16[512,64], index: 4, kind: output, shape index: {}]  }
   0x1 LB: > { %s944_s16 = sadd.s32 4294967295, %s1240_s15   ;;  %p948_p0 = scmp.ge.s32.totalorder %s1240_s15, 1  ;;  %s1240_s15 = sphi %s1268_s15, %s14_s15  }
   0x2   : > { %p174_p1 = scmp.lt.s32.totalorder %s1240_s15, 3 }
   0x4   : > { %p175_p2 = pnand %p948_p0, %p174_p1 }
   0x5   : > { %v1214_v0 = vld [vmem:[%s1585_s1] sm:$0xff] (!%p175_p2)   ;;  %v1215_v1 = vld [vmem:[%s1585_s1 + $0x8] sm:$0xff] (!%p175_p2)   ;;  %vm420_vm0 = vcmask (!%p175_p2), 1040384   ;;  %s949_s21 = sshll.u32 (!%p175_p2), %s944_s16, 5  ;;  %v1216_v2 = vld [vmem:[%s1585_s1 + $0x10] sm:$0xff] (!%p175_p2)   ;;  %v1242_v4 = vmov (!%p175_p2), 0  }
   0x6   : > { %178 = sbr.rel (%p175_p2) target bundleno = 273 (0x111), region = 36  ;;  %1157 = vmatprep.subr.bf16.mxu0 (!%p175_p2), %v1214_v0  ;;  %1197 = vmatprep.subr.bf16.mxu1 (!%p175_p2), %v1214_v0  ;;  %v1217_v3 = vld [vmem:[%s1585_s1 + $0x18] ss:$0 sps:$4 sm:$0x11] (!%p175_p2)   ;;  %p206_p3 = scmp.lt.s32.totalorder (!%p175_p2), %s949_s21, 63  ;;  %v422_v5 = vsel (!%p175_p2), %vm420_vm0, 65535, %v1242_v4 }
   0x7   : > { %1158 = vmatpush3.bf16.msra.mxu0 (!%p175_p2), %v1214_v0  ;;  %1201 = vmatpush3.bf16.msra.mxu1 (!%p175_p2), %v1214_v0  ;;  %v424_v6 = vand.u32 (!%p175_p2), %v1217_v3, %v422_v5  ;;  %vm371_vm1 = vcmask (!%p175_p2), 400384   ;;  %v1401_v55 = vld [vmem:[%s1586_s2] ss:$0 sm:$0xff] (!%p175_p2)  ;;  %vm843_vm2 = vcmask (!%p175_p2), 519168  }
   0x8   : > { %1159 = vmatprep.subr.bf16.mxu0 (!%p175_p2), %v1215_v1  ;;  %1198 = vmatprep.subr.bf16.mxu1 (!%p175_p2), %v1215_v1 }
   0xb   : > { %1160 = vmatpush3.bf16.msra.mxu0 (!%p175_p2), %v1215_v1  ;;  %1202 = vmatpush3.bf16.msra.mxu1 (!%p175_p2), %v1215_v1 }
   0xc   : > { %1161 = vmatprep.subr.bf16.mxu0 (!%p175_p2), %v1216_v2  ;;  %1199 = vmatprep.subr.bf16.mxu1 (!%p175_p2), %v1216_v2 }
   0xd   : > { %s1595_s21 = smov (!%p206_p3, %s949_s21), 63 }
   0xe   : > { %s1288_s26 = sshll.u32 %s1595_s21, 2 }
   0xf   : > { %s1294_s29 = scalar_lea.vmem %s1584_s0, %s1288_s26  ;;  %1162 = vmatpush3.bf16.msra.mxu0 %v1216_v2  ;;  %1203 = vmatpush3.bf16.msra.mxu1 %v1216_v2  ;;  %s1332_s6 = scalar_lea.vmem %s1587_s3, %s1288_s26 }
  0x10   : > { %v1218_v7 = vld [vmem:[%s1294_s29] sm:$0xff]   ;;  %1163 = vmatprep.subr.bf16.mxu0 %v424_v6  ;;  %1200 = vmatprep.subr.bf16.mxu1 %v424_v6  ;;  %v1220_v9 = vld [vmem:[%s1294_s29 + $0x8] sm:$0xff]   ;;  %v1222_v11 = vld [vmem:[%s1294_s29 + $0x10] sm:$0xff]   ;;  %s1431_s11 = scalar_lea.vmem %s1588_s4, %s1288_s26 }
  0x11   : > { %v1219_v8 = vld [vmem:[%s1294_s29 + $0x40] sm:$0xff]   ;;  %1165 = vmatprep.mubr.msk.bf16.mxu0 %vm371_vm1, %v1218_v7  ;;  %v1221_v10 = vld [vmem:[%s1294_s29 + $0x48] sm:$0xff]   ;;  %v1223_v12 = vld [vmem:[%s1294_s29 + $0x50] sm:$0xff]  }
  0x12   : > { %1181 = vmatprep.mubr.msk.bf16.mxu1 %vm371_vm1, %v1219_v8  ;;  %v1224_v13 = vld [vmem:[%s1294_s29 + $0x18] sm:$0xff]   ;;  %v1226_v15 = vld [vmem:[%s1294_s29 + $0x20] sm:$0xff]   ;;  %v1228_v17 = vld [vmem:[%s1294_s29 + $0x28] sm:$0xff]  }
  0x13   : > { %1164 = vmatpush3.bf16.msra.mxu0 %v424_v6  ;;  %1204 = vmatpush3.bf16.msra.mxu1 %v424_v6  ;;  %v1225_v14 = vld [vmem:[%s1294_s29 + $0x58] sm:$0xff]   ;;  %v1227_v16 = vld [vmem:[%s1294_s29 + $0x60] sm:$0xff]   ;;  %v1229_v18 = vld [vmem:[%s1294_s29 + $0x68] sm:$0xff]  }
  0x14   : > { %v1230_v19 = vld [vmem:[%s1294_s29 + $0x30] sm:$0xff]   ;;  %v1232_v21 = vld [vmem:[%s1294_s29 + $0x38] sm:$0xff]   ;;  %v1335_v23 = vld [vmem:[%s1332_s6 + $0x8] sm:$0xff]  }
  0x15   : > { %v1231_v20 = vld [vmem:[%s1294_s29 + $0x70] sm:$0xff]   ;;  %v1233_v22 = vld [vmem:[%s1294_s29 + $0x78] sm:$0xff]   ;;  %v1338_v24 = vld [vmem:[%s1332_s6 + $0x48] sm:$0xff]   ;;  %v1064_v31 = vunpack.c.l.bf16 %v1335_v23  ;;  %v1065_v36 = vunpack.c.h.bf16 %v1335_v23 }
  0x16   : > { %1166 = vmatmul.mubr.msk.bf16.vlgmr.msra.gmra.mrb[0].mxu0 %vm371_vm1, %v1220_v9  ;;  %1182 = vmatmul.mubr.msk.bf16.vlgmr.msra.gmra.mrb[0].mxu1 %vm371_vm1, %v1221_v10  ;;  %v1341_v25 = vld [vmem:[%s1332_s6] sm:$0xff]   ;;  %v1347_v27 = vld [vmem:[%s1332_s6 + $0x18] sm:$0xff]   ;;  %v1353_v29 = vld [vmem:[%s1332_s6 + $0x10] sm:$0xff]   ;;  %v1096_v32 = vunpack.c.l.bf16 %v1338_v24  ;;  %v1097_v37 = vunpack.c.h.bf16 %v1338_v24 }
  0x17   : > { %1169 = vmatprep.mubr.msk.bf16.mxu0 %vm371_vm1, %v1222_v11  ;;  %1185 = vmatprep.mubr.msk.bf16.mxu1 %vm371_vm1, %v1223_v12  ;;  %v1344_v26 = vld [vmem:[%s1332_s6 + $0x40] sm:$0xff]   ;;  %v1350_v28 = vld [vmem:[%s1332_s6 + $0x58] sm:$0xff]   ;;  %v1356_v30 = vld [vmem:[%s1332_s6 + $0x50] sm:$0xff]   ;;  %v1060_v33 = vunpack.c.l.bf16 %v1341_v25  ;;  %v1061_v38 = vunpack.c.h.bf16 %v1341_v25  ;;  %v1072_v43 = vunpack.c.l.bf16 %v1347_v27  ;;  %v1068_v45 = vunpack.c.l.bf16 %v1353_v29 }
  0x18   : > { %v1092_v34 = vunpack.c.l.bf16 %v1344_v26  ;;  %v1363_v35 = vld [vmem:[%s1332_s6 + $0x28] sm:$0xff]   ;;  %v1093_v39 = vunpack.c.h.bf16 %v1344_v26  ;;  %v1373_v41 = vld [vmem:[%s1332_s6 + $0x20] sm:$0xff]   ;;  %v1104_v44 = vunpack.c.l.bf16 %v1350_v28  ;;  %v1100_v46 = vunpack.c.l.bf16 %v1356_v30  ;;  %v1383_v47 = vld [vmem:[%s1332_s6 + $0x38] sm:$0xff]  }
  0x19   : > { %v1370_v40 = vld [vmem:[%s1332_s6 + $0x68] sm:$0xff]   ;;  %v1376_v42 = vld [vmem:[%s1332_s6 + $0x60] sm:$0xff]   ;;  %v1073_v48 = vunpack.c.h.bf16 %v1347_v27  ;;  %v1105_v49 = vunpack.c.h.bf16 %v1350_v28  ;;  %v1069_v50 = vunpack.c.h.bf16 %v1353_v29  ;;  %v1101_v51 = vunpack.c.h.bf16 %v1356_v30  ;;  %v1390_v52 = vld [vmem:[%s1332_s6 + $0x78] sm:$0xff]  }
  0x1a   : > { %v1393_v53 = vld [vmem:[%s1332_s6 + $0x30] sm:$0xff]   ;;  %v1080_v56 = vunpack.c.l.bf16 %v1363_v35  ;;  %v1112_v57 = vunpack.c.l.bf16 %v1370_v40  ;;  %v1076_v58 = vunpack.c.l.bf16 %v1373_v41  ;;  %v1108_v59 = vunpack.c.l.bf16 %v1376_v42 }
  0x1b   : > { %v1396_v54 = vld [vmem:[%s1332_s6 + $0x70] sm:$0xff]   ;;  %v1081_v60 = vunpack.c.h.bf16 %v1363_v35  ;;  %v1113_v61 = vunpack.c.h.bf16 %v1370_v40  ;;  %v1077_v62 = vunpack.c.h.bf16 %v1373_v41  ;;  %v1109_v63 = vunpack.c.h.bf16 %v1376_v42 }
  0x1c   : > { %v1088_v2 = vunpack.c.l.bf16 %v1383_v47  ;;  %v1120_v3 = vunpack.c.l.bf16 %v1390_v52 }
  0x1e   : > { %1170 = vmatmul.mubr.msk.bf16.gmra.mrb[4].mxu0 %vm371_vm1, %v1224_v13  ;;  %1186 = vmatmul.mubr.msk.bf16.gmra.mrb[4].mxu1 %vm371_vm1, %v1225_v14 }
  0x1f   : > { %1173 = vmatprep.mubr.msk.bf16.mxu0 %vm371_vm1, %v1226_v15  ;;  %1189 = vmatprep.mubr.msk.bf16.mxu1 %vm371_vm1, %v1227_v16 }
  0x26   : > { %1174 = vmatmul.mubr.msk.bf16.gmra.mrb[8].mxu0 %vm371_vm1, %v1228_v17  ;;  %1190 = vmatmul.mubr.msk.bf16.gmra.mrb[8].mxu1 %vm371_vm1, %v1229_v18  ;;  %v1117_v17 = vunpack.c.h.bf16 %v1396_v54 }
  0x27   : > { %1177 = vmatprep.mubr.msk.bf16.mxu0 %vm371_vm1, %v1230_v19  ;;  %1193 = vmatprep.mubr.msk.bf16.mxu1 %vm371_vm1, %v1231_v20 }
  0x2e   : > { %1178 = vmatmul.mubr.msk.bf16.gmra.mrb[12].mxu0 %vm371_vm1, %v1232_v21  ;;  %1194 = vmatmul.mubr.msk.bf16.gmra.mrb[12].mxu1 %vm371_vm1, %v1233_v22 }
  0xe9   : > { %v1167_v0 = vpop.f32.mrb[0].mxu0  ;;  %v1183_v1 = vpop.f32.mrb[0].mxu1 }
  0xea   : > { %v469_v6 = vadd.f32 %v1167_v0, %v1401_v55  ;;  %v533_v7 = vadd.f32 %v1183_v1, %v1401_v55  ;;  %v460_v8 = vpop.f32.mrb[1].mxu0  ;;  %v524_v9 = vpop.f32.mrb[1].mxu1 }
  0xeb   : > { %v461_v12 = vadd.f32 %v1401_v55, %v460_v8  ;;  %v525_v13 = vadd.f32 %v1401_v55, %v524_v9  ;;  %v1168_v14 = vpop.f32.mrb[2].mxu0  ;;  %v1184_v15 = vpop.f32.mrb[2].mxu1 }
  0xec   : > { %v589_v18 = vmax.f32 %v469_v6, 0.0  ;;  %v605_v19 = vmax.f32 %v533_v7, 0.0  ;;  %v472_v20 = vadd.f32 %v1168_v14, %v1401_v55  ;;  %v536_v21 = vadd.f32 %v1184_v15, %v1401_v55  ;;  %v463_v22 = vpop.f32.mrb[3].mxu0  ;;  %v527_v0 = vpop.f32.mrb[3].mxu1 }
  0xed   : > { %v587_v1 = vmax.f32 %v461_v12, 0.0  ;;  %v603_v11 = vmax.f32 %v525_v13, 0.0  ;;  %v464_v8 = vadd.f32 %v1401_v55, %v463_v22  ;;  %v528_v9 = vadd.f32 %v1401_v55, %v527_v0 }
  0xee   : > { %v685_v10 = vadd.f32 %v1064_v31, %v589_v18  ;;  %v701_v5 = vadd.f32 %v1096_v32, %v605_v19  ;;  %v590_v16 = vmax.f32 %v472_v20, 0.0  ;;  %v606_v4 = vmax.f32 %v536_v21, 0.0 }
  0xef   : > { %v683_v6 = vadd.f32 %v1060_v33, %v587_v1  ;;  %v699_v7 = vadd.f32 %v1092_v34, %v603_v11  ;;  %v588_v12 = vmax.f32 %v464_v8, 0.0  ;;  %v604_v13 = vmax.f32 %v528_v9, 0.0 }
  0xf0   : > { %v1028_v14 = vpack.c.bf16 %v685_v10, %v685_v10  ;;  %v1044_v31 = vpack.c.bf16 %v701_v5, %v701_v5  ;;  %v686_v32 = vadd.f32 %v1065_v36, %v590_v16  ;;  %v702_v15 = vadd.f32 %v1097_v37, %v606_v4 }
  0xf1   : > { %v1026_v18 = vpack.c.bf16 %v683_v6, %v683_v6  ;;  %v1042_v19 = vpack.c.bf16 %v699_v7, %v699_v7  ;;  %v684_v33 = vadd.f32 %v1061_v38, %v588_v12  ;;  %v700_v34 = vadd.f32 %v1093_v39, %v604_v13  ;;  %v1171_v11 = vpop.f32.mrb[4].mxu0  ;;  %v1187_v20 = vpop.f32.mrb[4].mxu1 }
  0xf2   : > { %846 = vst.msk [vmem:[%s1431_s11 + $0x8] sm:$0xf] %vm843_vm2, %v1028_v14  ;;  %862 = vst.msk [vmem:[%s1431_s11 + $0x48] sm:$0xf] %vm843_vm2, %v1044_v31  ;;  %v1029_v23 = vpack.c.bf16 %v686_v32, %v686_v32  ;;  %v1045_v24 = vpack.c.bf16 %v702_v15, %v702_v15  ;;  %v485_v36 = vadd.f32 %v1171_v11, %v1401_v55  ;;  %v476_v4 = vpop.f32.mrb[5].mxu0  ;;  %v540_v25 = vpop.f32.mrb[5].mxu1 }
  0xf3   : > { %v549_v37 = vadd.f32 %v1187_v20, %v1401_v55  ;;  %844 = vst.msk [vmem:[%s1431_s11] sm:$0xf] %vm843_vm2, %v1026_v18  ;;  %860 = vst.msk [vmem:[%s1431_s11 + $0x40] sm:$0xf] %vm843_vm2, %v1042_v19  ;;  %v1027_v26 = vpack.c.bf16 %v684_v33, %v684_v33  ;;  %v1043_v38 = vpack.c.bf16 %v700_v34, %v700_v34  ;;  %v1172_v10 = vpop.f32.mrb[6].mxu0  ;;  %v1188_v16 = vpop.f32.mrb[6].mxu1 }
  0xf4   : > { %v477_v39 = vadd.f32 %v1401_v55, %v476_v4  ;;  %v541_v5 = vadd.f32 %v1401_v55, %v540_v25  ;;  %847 = vst.msk [vmem:[%s1431_s11 + $0xc] sm:$0xf] %vm843_vm2, %v1029_v23  ;;  %863 = vst.msk [vmem:[%s1431_s11 + $0x4c] sm:$0xf] %vm843_vm2, %v1045_v24  ;;  %v593_v21 = vmax.f32 %v485_v36, 0.0  ;;  %v488_v0 = vadd.f32 %v1172_v10, %v1401_v55  ;;  %v479_v8 = vpop.f32.mrb[7].mxu0 }
  0xf5   : > { %v609_v22 = vmax.f32 %v549_v37, 0.0  ;;  %v552_v1 = vadd.f32 %v1188_v16, %v1401_v55  ;;  %v543_v9 = vpop.f32.mrb[7].mxu1  ;;  %845 = vst.msk [vmem:[%s1431_s11 + $0x4] sm:$0xf] %vm843_vm2, %v1027_v26  ;;  %861 = vst.msk [vmem:[%s1431_s11 + $0x44] sm:$0xf] %vm843_vm2, %v1043_v38  ;;  %v480_v12 = vadd.f32 %v1401_v55, %v479_v8 }
  0xf6   : > { %v591_v6 = vmax.f32 %v477_v39, 0.0  ;;  %v607_v7 = vmax.f32 %v541_v5, 0.0  ;;  %v544_v13 = vadd.f32 %v1401_v55, %v543_v9  ;;  %v689_v14 = vadd.f32 %v1072_v43, %v593_v21 }
  0xf7   : > { %v705_v31 = vadd.f32 %v1104_v44, %v609_v22  ;;  %v594_v32 = vmax.f32 %v488_v0, 0.0  ;;  %v610_v15 = vmax.f32 %v552_v1, 0.0  ;;  %v592_v33 = vmax.f32 %v480_v12, 0.0 }
  0xf8   : > { %v687_v18 = vadd.f32 %v1068_v45, %v591_v6  ;;  %v703_v19 = vadd.f32 %v1100_v46, %v607_v7  ;;  %v608_v34 = vmax.f32 %v544_v13, 0.0  ;;  %v1032_v11 = vpack.c.bf16 %v689_v14, %v689_v14 }
  0xf9   : > { %v1048_v20 = vpack.c.bf16 %v705_v31, %v705_v31  ;;  %v690_v43 = vadd.f32 %v1073_v48, %v594_v32  ;;  %v706_v44 = vadd.f32 %v1105_v49, %v610_v15  ;;  %v688_v45 = vadd.f32 %v1069_v50, %v592_v33  ;;  %v1175_v36 = vpop.f32.mrb[8].mxu0  ;;  %v1191_v37 = vpop.f32.mrb[8].mxu1 }
  0xfa   : > { %v1030_v23 = vpack.c.bf16 %v687_v18, %v687_v18  ;;  %v1046_v24 = vpack.c.bf16 %v703_v19, %v703_v19  ;;  %v704_v46 = vadd.f32 %v1101_v51, %v608_v34  ;;  %850 = vst.msk [vmem:[%s1431_s11 + $0x18] sm:$0xf] %vm843_vm2, %v1032_v11  ;;  %v501_v48 = vadd.f32 %v1175_v36, %v1401_v55  ;;  %v492_v4 = vpop.f32.mrb[9].mxu0  ;;  %v556_v29 = vpop.f32.mrb[9].mxu1 }
  0xfb   : > { %866 = vst.msk [vmem:[%s1431_s11 + $0x58] sm:$0xf] %vm843_vm2, %v1048_v20  ;;  %v1033_v27 = vpack.c.bf16 %v690_v43, %v690_v43  ;;  %v1049_v28 = vpack.c.bf16 %v706_v44, %v706_v44  ;;  %v565_v49 = vadd.f32 %v1191_v37, %v1401_v55  ;;  %v1031_v30 = vpack.c.bf16 %v688_v45, %v688_v45  ;;  %v1176_v26 = vpop.f32.mrb[10].mxu0  ;;  %v1192_v38 = vpop.f32.mrb[10].mxu1 }
  0xfc   : > { %848 = vst.msk [vmem:[%s1431_s11 + $0x10] sm:$0xf] %vm843_vm2, %v1030_v23  ;;  %864 = vst.msk [vmem:[%s1431_s11 + $0x50] sm:$0xf] %vm843_vm2, %v1046_v24  ;;  %v1047_v50 = vpack.c.bf16 %v704_v46, %v704_v46  ;;  %v493_v51 = vadd.f32 %v1401_v55, %v492_v4  ;;  %v557_v25 = vadd.f32 %v1401_v55, %v556_v29  ;;  %v597_v39 = vmax.f32 %v501_v48, 0.0  ;;  %v495_v21 = vpop.f32.mrb[11].mxu0 }
  0xfd   : > { %851 = vst.msk [vmem:[%s1431_s11 + $0x1c] sm:$0xf] %vm843_vm2, %v1033_v27  ;;  %867 = vst.msk [vmem:[%s1431_s11 + $0x5c] sm:$0xf] %vm843_vm2, %v1049_v28  ;;  %v613_v5 = vmax.f32 %v565_v49, 0.0  ;;  %v504_v10 = vadd.f32 %v1176_v26, %v1401_v55  ;;  %v568_v16 = vadd.f32 %v1192_v38, %v1401_v55  ;;  %v559_v22 = vpop.f32.mrb[11].mxu1  ;;  %v496_v8 = vadd.f32 %v1401_v55, %v495_v21 }
  0xfe   : > { %849 = vst.msk [vmem:[%s1431_s11 + $0x14] sm:$0xf] %vm843_vm2, %v1031_v30  ;;  %865 = vst.msk [vmem:[%s1431_s11 + $0x54] sm:$0xf] %vm843_vm2, %v1047_v50  ;;  %v595_v0 = vmax.f32 %v493_v51, 0.0  ;;  %v611_v1 = vmax.f32 %v557_v25, 0.0  ;;  %v560_v9 = vadd.f32 %v1401_v55, %v559_v22  ;;  %v693_v6 = vadd.f32 %v1080_v56, %v597_v39 }
  0xff   : > { %v709_v7 = vadd.f32 %v1112_v57, %v613_v5  ;;  %v598_v12 = vmax.f32 %v504_v10, 0.0  ;;  %v614_v13 = vmax.f32 %v568_v16, 0.0  ;;  %v596_v32 = vmax.f32 %v496_v8, 0.0 }
 0x100   : > { %v691_v14 = vadd.f32 %v1076_v58, %v595_v0  ;;  %v707_v31 = vadd.f32 %v1108_v59, %v611_v1  ;;  %v612_v15 = vmax.f32 %v560_v9, 0.0  ;;  %v1036_v18 = vpack.c.bf16 %v693_v6, %v693_v6 }
 0x101   : > { %v1052_v19 = vpack.c.bf16 %v709_v7, %v709_v7  ;;  %v694_v56 = vadd.f32 %v1081_v60, %v598_v12  ;;  %v710_v57 = vadd.f32 %v1113_v61, %v614_v13  ;;  %v692_v58 = vadd.f32 %v1077_v62, %v596_v32  ;;  %v1179_v11 = vpop.f32.mrb[12].mxu0  ;;  %v1195_v20 = vpop.f32.mrb[12].mxu1 }
 0x102   : > { %v1034_v33 = vpack.c.bf16 %v691_v14, %v691_v14  ;;  %v1050_v34 = vpack.c.bf16 %v707_v31, %v707_v31  ;;  %v708_v59 = vadd.f32 %v1109_v63, %v612_v15  ;;  %854 = vst.msk [vmem:[%s1431_s11 + $0x28] sm:$0xf] %vm843_vm2, %v1036_v18  ;;  %v517_v60 = vadd.f32 %v1179_v11, %v1401_v55  ;;  %v508_v43 = vpop.f32.mrb[13].mxu0  ;;  %v572_v41 = vpop.f32.mrb[13].mxu1 }
 0x103   : > { %870 = vst.msk [vmem:[%s1431_s11 + $0x68] sm:$0xf] %vm843_vm2, %v1052_v19  ;;  %v1037_v35 = vpack.c.bf16 %v694_v56, %v694_v56  ;;  %v1053_v40 = vpack.c.bf16 %v710_v57, %v710_v57  ;;  %v581_v61 = vadd.f32 %v1195_v20, %v1401_v55  ;;  %v1035_v42 = vpack.c.bf16 %v692_v58, %v692_v58  ;;  %v1180_v23 = vpop.f32.mrb[14].mxu0  ;;  %v1196_v24 = vpop.f32.mrb[14].mxu1 }
 0x104   : > { %852 = vst.msk [vmem:[%s1431_s11 + $0x20] sm:$0xf] %vm843_vm2, %v1034_v33  ;;  %868 = vst.msk [vmem:[%s1431_s11 + $0x60] sm:$0xf] %vm843_vm2, %v1050_v34  ;;  %v1051_v62 = vpack.c.bf16 %v708_v59, %v708_v59  ;;  %v509_v63 = vadd.f32 %v1401_v55, %v508_v43  ;;  %v573_v44 = vadd.f32 %v1401_v55, %v572_v41  ;;  %v601_v45 = vmax.f32 %v517_v60, 0.0  ;;  %v511_v27 = vpop.f32.mrb[15].mxu0 }
 0x105   : > { %855 = vst.msk [vmem:[%s1431_s11 + $0x2c] sm:$0xf] %vm843_vm2, %v1037_v35  ;;  %871 = vst.msk [vmem:[%s1431_s11 + $0x6c] sm:$0xf] %vm843_vm2, %v1053_v40  ;;  %v617_v46 = vmax.f32 %v581_v61, 0.0  ;;  %v520_v36 = vadd.f32 %v1180_v23, %v1401_v55  ;;  %v584_v37 = vadd.f32 %v1196_v24, %v1401_v55  ;;  %v575_v28 = vpop.f32.mrb[15].mxu1  ;;  %v512_v4 = vadd.f32 %v1401_v55, %v511_v27 }
 0x106   : > { %853 = vst.msk [vmem:[%s1431_s11 + $0x24] sm:$0xf] %vm843_vm2, %v1035_v42  ;;  %869 = vst.msk [vmem:[%s1431_s11 + $0x64] sm:$0xf] %vm843_vm2, %v1051_v62  ;;  %v599_v48 = vmax.f32 %v509_v63, 0.0  ;;  %v615_v49 = vmax.f32 %v573_v44, 0.0  ;;  %v576_v29 = vadd.f32 %v1401_v55, %v575_v28  ;;  %v697_v30 = vadd.f32 %v1088_v2, %v601_v45 }
 0x107   : > { %v713_v50 = vadd.f32 %v1120_v3, %v617_v46  ;;  %v602_v51 = vmax.f32 %v520_v36, 0.0  ;;  %v618_v25 = vmax.f32 %v584_v37, 0.0  ;;  %v1589_v26 = vunpack.c.l.bf16 %v1393_v53 }
 0x108   : > { %v1590_v39 = vunpack.c.l.bf16 %v1396_v54  ;;  %v600_v10 = vmax.f32 %v512_v4, 0.0  ;;  %v616_v55 = vmax.f32 %v576_v29, 0.0  ;;  %v1040_v16 = vpack.c.bf16 %v697_v30, %v697_v30 }
 0x109   : > { %v695_v38 = vadd.f32 %v1589_v26, %v599_v48  ;;  %v1056_v2 = vpack.c.bf16 %v713_v50, %v713_v50  ;;  %v1591_v21 = vunpack.c.h.bf16 %v1383_v47  ;;  %v1592_v22 = vunpack.c.h.bf16 %v1390_v52 }
 0x10a   : > { %v711_v5 = vadd.f32 %v1590_v39, %v615_v49  ;;  %v1593_v9 = vunpack.c.h.bf16 %v1393_v53  ;;  %v712_v7 = vadd.f32 %v1117_v17, %v616_v55  ;;  %858 = vst.msk [vmem:[%s1431_s11 + $0x38] sm:$0xf] %vm843_vm2, %v1040_v16 }
 0x10b   : > { %v698_v3 = vadd.f32 %v1591_v21, %v602_v51  ;;  %v714_v0 = vadd.f32 %v1592_v22, %v618_v25  ;;  %v1038_v1 = vpack.c.bf16 %v695_v38, %v695_v38  ;;  %874 = vst.msk [vmem:[%s1431_s11 + $0x78] sm:$0xf] %vm843_vm2, %v1056_v2 }
 0x10c   : > { %v1054_v8 = vpack.c.bf16 %v711_v5, %v711_v5  ;;  %v696_v6 = vadd.f32 %v1593_v9, %v600_v10  ;;  %v1055_v13 = vpack.c.bf16 %v712_v7, %v712_v7 }
 0x10d   : > { %v1041_v47 = vpack.c.bf16 %v698_v3, %v698_v3  ;;  %v1057_v12 = vpack.c.bf16 %v714_v0, %v714_v0  ;;  %856 = vst.msk [vmem:[%s1431_s11 + $0x30] sm:$0xf] %vm843_vm2, %v1038_v1 }
 0x10e   : > { %872 = vst.msk [vmem:[%s1431_s11 + $0x70] sm:$0xf] %vm843_vm2, %v1054_v8  ;;  %v1039_v52 = vpack.c.bf16 %v696_v6, %v696_v6  ;;  %873 = vst.msk [vmem:[%s1431_s11 + $0x74] sm:$0xf] %vm843_vm2, %v1055_v13 }
 0x10f   : > { %859 = vst.msk [vmem:[%s1431_s11 + $0x3c] sm:$0xf] %vm843_vm2, %v1041_v47  ;;  %875 = vst.msk [vmem:[%s1431_s11 + $0x7c] sm:$0xf] %vm843_vm2, %v1057_v12 }
 0x110   : > { %857 = vst.msk [vmem:[%s1431_s11 + $0x34] sm:$0xf] %vm843_vm2, %v1039_v52 }
 0x111 PF: > { %s14_s15 = sadd.s32 1, %s1240_s15  }
 0x112   : > { %p11_p4 = scmp.ge.s32.totalorder %s14_s15, 4  }
 0x114   :  { %13 = sbr.rel (!%p11_p4) target bundleno = 1 (0x1), region = 69 }

// kernel: disnet_forward.10
= control target key start
LH: loop header
LB: loop body
LE: loop exit
PB: predicated region body
PF: predicated region fallthrough
CT: control target
= control target key end

     0   :  { %s1924_s12 = smov 0   ;;  %s2215_s0 = inlined_call_operand.vmem [shape: bf16[128,1152], index: 0, kind: input, shape index: {}]   ;;  %s2216_s1 = inlined_call_operand.vmem [shape: bf16[1152,64], index: 1, kind: input, shape index: {}]   ;;  %s2217_s2 = inlined_call_operand.vmem [shape: f32[1,64], index: 2, kind: input, shape index: {}]   ;;  %s2218_s3 = inlined_call_operand.vmem [shape: bf16[128,64], index: 3, kind: output, shape index: {}]  }
   0x1 LB: > { %s1415_s13 = sadd.s32 4294967295, %s1902_s12   ;;  %p1419_p0 = scmp.ge.s32.totalorder %s1902_s12, 1  ;;  %s1902_s12 = sphi %s1924_s12, %s13_s12  }
   0x2   : > { %p139_p1 = scmp.lt.s32.totalorder %s1902_s12, 3 }
   0x4   : > { %p140_p2 = pnand %p1419_p0, %p139_p1 }
   0x5   : > { %v1772_v0 = vld [vmem:[%s2216_s1 + $0x40] sm:$0xff] (!%p140_p2)   ;;  %v1776_v4 = vld [vmem:[%s2216_s1 + $0x48] sm:$0xff] (!%p140_p2)   ;;  %v1780_v8 = vld [vmem:[%s2216_s1 + $0x50] sm:$0xff] (!%p140_p2)   ;;  %s1420_s19 = sshll.u32 (!%p140_p2), %s1415_s13, 3  ;;  %vm1350_vm0 = vcmask (!%p140_p2), 519168  }
   0x6   : > { %143 = sbr.rel (%p140_p2) target bundleno = 327 (0x147), region = 32  ;;  %v1773_v1 = vld [vmem:[%s2216_s1 + $0xc0] sm:$0xff] (!%p140_p2)   ;;  %1551 = vmatprep.subr.bf16.mxu0 (!%p140_p2), %v1772_v0  ;;  %v1777_v5 = vld [vmem:[%s2216_s1 + $0xc8] sm:$0xff] (!%p140_p2)   ;;  %v1781_v9 = vld [vmem:[%s2216_s1 + $0xd0] sm:$0xff] (!%p140_p2)   ;;  %p165_p3 = scmp.lt.s32.totalorder (!%p140_p2), %s1420_s19, 15 }
   0x7   : > { %v1774_v2 = vld [vmem:[%s2216_s1] sm:$0xff] (!%p140_p2)   ;;  %1591 = vmatprep.subr.bf16.mxu1 (!%p140_p2), %v1773_v1  ;;  %v1778_v6 = vld [vmem:[%s2216_s1 + $0x8] sm:$0xff] (!%p140_p2)   ;;  %v1782_v10 = vld [vmem:[%s2216_s1 + $0x10] sm:$0xff] (!%p140_p2)  }
   0x8   : > { %v1775_v3 = vld [vmem:[%s2216_s1 + $0x80] sm:$0xff] (!%p140_p2)   ;;  %1552 = vmatpush3.bf16.msra.mxu0 (!%p140_p2), %v1774_v2  ;;  %v1779_v7 = vld [vmem:[%s2216_s1 + $0x88] sm:$0xff] (!%p140_p2)   ;;  %v1783_v11 = vld [vmem:[%s2216_s1 + $0x90] sm:$0xff] (!%p140_p2)  }
   0x9   : > { %1592 = vmatpush3.bf16.msra.mxu1 (!%p140_p2), %v1775_v3  ;;  %1553 = vmatprep.subr.bf16.mxu0 (!%p140_p2), %v1776_v4  ;;  %v1784_v12 = vld [vmem:[%s2216_s1 + $0x58] sm:$0xff] (!%p140_p2)   ;;  %v1788_v16 = vld [vmem:[%s2216_s1 + $0x60] sm:$0xff] (!%p140_p2)   ;;  %v1792_v20 = vld [vmem:[%s2216_s1 + $0x68] sm:$0xff] (!%p140_p2)  }
   0xa   : > { %1593 = vmatprep.subr.bf16.mxu1 (!%p140_p2), %v1777_v5  ;;  %v1785_v13 = vld [vmem:[%s2216_s1 + $0xd8] sm:$0xff] (!%p140_p2)   ;;  %v1789_v17 = vld [vmem:[%s2216_s1 + $0xe0] sm:$0xff] (!%p140_p2)   ;;  %v1793_v21 = vld [vmem:[%s2216_s1 + $0xe8] sm:$0xff] (!%p140_p2)  }
   0xb   : > { %v1786_v14 = vld [vmem:[%s2216_s1 + $0x18] sm:$0xff] (!%p140_p2)   ;;  %v1790_v18 = vld [vmem:[%s2216_s1 + $0x20] sm:$0xff] (!%p140_p2)   ;;  %v1794_v22 = vld [vmem:[%s2216_s1 + $0x28] sm:$0xff] (!%p140_p2)  }
   0xc   : > { %1554 = vmatpush3.bf16.msra.mxu0 (!%p140_p2), %v1778_v6  ;;  %v1787_v15 = vld [vmem:[%s2216_s1 + $0x98] sm:$0xff] (!%p140_p2)   ;;  %v1791_v19 = vld [vmem:[%s2216_s1 + $0xa0] sm:$0xff] (!%p140_p2)   ;;  %v1795_v23 = vld [vmem:[%s2216_s1 + $0xa8] sm:$0xff] (!%p140_p2)  }
   0xd   : > { %1594 = vmatpush3.bf16.msra.mxu1 %v1779_v7  ;;  %1555 = vmatprep.subr.bf16.mxu0 %v1780_v8  ;;  %s2220_s19 = smov (!%p165_p3, %s1420_s19), 15  ;;  %v1796_v24 = vld [vmem:[%s2216_s1 + $0x70] sm:$0xff]   ;;  %v1800_v28 = vld [vmem:[%s2216_s1 + $0x78] sm:$0xff]   ;;  %v1810_v36 = vld [vmem:[%s2216_s1 + $0x140] sm:$0xff]  }
   0xe   : > { %1595 = vmatprep.subr.bf16.mxu1 %v1781_v9  ;;  %v1797_v25 = vld [vmem:[%s2216_s1 + $0xf0] sm:$0xff]   ;;  %s1763_s16 = smul.u32 36, %s2220_s19  ;;  %v1801_v29 = vld [vmem:[%s2216_s1 + $0xf8] sm:$0xff]   ;;  %v1811_v37 = vld [vmem:[%s2216_s1 + $0x1c0] sm:$0xff]  }
   0xf   : > { %v1798_v26 = vld [vmem:[%s2216_s1 + $0x30] sm:$0xff]   ;;  %v1802_v30 = vld [vmem:[%s2216_s1 + $0x38] sm:$0xff]   ;;  %v1812_v38 = vld [vmem:[%s2216_s1 + $0x100] sm:$0xff]  }
  0x10   : > { %1556 = vmatpush3.bf16.msra.mxu0 %v1782_v10  ;;  %v1799_v27 = vld [vmem:[%s2216_s1 + $0xb0] sm:$0xff]   ;;  %s2030_s13 = scalar_lea.vmem %s2215_s0, %s1763_s16  ;;  %v1803_v31 = vld [vmem:[%s2216_s1 + $0xb8] sm:$0xff]   ;;  %v1813_v39 = vld [vmem:[%s2216_s1 + $0x180] sm:$0xff]  }
  0x11   : > { %1596 = vmatpush3.bf16.msra.mxu1 %v1783_v11  ;;  %1557 = vmatprep.subr.bf16.mxu0 %v1784_v12  ;;  %v1804_v32 = vld [vmem:[%s2030_s13] ss:$36 sps:$4 sm:$0xff]   ;;  %v1807_v34 = vld [vmem:[%s2030_s13 + $0x8] ss:$36 sps:$4 sm:$0xff]   ;;  %v1820_v45 = vld [vmem:[%s2030_s13 + $0x54] ss:$36 sps:$4 sm:$0xff]  }
  0x12   : > { %1597 = vmatprep.subr.bf16.mxu1 %v1785_v13  ;;  %v1806_v33 = vld [vmem:[%s2030_s13 + $0x4] ss:$36 sps:$4 sm:$0xff]   ;;  %v1809_v35 = vld [vmem:[%s2030_s13 + $0xc] ss:$36 sps:$4 sm:$0xff]   ;;  %v1828_v52 = vld [vmem:[%s2216_s1 + $0x158] sm:$0xff]  }
  0x13   : > { %1017 = vmatprep.mubr.bf16.mxu0 %v1806_v33  ;;  %1082 = vmatprep.mubr.bf16.mxu1 %v1809_v35  ;;  %v1814_v40 = vld [vmem:[%s2216_s1 + $0x148] sm:$0xff]   ;;  %v1823_v47 = vld [vmem:[%s2030_s13 + $0x50] ss:$36 sps:$4 sm:$0xff]   ;;  %v1829_v53 = vld [vmem:[%s2216_s1 + $0x1d8] sm:$0xff]  }
  0x14   : > { %1558 = vmatpush3.bf16.msra.mxu0 %v1786_v14  ;;  %v1815_v41 = vld [vmem:[%s2216_s1 + $0x1c8] sm:$0xff]   ;;  %v1824_v48 = vld [vmem:[%s2216_s1 + $0x150] sm:$0xff]   ;;  %v1830_v54 = vld [vmem:[%s2216_s1 + $0x118] sm:$0xff]  }
  0x15   : > { %1598 = vmatpush3.bf16.msra.mxu1 %v1787_v15  ;;  %1559 = vmatprep.subr.bf16.mxu0 %v1788_v16  ;;  %v1816_v42 = vld [vmem:[%s2216_s1 + $0x108] sm:$0xff]   ;;  %v1825_v49 = vld [vmem:[%s2216_s1 + $0x1d0] sm:$0xff]   ;;  %v1831_v55 = vld [vmem:[%s2216_s1 + $0x198] sm:$0xff]  }
  0x16   : > { %1599 = vmatprep.subr.bf16.mxu1 %v1789_v17  ;;  %v1817_v43 = vld [vmem:[%s2216_s1 + $0x188] sm:$0xff]   ;;  %v1826_v50 = vld [vmem:[%s2216_s1 + $0x110] sm:$0xff]   ;;  %v1834_v57 = vld [vmem:[%s2030_s13 + $0x9c] ss:$36 sps:$4 sm:$0xff]  }
  0x17   : > { %v1818_v44 = vld [vmem:[%s2030_s13 + $0x4c] ss:$36 sps:$4 sm:$0xff]   ;;  %v1832_v56 = vld [vmem:[%s2030_s13 + $0x94] ss:$36 sps:$4 sm:$0xff]   ;;  %v1838_v60 = vld [vmem:[%s2216_s1 + $0x160] sm:$0xff]  }
  0x18   : > { %1560 = vmatpush3.bf16.msra.mxu0 %v1790_v18  ;;  %v1822_v46 = vld [vmem:[%s2030_s13 + $0x48] ss:$36 sps:$4 sm:$0xff]   ;;  %v1827_v51 = vld [vmem:[%s2216_s1 + $0x190] sm:$0xff]   ;;  %v1837_v59 = vld [vmem:[%s2030_s13 + $0x98] ss:$36 sps:$4 sm:$0xff]  }
  0x19   : > { %1600 = vmatpush3.bf16.msra.mxu1 %v1791_v19  ;;  %1561 = vmatprep.subr.bf16.mxu0 %v1792_v20  ;;  %v1836_v58 = vld [vmem:[%s2030_s13 + $0x90] ss:$36 sps:$4 sm:$0xff]   ;;  %v1839_v61 = vld [vmem:[%s2216_s1 + $0x1e0] sm:$0xff]   ;;  %v1842_v0 = vld [vmem:[%s2216_s1 + $0x168] sm:$0xff]  }
  0x1a   : > { %1601 = vmatprep.subr.bf16.mxu1 %v1793_v21  ;;  %v1840_v62 = vld [vmem:[%s2216_s1 + $0x120] sm:$0xff]   ;;  %v1843_v1 = vld [vmem:[%s2216_s1 + $0x1e8] sm:$0xff]   ;;  %v1850_v6 = vld [vmem:[%s2030_s13 + $0xd8] ss:$36 sps:$4 sm:$0xff]  }
  0x1b   : > { %v1841_v63 = vld [vmem:[%s2216_s1 + $0x1a0] sm:$0xff]   ;;  %v1844_v2 = vld [vmem:[%s2216_s1 + $0x128] sm:$0xff]   ;;  %v1852_v8 = vld [vmem:[%s2216_s1 + $0x170] sm:$0xff]  }
  0x1c   : > { %1562 = vmatpush3.bf16.msra.mxu0 %v1794_v22  ;;  %v1845_v3 = vld [vmem:[%s2216_s1 + $0x1a8] sm:$0xff]   ;;  %v1846_v4 = vld [vmem:[%s2030_s13 + $0xdc] ss:$36 sps:$4 sm:$0xff]   ;;  %v1853_v9 = vld [vmem:[%s2216_s1 + $0x1f0] sm:$0xff]  }
  0x1d   : > { %1602 = vmatpush3.bf16.msra.mxu1 %v1795_v23  ;;  %1563 = vmatprep.subr.bf16.mxu0 %v1796_v24  ;;  %v1848_v5 = vld [vmem:[%s2030_s13 + $0xe4] ss:$36 sps:$4 sm:$0xff]   ;;  %v1854_v10 = vld [vmem:[%s2216_s1 + $0x130] sm:$0xff]   ;;  %v1856_v12 = vld [vmem:[%s2216_s1 + $0x178] sm:$0xff]  }
  0x1e   : > { %1603 = vmatprep.subr.bf16.mxu1 %v1797_v25  ;;  %v1851_v7 = vld [vmem:[%s2030_s13 + $0xe0] ss:$36 sps:$4 sm:$0xff]   ;;  %v1855_v11 = vld [vmem:[%s2216_s1 + $0x1b0] sm:$0xff]   ;;  %v1857_v13 = vld [vmem:[%s2216_s1 + $0x1f8] sm:$0xff]  }
  0x1f   : > { %v1858_v14 = vld [vmem:[%s2216_s1 + $0x138] sm:$0xff]   ;;  %v1860_v16 = vld [vmem:[%s2030_s13 + $0x10] ss:$36 sps:$4 sm:$0xff]   ;;  %v1866_v20 = vld [vmem:[%s2216_s1 + $0x200] sm:$0xff]  }
  0x20   : > { %1564 = vmatpush3.bf16.msra.mxu0 %v1798_v26  ;;  %v1859_v15 = vld [vmem:[%s2216_s1 + $0x1b8] sm:$0xff]   ;;  %v1867_v21 = vld [vmem:[%s2216_s1 + $0x208] sm:$0xff]   ;;  %v1873_v25 = vld [vmem:[%s2030_s13 + $0x60] ss:$36 sps:$4 sm:$0xff]  }
  0x21   : > { %1604 = vmatpush3.bf16.msra.mxu1 %v1799_v27  ;;  %1565 = vmatprep.subr.bf16.mxu0 %v1800_v28  ;;  %v1862_v17 = vld [vmem:[%s2030_s13 + $0x14] ss:$36 sps:$4 sm:$0xff]   ;;  %v1865_v19 = vld [vmem:[%s2030_s13 + $0x1c] ss:$36 sps:$4 sm:$0xff]   ;;  %v1870_v23 = vld [vmem:[%s2030_s13 + $0x64] ss:$36 sps:$4 sm:$0xff]  }
  0x22   : > { %1605 = vmatprep.subr.bf16.mxu1 %v1801_v29  ;;  %v1863_v18 = vld [vmem:[%s2030_s13 + $0x18] ss:$36 sps:$4 sm:$0xff]   ;;  %v1874_v26 = vld [vmem:[%s2216_s1 + $0x210] sm:$0xff]   ;;  %v1876_v27 = vld [vmem:[%s2030_s13 + $0xa4] ss:$36 sps:$4 sm:$0xff]  }
  0x23   : > { %v1868_v22 = vld [vmem:[%s2030_s13 + $0x5c] ss:$36 sps:$4 sm:$0xff]   ;;  %v1878_v28 = vld [vmem:[%s2030_s13 + $0xac] ss:$36 sps:$4 sm:$0xff]  }
  0x24   : > { %1566 = vmatpush3.bf16.msra.mxu0 %v1802_v30  ;;  %v1872_v24 = vld [vmem:[%s2030_s13 + $0x58] ss:$36 sps:$4 sm:$0xff]   ;;  %v1880_v30 = vld [vmem:[%s2030_s13 + $0xa0] ss:$36 sps:$4 sm:$0xff]   ;;  %v1884_v33 = vld [vmem:[%s2030_s13 + $0xec] ss:$36 sps:$4 sm:$0xff]  }
  0x25   : > { %1606 = vmatpush3.bf16.msra.mxu1 %v1803_v31  ;;  %1631 = vmatprep.subr.bf16.mxu0 %v1810_v36  ;;  %v1875_v29 = vld [vmem:[%s2216_s1 + $0x218] sm:$0xff]   ;;  %v1881_v31 = vld [vmem:[%s2030_s13 + $0xa8] ss:$36 sps:$4 sm:$0xff]  }
  0x26   : > { %1671 = vmatprep.subr.bf16.mxu1 %v1811_v37  ;;  %v1883_v35 = vld [vmem:[%s2216_s1 + $0x228] sm:$0xff]   ;;  %v1890_v37 = vld [vmem:[%s2216_s1 + $0x230] sm:$0xff]  }
  0x27   : > { %1018 = vmatmul.mubr.bf16.vlgmr.msra.gmra.mrb[0].mxu0 %v1804_v32  ;;  %v1882_v32 = vld [vmem:[%s2216_s1 + $0x220] sm:$0xff]   ;;  %v1888_v36 = vld [vmem:[%s2030_s13 + $0xe8] ss:$36 sps:$4 sm:$0xff]  }
  0x28   : > { %1083 = vmatmul.mubr.bf16.vlgmr.msra.gmra.mrb[0].mxu1 %v1807_v34  ;;  %1632 = vmatpush3.bf16.msra.mxu0 %v1812_v38  ;;  %v1886_v34 = vld [vmem:[%s2030_s13 + $0xf4] ss:$36 sps:$4 sm:$0xff]  }
  0x29   : > { %1672 = vmatpush3.bf16.msra.mxu1 %v1813_v39  ;;  %1633 = vmatprep.subr.bf16.mxu0 %v1814_v40  ;;  %v1889_v38 = vld [vmem:[%s2030_s13 + $0xf0] ss:$36 sps:$4 sm:$0xff]   ;;  %v1892_v39 = vld [vmem:[%s2030_s13 + $0x20] ss:$36 sps:$4 sm:$0xff]  }
  0x2a   : > { %1673 = vmatprep.subr.bf16.mxu1 %v1815_v41  ;;  %1025 = vmatprep.mubr.bf16.mxu0 %v1818_v44  ;;  %v1893_v40 = vld [vmem:[%s2030_s13 + $0xb0] ss:$36 sps:$4 sm:$0xff]   ;;  %v1891_v41 = vld [vmem:[%s2216_s1 + $0x238] sm:$0xff]  }
  0x2b   : > { %1090 = vmatprep.mubr.bf16.mxu1 %v1820_v45 }
  0x2c   : > { %1634 = vmatpush3.bf16.msra.mxu0 %v1816_v42  ;;  %v1894_v42 = vld [vmem:[%s2030_s13 + $0x68] ss:$36 sps:$4 sm:$0xff]  }
  0x2d   : > { %1674 = vmatpush3.bf16.msra.mxu1 %v1817_v43  ;;  %1635 = vmatprep.subr.bf16.mxu0 %v1824_v48  ;;  %v1895_v43 = vld [vmem:[%s2030_s13 + $0xf8] ss:$36 sps:$4 sm:$0xff]   ;;  %s1423_s13 = sshll.u32 %s2220_s19, 2 }
  0x2e   : > { %1675 = vmatprep.subr.bf16.mxu1 %v1825_v49  ;;  %s175_s20 = scalar_lea.vmem %s2218_s3, %s1423_s13 }
  0x2f   : > { %1026 = vmatmul.mubr.bf16.gmra.mrb[4].mxu0 %v1822_v46  ;;  %v1424_v46 = vld [vmem:[%s2217_s2] ss:$0 sm:$0xff] }
  0x30   : > { %1091 = vmatmul.mubr.bf16.gmra.mrb[4].mxu1 %v1823_v47  ;;  %1636 = vmatpush3.bf16.msra.mxu0 %v1826_v50 }
  0x31   : > { %1676 = vmatpush3.bf16.msra.mxu1 %v1827_v51  ;;  %1637 = vmatprep.subr.bf16.mxu0 %v1828_v52 }
  0x32   : > { %1677 = vmatprep.subr.bf16.mxu1 %v1829_v53  ;;  %1033 = vmatprep.mubr.bf16.mxu0 %v1832_v56 }
  0x33   : > { %1098 = vmatprep.mubr.bf16.mxu1 %v1834_v57 }
  0x34   : > { %1638 = vmatpush3.bf16.msra.mxu0 %v1830_v54 }
  0x35   : > { %1678 = vmatpush3.bf16.msra.mxu1 %v1831_v55  ;;  %1639 = vmatprep.subr.bf16.mxu0 %v1838_v60 }
  0x36   : > { %1679 = vmatprep.subr.bf16.mxu1 %v1839_v61 }
  0x37   : > { %1034 = vmatmul.mubr.bf16.gmra.mrb[8].mxu0 %v1836_v58 }
  0x38   : > { %1099 = vmatmul.mubr.bf16.gmra.mrb[8].mxu1 %v1837_v59  ;;  %1640 = vmatpush3.bf16.msra.mxu0 %v1840_v62 }
  0x39   : > { %1680 = vmatpush3.bf16.msra.mxu1 %v1841_v63  ;;  %1641 = vmatprep.subr.bf16.mxu0 %v1842_v0 }
  0x3a   : > { %1681 = vmatprep.subr.bf16.mxu1 %v1843_v1  ;;  %1041 = vmatprep.mubr.bf16.mxu0 %v1846_v4 }
  0x3b   : > { %1106 = vmatprep.mubr.bf16.mxu1 %v1848_v5 }
  0x3c   : > { %1642 = vmatpush3.bf16.msra.mxu0 %v1844_v2 }
  0x3d   : > { %1682 = vmatpush3.bf16.msra.mxu1 %v1845_v3  ;;  %1643 = vmatprep.subr.bf16.mxu0 %v1852_v8 }
  0x3e   : > { %1683 = vmatprep.subr.bf16.mxu1 %v1853_v9 }
  0x3f   : > { %1042 = vmatmul.mubr.bf16.gmra.mrb[12].mxu0 %v1850_v6 }
  0x40   : > { %1107 = vmatmul.mubr.bf16.gmra.mrb[12].mxu1 %v1851_v7  ;;  %1644 = vmatpush3.bf16.msra.mxu0 %v1854_v10 }
  0x41   : > { %1684 = vmatpush3.bf16.msra.mxu1 %v1855_v11  ;;  %1645 = vmatprep.subr.bf16.mxu0 %v1856_v12 }
  0x42   : > { %1685 = vmatprep.subr.bf16.mxu1 %v1857_v13  ;;  %1147 = vmatprep.mubr.bf16.mxu0 %v1862_v17 }
  0x43   : > { %1212 = vmatprep.mubr.bf16.mxu1 %v1865_v19 }
  0x44   : > { %1646 = vmatpush3.bf16.msra.mxu0 %v1858_v14 }
  0x45   : > { %1686 = vmatpush3.bf16.msra.mxu1 %v1859_v15  ;;  %1723 = vmatprep.subr.bf16.mxu0 %v1866_v20 }
  0x46   : > { %1747 = vmatprep.subr.bf16.mxu1 %v1866_v20 }
  0x47   : > { %1148 = vmatmul.mubr.bf16.vlgmr.msra.gmra.mrb[16].mxu0 %v1860_v16 }
  0x48   : > { %1213 = vmatmul.mubr.bf16.vlgmr.msra.gmra.mrb[16].mxu1 %v1863_v18  ;;  %1724 = vmatpush3.bf16.msra.mxu0 %v1866_v20 }
  0x49   : > { %1755 = vmatpush3.bf16.msra.mxu1 %v1866_v20  ;;  %1725 = vmatprep.subr.bf16.mxu0 %v1867_v21 }
  0x4a   : > { %1748 = vmatprep.subr.bf16.mxu1 %v1867_v21  ;;  %1155 = vmatprep.mubr.bf16.mxu0 %v1868_v22 }
  0x4b   : > { %1220 = vmatprep.mubr.bf16.mxu1 %v1870_v23 }
  0x4c   : > { %1726 = vmatpush3.bf16.msra.mxu0 %v1867_v21 }
  0x4d   : > { %1756 = vmatpush3.bf16.msra.mxu1 %v1867_v21  ;;  %1727 = vmatprep.subr.bf16.mxu0 %v1874_v26 }
  0x4e   : > { %1749 = vmatprep.subr.bf16.mxu1 %v1874_v26 }
  0x4f   : > { %1156 = vmatmul.mubr.bf16.gmra.mrb[20].mxu0 %v1872_v24 }
  0x50   : > { %1221 = vmatmul.mubr.bf16.gmra.mrb[20].mxu1 %v1873_v25  ;;  %1163 = vmatprep.mubr.bf16.mxu0 %v1876_v27 }
  0x51   : > { %1728 = vmatpush3.bf16.msra.mxu0 %v1874_v26  ;;  %1228 = vmatprep.mubr.bf16.mxu1 %v1878_v28 }
  0x52   : > { %1757 = vmatpush3.bf16.msra.mxu1 %v1874_v26  ;;  %1729 = vmatprep.subr.bf16.mxu0 %v1875_v29 }
  0x53   : > { %1750 = vmatprep.subr.bf16.mxu1 %v1875_v29 }
  0x55   : > { %1730 = vmatpush3.bf16.msra.mxu0 %v1875_v29 }
  0x56   : > { %1758 = vmatpush3.bf16.msra.mxu1 %v1875_v29  ;;  %1731 = vmatprep.subr.bf16.mxu0 %v1882_v32 }
  0x57   : > { %1164 = vmatmul.mubr.bf16.gmra.mrb[24].mxu0 %v1880_v30  ;;  %1751 = vmatprep.subr.bf16.mxu1 %v1882_v32 }
  0x58   : > { %1229 = vmatmul.mubr.bf16.gmra.mrb[24].mxu1 %v1881_v31  ;;  %1171 = vmatprep.mubr.bf16.mxu0 %v1884_v33 }
  0x59   : > { %1732 = vmatpush3.bf16.msra.mxu0 %v1882_v32  ;;  %1236 = vmatprep.mubr.bf16.mxu1 %v1886_v34 }
  0x5a   : > { %1759 = vmatpush3.bf16.msra.mxu1 %v1882_v32  ;;  %1733 = vmatprep.subr.bf16.mxu0 %v1883_v35 }
  0x5b   : > { %1752 = vmatprep.subr.bf16.mxu1 %v1883_v35 }
  0x5d   : > { %1734 = vmatpush3.bf16.msra.mxu0 %v1883_v35 }
  0x5e   : > { %1760 = vmatpush3.bf16.msra.mxu1 %v1883_v35  ;;  %1735 = vmatprep.subr.bf16.mxu0 %v1890_v37 }
  0x5f   : > { %1172 = vmatmul.mubr.bf16.gmra.mrb[28].mxu0 %v1888_v36  ;;  %1753 = vmatprep.subr.bf16.mxu1 %v1890_v37 }
  0x60   : > { %1237 = vmatmul.mubr.bf16.gmra.mrb[28].mxu1 %v1889_v38  ;;  %1739 = vmatprep.mubr.bf16.mxu0 %v1892_v39 }
  0x61   : > { %1736 = vmatpush3.bf16.msra.mxu0 %v1890_v37  ;;  %1743 = vmatprep.mubr.bf16.mxu1 %v1893_v40 }
  0x62   : > { %1761 = vmatpush3.bf16.msra.mxu1 %v1890_v37  ;;  %1737 = vmatprep.subr.bf16.mxu0 %v1891_v41 }
  0x63   : > { %1754 = vmatprep.subr.bf16.mxu1 %v1891_v41 }
  0x65   : > { %1738 = vmatpush3.bf16.msra.mxu0 %v1891_v41 }
  0x66   : > { %1762 = vmatpush3.bf16.msra.mxu1 %v1891_v41 }
  0x68   : > { %1740 = vmatmul.mubr.bf16.vlgmr.msra.gmra.mrb[32].mxu0 %v1894_v42 }
  0x69   : > { %1744 = vmatmul.mubr.bf16.vlgmr.msra.gmra.mrb[32].mxu1 %v1895_v43 }
  0xfa   : > { %v1567_v44 = vpop.f32.mrb[0].mxu0 }
  0xfb   : > { %v1607_v45 = vpop.f32.mrb[0].mxu1  ;;  %v1568_v47 = vpop.f32.mrb[1].mxu0 }
  0xfc   : > { %v1569_v48 = vadd.f32 %v1568_v47, %v1567_v44  ;;  %v1608_v49 = vpop.f32.mrb[1].mxu1  ;;  %v1570_v50 = vpop.f32.mrb[2].mxu0 }
  0xfd   : > { %v1609_v51 = vadd.f32 %v1608_v49, %v1607_v45  ;;  %v1610_v52 = vpop.f32.mrb[2].mxu1  ;;  %v1571_v53 = vpop.f32.mrb[3].mxu0 }
  0xfe   : > { %v1020_v54 = vadd.f32 %v1569_v48, %v1424_v46  ;;  %v1572_v55 = vadd.f32 %v1571_v53, %v1570_v50  ;;  %v1611_v56 = vpop.f32.mrb[3].mxu1 }
  0xff   : > { %v1612_v57 = vadd.f32 %v1611_v56, %v1610_v52 }
 0x100   : > { %v1085_v58 = vadd.f32 %v1609_v51, %v1020_v54  ;;  %v1023_v59 = vadd.f32 %v1572_v55, %v1424_v46 }
 0x102   : > { %v1088_v60 = vadd.f32 %v1612_v57, %v1023_v59  ;;  %v1573_v61 = vpop.f32.mrb[4].mxu0 }
 0x103   : > { %v1613_v62 = vpop.f32.mrb[4].mxu1  ;;  %v1574_v63 = vpop.f32.mrb[5].mxu0 }
 0x104   : > { %v1575_v0 = vadd.f32 %v1574_v63, %v1573_v61  ;;  %v1614_v1 = vpop.f32.mrb[5].mxu1  ;;  %v1576_v2 = vpop.f32.mrb[6].mxu0 }
 0x105   : > { %v1615_v3 = vadd.f32 %v1614_v1, %v1613_v62  ;;  %v1616_v4 = vpop.f32.mrb[6].mxu1  ;;  %v1577_v5 = vpop.f32.mrb[7].mxu0 }
 0x106   : > { %v1028_v6 = vadd.f32 %v1575_v0, %v1424_v46  ;;  %v1578_v7 = vadd.f32 %v1577_v5, %v1576_v2  ;;  %v1617_v8 = vpop.f32.mrb[7].mxu1 }
 0x107   : > { %v1618_v9 = vadd.f32 %v1617_v8, %v1616_v4 }
 0x108   : > { %v1093_v10 = vadd.f32 %v1615_v3, %v1028_v6  ;;  %v1031_v11 = vadd.f32 %v1578_v7, %v1424_v46 }
 0x10a   : > { %v1096_v12 = vadd.f32 %v1618_v9, %v1031_v11  ;;  %v1579_v13 = vpop.f32.mrb[8].mxu0 }
 0x10b   : > { %v1619_v14 = vpop.f32.mrb[8].mxu1  ;;  %v1580_v15 = vpop.f32.mrb[9].mxu0 }
 0x10c   : > { %v1581_v16 = vadd.f32 %v1580_v15, %v1579_v13  ;;  %v1620_v17 = vpop.f32.mrb[9].mxu1  ;;  %v1582_v18 = vpop.f32.mrb[10].mxu0 }
 0x10d   : > { %v1621_v19 = vadd.f32 %v1620_v17, %v1619_v14  ;;  %v1622_v20 = vpop.f32.mrb[10].mxu1  ;;  %v1583_v21 = vpop.f32.mrb[11].mxu0 }
 0x10e   : > { %v1036_v22 = vadd.f32 %v1581_v16, %v1424_v46  ;;  %v1584_v23 = vadd.f32 %v1583_v21, %v1582_v18  ;;  %v1623_v24 = vpop.f32.mrb[11].mxu1 }
 0x10f   : > { %v1624_v25 = vadd.f32 %v1623_v24, %v1622_v20 }
 0x110   : > { %v1101_v26 = vadd.f32 %v1621_v19, %v1036_v22  ;;  %v1039_v27 = vadd.f32 %v1584_v23, %v1424_v46 }
 0x112   : > { %v1104_v28 = vadd.f32 %v1624_v25, %v1039_v27  ;;  %v1585_v29 = vpop.f32.mrb[12].mxu0 }
 0x113   : > { %v1625_v30 = vpop.f32.mrb[12].mxu1  ;;  %v1586_v31 = vpop.f32.mrb[13].mxu0 }
 0x114   : > { %v1626_v32 = vpop.f32.mrb[13].mxu1  ;;  %v1587_v33 = vadd.f32 %v1586_v31, %v1585_v29  ;;  %v1588_v35 = vpop.f32.mrb[14].mxu0 }
 0x115   : > { %v1627_v34 = vadd.f32 %v1626_v32, %v1625_v30  ;;  %v1628_v36 = vpop.f32.mrb[14].mxu1  ;;  %v1589_v37 = vpop.f32.mrb[15].mxu0 }
 0x116   : > { %v1629_v38 = vpop.f32.mrb[15].mxu1  ;;  %v1044_v39 = vadd.f32 %v1587_v33, %v1424_v46  ;;  %v1590_v40 = vadd.f32 %v1589_v37, %v1588_v35 }
 0x117   : > { %v1630_v41 = vadd.f32 %v1629_v38, %v1628_v36 }
 0x118   : > { %v1109_v42 = vadd.f32 %v1627_v34, %v1044_v39  ;;  %v1047_v43 = vadd.f32 %v1590_v40, %v1424_v46 }
 0x11a   : > { %v1112_v44 = vadd.f32 %v1630_v41, %v1047_v43  ;;  %v1647_v45 = vpop.f32.mrb[16].mxu0 }
 0x11b   : > { %v1648_v47 = vpop.f32.mrb[17].mxu0  ;;  %v1687_v48 = vpop.f32.mrb[16].mxu1 }
 0x11c   : > { %v1649_v49 = vadd.f32 %v1648_v47, %v1647_v45  ;;  %v1650_v50 = vpop.f32.mrb[18].mxu0  ;;  %v1688_v51 = vpop.f32.mrb[17].mxu1 }
 0x11d   : > { %v1651_v52 = vpop.f32.mrb[19].mxu0  ;;  %v1689_v54 = vadd.f32 %v1688_v51, %v1687_v48  ;;  %v1690_v55 = vpop.f32.mrb[18].mxu1 }
 0x11e   : > { %v1150_v53 = vadd.f32 %v1649_v49, %v1085_v58  ;;  %v1652_v56 = vadd.f32 %v1651_v52, %v1650_v50  ;;  %v1691_v57 = vpop.f32.mrb[19].mxu1 }
 0x11f   : > { %v1692_v61 = vadd.f32 %v1691_v57, %v1690_v55 }
 0x120   : > { %v1153_v59 = vadd.f32 %v1652_v56, %v1088_v60  ;;  %v1215_v62 = vadd.f32 %v1689_v54, %v1150_v53 }
 0x122   : > { %v1653_v63 = vpop.f32.mrb[20].mxu0  ;;  %v2197_v0 = vadd.f32 %v1692_v61, %v1153_v59 }
 0x123   : > { %v1654_v46 = vpop.f32.mrb[21].mxu0  ;;  %v1693_v1 = vpop.f32.mrb[20].mxu1 }
 0x124   : > { %v1655_v2 = vadd.f32 %v1654_v46, %v1653_v63  ;;  %v1656_v3 = vpop.f32.mrb[22].mxu0  ;;  %v1694_v4 = vpop.f32.mrb[21].mxu1 }
 0x125   : > { %v1657_v5 = vpop.f32.mrb[23].mxu0  ;;  %v1695_v7 = vadd.f32 %v1694_v4, %v1693_v1  ;;  %v1696_v8 = vpop.f32.mrb[22].mxu1 }
 0x126   : > { %v1158_v6 = vadd.f32 %v1655_v2, %v1093_v10  ;;  %v1658_v58 = vadd.f32 %v1657_v5, %v1656_v3  ;;  %v1697_v9 = vpop.f32.mrb[23].mxu1 }
 0x127   : > { %v1698_v13 = vadd.f32 %v1697_v9, %v1696_v8 }
 0x128   : > { %v1161_v11 = vadd.f32 %v1658_v58, %v1096_v12  ;;  %v1223_v14 = vadd.f32 %v1695_v7, %v1158_v6 }
 0x12a   : > { %v1659_v60 = vpop.f32.mrb[24].mxu0  ;;  %v1226_v15 = vadd.f32 %v1698_v13, %v1161_v11 }
 0x12b   : > { %v1660_v16 = vpop.f32.mrb[25].mxu0  ;;  %v1699_v17 = vpop.f32.mrb[24].mxu1 }
 0x12c   : > { %v1661_v18 = vadd.f32 %v1660_v16, %v1659_v60  ;;  %v1662_v19 = vpop.f32.mrb[26].mxu0  ;;  %v1700_v20 = vpop.f32.mrb[25].mxu1 }
 0x12d   : > { %v1663_v21 = vpop.f32.mrb[27].mxu0  ;;  %v1701_v23 = vadd.f32 %v1700_v20, %v1699_v17  ;;  %v1702_v24 = vpop.f32.mrb[26].mxu1 }
 0x12e   : > { %v1166_v22 = vadd.f32 %v1661_v18, %v1101_v26  ;;  %v1664_v25 = vadd.f32 %v1663_v21, %v1662_v19  ;;  %v1703_v10 = vpop.f32.mrb[27].mxu1 }
 0x12f   : > { %v1704_v29 = vadd.f32 %v1703_v10, %v1702_v24 }
 0x130   : > { %v1169_v27 = vadd.f32 %v1664_v25, %v1104_v28  ;;  %v1231_v30 = vadd.f32 %v1701_v23, %v1166_v22 }
 0x132   : > { %v1665_v31 = vpop.f32.mrb[28].mxu0  ;;  %v1234_v12 = vadd.f32 %v1704_v29, %v1169_v27 }
 0x133   : > { %v1666_v32 = vpop.f32.mrb[29].mxu0  ;;  %v1705_v33 = vpop.f32.mrb[28].mxu1 }
 0x134   : > { %v1667_v34 = vadd.f32 %v1666_v32, %v1665_v31  ;;  %v1668_v35 = vpop.f32.mrb[30].mxu0  ;;  %v1706_v36 = vpop.f32.mrb[29].mxu1 }
 0x135   : > { %v1669_v37 = vpop.f32.mrb[31].mxu0  ;;  %v1707_v39 = vadd.f32 %v1706_v36, %v1705_v33  ;;  %v1708_v40 = vpop.f32.mrb[30].mxu1 }
 0x136   : > { %v1174_v38 = vadd.f32 %v1667_v34, %v1109_v42  ;;  %v1670_v26 = vadd.f32 %v1669_v37, %v1668_v35  ;;  %v1709_v41 = vpop.f32.mrb[31].mxu1 }
 0x137   : > { %v1710_v45 = vadd.f32 %v1709_v41, %v1708_v40 }
 0x138   : > { %v1177_v43 = vadd.f32 %v1670_v26, %v1112_v44  ;;  %v1239_v47 = vadd.f32 %v1707_v39, %v1174_v38 }
 0x13a   : > { %v1242_v28 = vadd.f32 %v1710_v45, %v1177_v43 }
 0x13b   : > { %v1741_v48 = vpop.f32.mrb[32].mxu0 }
 0x13c   : > { %v1288_v49 = vadd.f32 %v1741_v48, %v1223_v14  ;;  %v1745_v50 = vpop.f32.mrb[32].mxu1  ;;  %v1279_v51 = vpop.f32.mrb[33].mxu0 }
 0x13d   : > { %v1304_v52 = vadd.f32 %v1745_v50, %v1239_v47  ;;  %v1280_v53 = vadd.f32 %v1279_v51, %v1215_v62  ;;  %v1295_v54 = vpop.f32.mrb[33].mxu1  ;;  %v1742_v55 = vpop.f32.mrb[34].mxu0 }
 0x13e   : > { %v1312_v56 = vmax.f32 %v1288_v49, 0.0  ;;  %v1296_v42 = vadd.f32 %v1295_v54, %v1231_v30  ;;  %v1291_v57 = vadd.f32 %v1742_v55, %v1226_v15  ;;  %v1746_v59 = vpop.f32.mrb[34].mxu1  ;;  %v1282_v61 = vpop.f32.mrb[35].mxu0 }
 0x13f   : > { %v1316_v44 = vmax.f32 %v1304_v52, 0.0  ;;  %v1310_v63 = vmax.f32 %v1280_v53, 0.0  ;;  %v1307_v46 = vadd.f32 %v1746_v59, %v1242_v28  ;;  %v1283_v1 = vadd.f32 %v1282_v61, %v2197_v0  ;;  %v1298_v2 = vpop.f32.mrb[35].mxu1 }
 0x140   : > { %v1545_v3 = vpack.c.bf16 %v1312_v56, %v1312_v56  ;;  %v1314_v62 = vmax.f32 %v1296_v42, 0.0  ;;  %v1313_v4 = vmax.f32 %v1291_v57, 0.0  ;;  %v1299_v5 = vadd.f32 %v1298_v2, %v1234_v12 }
 0x141   : > { %v1549_v6 = vpack.c.bf16 %v1316_v44, %v1316_v44  ;;  %v1543_v7 = vpack.c.bf16 %v1310_v63, %v1310_v63  ;;  %v1317_v8 = vmax.f32 %v1307_v46, 0.0  ;;  %v1311_v58 = vmax.f32 %v1283_v1, 0.0 }
 0x142   : > { %1353 = vst.msk [vmem:[%s175_s20 + $0x8] sm:$0xf] %vm1350_vm0, %v1545_v3  ;;  %v1547_v9 = vpack.c.bf16 %v1314_v62, %v1314_v62  ;;  %v1546_v11 = vpack.c.bf16 %v1313_v4, %v1313_v4  ;;  %v1315_v13 = vmax.f32 %v1299_v5, 0.0 }
 0x143   : > { %1357 = vst.msk [vmem:[%s175_s20 + $0x18] sm:$0xf] %vm1350_vm0, %v1549_v6  ;;  %1351 = vst.msk [vmem:[%s175_s20] sm:$0xf] %vm1350_vm0, %v1543_v7  ;;  %v1550_v14 = vpack.c.bf16 %v1317_v8, %v1317_v8  ;;  %v1544_v0 = vpack.c.bf16 %v1311_v58, %v1311_v58 }
 0x144   : > { %1355 = vst.msk [vmem:[%s175_s20 + $0x10] sm:$0xf] %vm1350_vm0, %v1547_v9  ;;  %1354 = vst.msk [vmem:[%s175_s20 + $0xc] sm:$0xf] %vm1350_vm0, %v1546_v11  ;;  %v1548_v60 = vpack.c.bf16 %v1315_v13, %v1315_v13 }
 0x145   : > { %1358 = vst.msk [vmem:[%s175_s20 + $0x1c] sm:$0xf] %vm1350_vm0, %v1550_v14  ;;  %1352 = vst.msk [vmem:[%s175_s20 + $0x4] sm:$0xf] %vm1350_vm0, %v1544_v0 }
 0x146   : > { %1356 = vst.msk [vmem:[%s175_s20 + $0x14] sm:$0xf] %vm1350_vm0, %v1548_v60 }
 0x147 PF: > { %s13_s12 = sadd.s32 1, %s1902_s12  }
 0x148   : > { %p10_p4 = scmp.ge.s32.totalorder %s13_s12, 4  }
 0x14a   :  { %12 = sbr.rel (!%p10_p4) target bundleno = 1 (0x1), region = 62 }

// kernel: disnet_forward.11
= control target key start
LH: loop header
LB: loop body
LE: loop exit
PB: predicated region body
PF: predicated region fallthrough
CT: control target
= control target key end

     0   :  { %s1435_s12 = smov 0   ;;  %s1688_s0 = inlined_call_operand.vmem [shape: bf16[32,1152], index: 0, kind: input, shape index: {}]   ;;  %s1689_s1 = inlined_call_operand.vmem [shape: bf16[1152,128], index: 1, kind: input, shape index: {}]   ;;  %s1690_s2 = inlined_call_operand.vmem [shape: f32[1,128], index: 2, kind: input, shape index: {}]   ;;  %s1691_s3 = inlined_call_operand.vmem [shape: bf16[32,128], index: 3, kind: output, shape index: {}]  }
   0x1 LB: > { %s1090_s13 = sadd.s32 4294967295, %s1411_s12   ;;  %p1094_p0 = scmp.ge.s32.totalorder %s1411_s12, 1  ;;  %s1411_s12 = sphi %s1435_s12, %s13_s12  }
   0x2   : > { %p139_p1 = scmp.lt.s32.totalorder %s1411_s12, 3 }
   0x4   : > { %p140_p2 = pnand %p1094_p0, %p139_p1 }
   0x5   : > { %v1320_v0 = vld [vmem:[%s1689_s1 + $0x40] sm:$0xff] (!%p140_p2)   ;;  %v1324_v4 = vld [vmem:[%s1689_s1 + $0x48] sm:$0xff] (!%p140_p2)   ;;  %v1328_v8 = vld [vmem:[%s1689_s1 + $0x50] sm:$0xff] (!%p140_p2)   ;;  %s1095_s17 = sshll.u32 (!%p140_p2), %s1090_s13, 1  ;;  %vm1414_vm0 = vmmov (!%p140_p2), 0  }
   0x6   : > { %143 = sbr.rel (%p140_p2) target bundleno = 323 (0x143), region = 32  ;;  %v1321_v1 = vld [vmem:[%s1689_s1] sm:$0xff] (!%p140_p2)   ;;  %1192 = vmatprep.subr.bf16.mxu0 (!%p140_p2), %v1320_v0  ;;  %v1325_v5 = vld [vmem:[%s1689_s1 + $0x8] sm:$0xff] (!%p140_p2)   ;;  %v1329_v9 = vld [vmem:[%s1689_s1 + $0x10] sm:$0xff] (!%p140_p2)   ;;  %p165_p3 = scmp.lt.s32.totalorder (!%p140_p2), %s1095_s17, 3 }
   0x7   : > { %v1322_v2 = vld [vmem:[%s1689_s1 + $0xc0] sm:$0xff] (!%p140_p2)   ;;  %1193 = vmatpush3.bf16.msra.mxu0 (!%p140_p2), %v1321_v1  ;;  %v1326_v6 = vld [vmem:[%s1689_s1 + $0xc8] sm:$0xff] (!%p140_p2)   ;;  %v1330_v10 = vld [vmem:[%s1689_s1 + $0xd0] sm:$0xff] (!%p140_p2)  }
   0x8   : > { %v1323_v3 = vld [vmem:[%s1689_s1 + $0x80] sm:$0xff] (!%p140_p2)   ;;  %1214 = vmatprep.subr.bf16.mxu1 (!%p140_p2), %v1322_v2  ;;  %1194 = vmatprep.subr.bf16.mxu0 (!%p140_p2), %v1324_v4  ;;  %v1327_v7 = vld [vmem:[%s1689_s1 + $0x88] sm:$0xff] (!%p140_p2)   ;;  %v1331_v11 = vld [vmem:[%s1689_s1 + $0x90] sm:$0xff] (!%p140_p2)  }
   0x9   : > { %1215 = vmatpush3.bf16.msra.mxu1 (!%p140_p2), %v1323_v3  ;;  %v1332_v12 = vld [vmem:[%s1689_s1 + $0x58] sm:$0xff] (!%p140_p2)   ;;  %v1336_v16 = vld [vmem:[%s1689_s1 + $0x60] sm:$0xff] (!%p140_p2)   ;;  %v1340_v20 = vld [vmem:[%s1689_s1 + $0x68] sm:$0xff] (!%p140_p2)  }
   0xa   : > { %1216 = vmatprep.subr.bf16.mxu1 (!%p140_p2), %v1326_v6  ;;  %v1333_v13 = vld [vmem:[%s1689_s1 + $0x18] sm:$0xff] (!%p140_p2)   ;;  %v1337_v17 = vld [vmem:[%s1689_s1 + $0x20] sm:$0xff] (!%p140_p2)   ;;  %v1341_v21 = vld [vmem:[%s1689_s1 + $0x28] sm:$0xff] (!%p140_p2)   ;;  %v1413_v6 = vmov (!%p140_p2), 0.0  }
   0xb   : > { %1195 = vmatpush3.bf16.msra.mxu0 (!%p140_p2), %v1325_v5  ;;  %v1334_v14 = vld [vmem:[%s1689_s1 + $0xd8] sm:$0xff] (!%p140_p2)   ;;  %v1338_v18 = vld [vmem:[%s1689_s1 + $0xe0] sm:$0xff] (!%p140_p2)   ;;  %v1342_v22 = vld [vmem:[%s1689_s1 + $0xe8] sm:$0xff] (!%p140_p2)  }
   0xc   : > { %1196 = vmatprep.subr.bf16.mxu0 (!%p140_p2), %v1328_v8  ;;  %v1335_v15 = vld [vmem:[%s1689_s1 + $0x98] sm:$0xff] (!%p140_p2)   ;;  %v1339_v19 = vld [vmem:[%s1689_s1 + $0xa0] sm:$0xff] (!%p140_p2)   ;;  %v1343_v23 = vld [vmem:[%s1689_s1 + $0xa8] sm:$0xff] (!%p140_p2)  }
   0xd   : > { %1217 = vmatpush3.bf16.msra.mxu1 %v1327_v7  ;;  %s1693_s17 = smov (!%p165_p3, %s1095_s17), 3  ;;  %v1344_v24 = vld [vmem:[%s1689_s1 + $0x70] sm:$0xff]   ;;  %v1348_v28 = vld [vmem:[%s1689_s1 + $0x78] sm:$0xff]   ;;  %v1355_v34 = vld [vmem:[%s1689_s1 + $0x140] sm:$0xff]  }
   0xe   : > { %1218 = vmatprep.subr.bf16.mxu1 %v1330_v10  ;;  %s1309_s14 = smul.u32 36, %s1693_s17  ;;  %v1345_v25 = vld [vmem:[%s1689_s1 + $0x30] sm:$0xff]   ;;  %v1349_v29 = vld [vmem:[%s1689_s1 + $0x38] sm:$0xff]   ;;  %v1359_v37 = vld [vmem:[%s1689_s1 + $0x100] sm:$0xff]  }
   0xf   : > { %1197 = vmatpush3.bf16.msra.mxu0 %v1329_v9  ;;  %v1346_v26 = vld [vmem:[%s1689_s1 + $0xf0] sm:$0xff]   ;;  %v1350_v30 = vld [vmem:[%s1689_s1 + $0xf8] sm:$0xff]   ;;  %v1360_v38 = vld [vmem:[%s1689_s1 + $0x1c0] sm:$0xff]  }
  0x10   : > { %1198 = vmatprep.subr.bf16.mxu0 %v1332_v12  ;;  %v1347_v27 = vld [vmem:[%s1689_s1 + $0xb0] sm:$0xff]   ;;  %s1538_s13 = scalar_lea.vmem %s1688_s0, %s1309_s14  ;;  %v1354_v33 = vld [vmem:[%s1689_s1 + $0xb8] sm:$0xff]   ;;  %v1361_v39 = vld [vmem:[%s1689_s1 + $0x180] sm:$0xff]  }
  0x11   : > { %1219 = vmatpush3.bf16.msra.mxu1 %v1331_v11  ;;  %v1351_v31 = vld [vmem:[%s1538_s13] ss:$36 sps:$4 sm:$0xff]   ;;  %v1356_v35 = vld [vmem:[%s1538_s13 + $0x8] ss:$36 sps:$4 sm:$0xff]   ;;  %v1366_v44 = vld [vmem:[%s1689_s1 + $0x150] sm:$0xff]  }
  0x12   : > { %1220 = vmatprep.subr.bf16.mxu1 %v1334_v14  ;;  %v1353_v32 = vld [vmem:[%s1538_s13 + $0x4] ss:$36 sps:$4 sm:$0xff]   ;;  %v1358_v36 = vld [vmem:[%s1538_s13 + $0xc] ss:$36 sps:$4 sm:$0xff]   ;;  %v1370_v48 = vld [vmem:[%s1689_s1 + $0x158] sm:$0xff]  }
  0x13   : > { %1199 = vmatpush3.bf16.msra.mxu0 %v1333_v13  ;;  %849 = vmatprep.mubr.bf16.mxu0 %v1353_v32  ;;  %v1362_v40 = vld [vmem:[%s1689_s1 + $0x148] sm:$0xff]   ;;  %v1367_v45 = vld [vmem:[%s1689_s1 + $0x110] sm:$0xff]   ;;  %v1371_v49 = vld [vmem:[%s1689_s1 + $0x118] sm:$0xff]  }
  0x14   : > { %1200 = vmatprep.subr.bf16.mxu0 %v1336_v16  ;;  %890 = vmatprep.mubr.bf16.mxu1 %v1358_v36  ;;  %v1363_v41 = vld [vmem:[%s1689_s1 + $0x108] sm:$0xff]   ;;  %v1368_v46 = vld [vmem:[%s1689_s1 + $0x1d0] sm:$0xff]   ;;  %v1372_v50 = vld [vmem:[%s1689_s1 + $0x1d8] sm:$0xff]  }
  0x15   : > { %1221 = vmatpush3.bf16.msra.mxu1 %v1335_v15  ;;  %v1364_v42 = vld [vmem:[%s1689_s1 + $0x1c8] sm:$0xff]   ;;  %v1369_v47 = vld [vmem:[%s1689_s1 + $0x190] sm:$0xff]   ;;  %v1373_v51 = vld [vmem:[%s1689_s1 + $0x198] sm:$0xff]  }
  0x16   : > { %1222 = vmatprep.subr.bf16.mxu1 %v1338_v18  ;;  %v1365_v43 = vld [vmem:[%s1689_s1 + $0x188] sm:$0xff]   ;;  %v1374_v52 = vld [vmem:[%s1689_s1 + $0x160] sm:$0xff]   ;;  %v1382_v60 = vld [vmem:[%s1689_s1 + $0x170] sm:$0xff]  }
  0x17   : > { %1201 = vmatpush3.bf16.msra.mxu0 %v1337_v17  ;;  %v1375_v53 = vld [vmem:[%s1689_s1 + $0x120] sm:$0xff]   ;;  %v1378_v56 = vld [vmem:[%s1689_s1 + $0x168] sm:$0xff]   ;;  %v1383_v61 = vld [vmem:[%s1689_s1 + $0x130] sm:$0xff]  }
  0x18   : > { %1202 = vmatprep.subr.bf16.mxu0 %v1340_v20  ;;  %v1376_v54 = vld [vmem:[%s1689_s1 + $0x1e0] sm:$0xff]   ;;  %v1379_v57 = vld [vmem:[%s1689_s1 + $0x128] sm:$0xff]   ;;  %v1384_v62 = vld [vmem:[%s1689_s1 + $0x1f0] sm:$0xff]  }
  0x19   : > { %1223 = vmatpush3.bf16.msra.mxu1 %v1339_v19  ;;  %v1377_v55 = vld [vmem:[%s1689_s1 + $0x1a0] sm:$0xff]   ;;  %v1380_v58 = vld [vmem:[%s1689_s1 + $0x1e8] sm:$0xff]   ;;  %v1385_v63 = vld [vmem:[%s1689_s1 + $0x1b0] sm:$0xff]  }
  0x1a   : > { %1224 = vmatprep.subr.bf16.mxu1 %v1342_v22  ;;  %v1381_v59 = vld [vmem:[%s1689_s1 + $0x1a8] sm:$0xff]   ;;  %v1386_v0 = vld [vmem:[%s1689_s1 + $0x178] sm:$0xff]   ;;  %v1389_v3 = vld [vmem:[%s1538_s13 + $0x10] ss:$36 sps:$4 sm:$0xff]  }
  0x1b   : > { %1203 = vmatpush3.bf16.msra.mxu0 %v1341_v21  ;;  %v1387_v1 = vld [vmem:[%s1689_s1 + $0x138] sm:$0xff]   ;;  %v1396_v9 = vld [vmem:[%s1689_s1 + $0x200] sm:$0xff]   ;;  %v1397_v10 = vld [vmem:[%s1689_s1 + $0x208] sm:$0xff]  }
  0x1c   : > { %1204 = vmatprep.subr.bf16.mxu0 %v1344_v24  ;;  %v1388_v2 = vld [vmem:[%s1689_s1 + $0x1f8] sm:$0xff]   ;;  %v1398_v11 = vld [vmem:[%s1689_s1 + $0x210] sm:$0xff]   ;;  %v1400_v13 = vld [vmem:[%s1689_s1 + $0x220] sm:$0xff]  }
  0x1d   : > { %1225 = vmatpush3.bf16.msra.mxu1 %v1343_v23  ;;  %v1391_v4 = vld [vmem:[%s1538_s13 + $0x14] ss:$36 sps:$4 sm:$0xff]   ;;  %v1395_v8 = vld [vmem:[%s1538_s13 + $0x1c] ss:$36 sps:$4 sm:$0xff]   ;;  %v1401_v14 = vld [vmem:[%s1689_s1 + $0x228] sm:$0xff]  }
  0x1e   : > { %1226 = vmatprep.subr.bf16.mxu1 %v1346_v26  ;;  %v1392_v5 = vld [vmem:[%s1689_s1 + $0x1b8] sm:$0xff]   ;;  %v1402_v15 = vld [vmem:[%s1689_s1 + $0x230] sm:$0xff]   ;;  %v1404_v17 = vld [vmem:[%s1538_s13 + $0x20] ss:$36 sps:$4 sm:$0xff]  }
  0x1f   : > { %1205 = vmatpush3.bf16.msra.mxu0 %v1345_v25  ;;  %v1393_v7 = vld [vmem:[%s1538_s13 + $0x18] ss:$36 sps:$4 sm:$0xff]   ;;  %v1099_v19 = vld [vmem:[%s1690_s2] ss:$0 sm:$0xff]  ;;  %s1098_s13 = sshll.u32 %s1693_s17, 2 }
  0x20   : > { %1206 = vmatprep.subr.bf16.mxu0 %v1348_v28  ;;  %v1399_v12 = vld [vmem:[%s1689_s1 + $0x218] sm:$0xff]   ;;  %s175_s20 = scalar_lea.vmem %s1691_s3, %s1098_s13 }
  0x21   : > { %1227 = vmatpush3.bf16.msra.mxu1 %v1347_v27  ;;  %v1403_v16 = vld [vmem:[%s1689_s1 + $0x238] sm:$0xff]  }
  0x22   : > { %1228 = vmatprep.subr.bf16.mxu1 %v1350_v30 }
  0x23   : > { %1207 = vmatpush3.bf16.msra.mxu0 %v1349_v29 }
  0x24   : > { %1236 = vmatprep.subr.bf16.mxu0 %v1355_v34 }
  0x25   : > { %1229 = vmatpush3.bf16.msra.mxu1 %v1354_v33 }
  0x26   : > { %850 = vmatmul.mubr.bf16.vlgmr.msra.gmra.mrb[0].mxu0 %v1351_v31  ;;  %1258 = vmatprep.subr.bf16.mxu1 %v1360_v38 }
  0x27   : > { %1237 = vmatpush3.bf16.msra.mxu0 %v1359_v37  ;;  %931 = vmatprep.mubr.bf16.mxu0 %v1391_v4 }
  0x28   : > { %891 = vmatmul.mubr.bf16.vlgmr.msra.gmra.mrb[0].mxu1 %v1356_v35  ;;  %1238 = vmatprep.subr.bf16.mxu0 %v1362_v40 }
  0x29   : > { %1259 = vmatpush3.bf16.msra.mxu1 %v1361_v39  ;;  %972 = vmatprep.mubr.bf16.mxu1 %v1395_v8 }
  0x2a   : > { %1260 = vmatprep.subr.bf16.mxu1 %v1364_v42 }
  0x2b   : > { %1239 = vmatpush3.bf16.msra.mxu0 %v1363_v41 }
  0x2c   : > { %1240 = vmatprep.subr.bf16.mxu0 %v1366_v44 }
  0x2d   : > { %1261 = vmatpush3.bf16.msra.mxu1 %v1365_v43 }
  0x2e   : > { %1262 = vmatprep.subr.bf16.mxu1 %v1368_v46 }
  0x2f   : > { %1241 = vmatpush3.bf16.msra.mxu0 %v1367_v45 }
  0x30   : > { %1242 = vmatprep.subr.bf16.mxu0 %v1370_v48 }
  0x31   : > { %1263 = vmatpush3.bf16.msra.mxu1 %v1369_v47 }
  0x32   : > { %1264 = vmatprep.subr.bf16.mxu1 %v1372_v50 }
  0x33   : > { %1243 = vmatpush3.bf16.msra.mxu0 %v1371_v49 }
  0x34   : > { %1244 = vmatprep.subr.bf16.mxu0 %v1374_v52 }
  0x35   : > { %1265 = vmatpush3.bf16.msra.mxu1 %v1373_v51 }
  0x36   : > { %1266 = vmatprep.subr.bf16.mxu1 %v1376_v54 }
  0x37   : > { %1245 = vmatpush3.bf16.msra.mxu0 %v1375_v53 }
  0x38   : > { %1246 = vmatprep.subr.bf16.mxu0 %v1378_v56 }
  0x39   : > { %1267 = vmatpush3.bf16.msra.mxu1 %v1377_v55 }
  0x3a   : > { %1268 = vmatprep.subr.bf16.mxu1 %v1380_v58 }
  0x3b   : > { %1247 = vmatpush3.bf16.msra.mxu0 %v1379_v57 }
  0x3c   : > { %1248 = vmatprep.subr.bf16.mxu0 %v1382_v60 }
  0x3d   : > { %1269 = vmatpush3.bf16.msra.mxu1 %v1381_v59 }
  0x3e   : > { %1270 = vmatprep.subr.bf16.mxu1 %v1384_v62 }
  0x3f   : > { %1249 = vmatpush3.bf16.msra.mxu0 %v1383_v61 }
  0x40   : > { %1250 = vmatprep.subr.bf16.mxu0 %v1386_v0 }
  0x41   : > { %1271 = vmatpush3.bf16.msra.mxu1 %v1385_v63 }
  0x42   : > { %1272 = vmatprep.subr.bf16.mxu1 %v1388_v2 }
  0x43   : > { %1251 = vmatpush3.bf16.msra.mxu0 %v1387_v1 }
  0x44   : > { %1289 = vmatprep.subr.bf16.mxu0 %v1413_v6 }
  0x45   : > { %1273 = vmatpush3.bf16.msra.mxu1 %v1392_v5 }
  0x46   : > { %932 = vmatmul.mubr.bf16.vlgmr.msra.gmra.mrb[4].mxu0 %v1389_v3 }
  0x47   : > { %1305 = vmatprep.mubr.msk.bf16.mxu0 %vm1414_vm0, %v1413_v6  ;;  %1290 = vmatpush3.bf16.msra.mxu0 %v1396_v9 }
  0x48   : > { %973 = vmatmul.mubr.bf16.vlgmr.msra.gmra.mrb[4].mxu1 %v1393_v7  ;;  %1291 = vmatprep.subr.bf16.mxu0 %v1413_v6 }
  0x4b   : > { %1292 = vmatpush3.bf16.msra.mxu0 %v1397_v10 }
  0x4c   : > { %1293 = vmatprep.subr.bf16.mxu0 %v1413_v6 }
  0x4f   : > { %1294 = vmatpush3.bf16.msra.mxu0 %v1398_v11 }
  0x50   : > { %1295 = vmatprep.subr.bf16.mxu0 %v1413_v6 }
  0x53   : > { %1296 = vmatpush3.bf16.msra.mxu0 %v1399_v12 }
  0x54   : > { %1297 = vmatprep.subr.bf16.mxu0 %v1413_v6 }
  0x57   : > { %1298 = vmatpush3.bf16.msra.mxu0 %v1400_v13 }
  0x58   : > { %1299 = vmatprep.subr.bf16.mxu0 %v1413_v6 }
  0x5b   : > { %1300 = vmatpush3.bf16.msra.mxu0 %v1401_v14 }
  0x5c   : > { %1301 = vmatprep.subr.bf16.mxu0 %v1413_v6 }
  0x5f   : > { %1302 = vmatpush3.bf16.msra.mxu0 %v1402_v15 }
  0x60   : > { %1303 = vmatprep.subr.bf16.mxu0 %v1413_v6 }
  0x63   : > { %1304 = vmatpush3.bf16.msra.mxu0 %v1403_v16 }
  0x66   : > { %1306 = vmatmul.mubr.bf16.vlgmr.msra.gmra.mrb[8].mxu0 %v1404_v17 }
  0xf9   : > { %v1208_v18 = vpop.f32.mrb[0].mxu0 }
  0xfa   : > { %v1209_v20 = vpop.f32.mrb[1].mxu0 }
  0xfb   : > { %v1210_v21 = vadd.f32 %v1209_v20, %v1208_v18  ;;  %v1211_v22 = vpop.f32.mrb[2].mxu0  ;;  %v1230_v23 = vpop.f32.mrb[0].mxu1 }
  0xfc   : > { %v1212_v24 = vpop.f32.mrb[3].mxu0  ;;  %v1231_v27 = vpop.f32.mrb[1].mxu1 }
  0xfd   : > { %v852_v25 = vadd.f32 %v1210_v21, %v1099_v19  ;;  %v1213_v26 = vadd.f32 %v1212_v24, %v1211_v22  ;;  %v1232_v28 = vadd.f32 %v1231_v27, %v1230_v23  ;;  %v1233_v29 = vpop.f32.mrb[2].mxu1 }
  0xfe   : > { %v1234_v31 = vpop.f32.mrb[3].mxu1 }
  0xff   : > { %v855_v30 = vadd.f32 %v1213_v26, %v1099_v19  ;;  %v893_v32 = vadd.f32 %v1232_v28, %v852_v25  ;;  %v1235_v33 = vadd.f32 %v1234_v31, %v1233_v29 }
 0x101   : > { %v896_v34 = vadd.f32 %v1235_v33, %v855_v30 }
 0x119   : > { %v1252_v35 = vpop.f32.mrb[4].mxu0 }
 0x11a   : > { %v1253_v36 = vpop.f32.mrb[5].mxu0 }
 0x11b   : > { %v1254_v37 = vadd.f32 %v1253_v36, %v1252_v35  ;;  %v1255_v38 = vpop.f32.mrb[6].mxu0  ;;  %v1274_v39 = vpop.f32.mrb[4].mxu1 }
 0x11c   : > { %v1256_v40 = vpop.f32.mrb[7].mxu0  ;;  %v1275_v43 = vpop.f32.mrb[5].mxu1 }
 0x11d   : > { %v934_v41 = vadd.f32 %v1254_v37, %v893_v32  ;;  %v1257_v42 = vadd.f32 %v1256_v40, %v1255_v38  ;;  %v1276_v44 = vadd.f32 %v1275_v43, %v1274_v39  ;;  %v1277_v45 = vpop.f32.mrb[6].mxu1 }
 0x11e   : > { %v1278_v47 = vpop.f32.mrb[7].mxu1 }
 0x11f   : > { %v937_v46 = vadd.f32 %v1257_v42, %v896_v34  ;;  %v1279_v48 = vadd.f32 %v1278_v47, %v1277_v45  ;;  %v975_v49 = vadd.f32 %v1276_v44, %v934_v41 }
 0x121   : > { %v978_v50 = vadd.f32 %v1279_v48, %v937_v46 }
 0x139   : > { %v1015_v51 = vpop.f32.mrb[8].mxu0 }
 0x13a   : > { %v1016_v52 = vadd.f32 %v1015_v51, %v975_v49  ;;  %v1307_v53 = vpop.f32.mrb[9].mxu0 }
 0x13b   : > { %v1018_v54 = vpop.f32.mrb[10].mxu0 }
 0x13c   : > { %v1019_v55 = vadd.f32 %v1018_v54, %v978_v50  ;;  %v1308_v56 = vpop.f32.mrb[11].mxu0  ;;  %v1022_v57 = vmax.f32 %v1016_v52, 0.0 }
 0x13e   : > { %v1023_v58 = vmax.f32 %v1019_v55, 0.0 }
 0x140   : > { %v1190_v59 = vpack.c.bf16 %v1023_v58, %v1022_v57 }
 0x142   : > { %1191 = vst [vmem:[%s175_s20] sm:$0xff] %v1190_v59  }
 0x143 PF: > { %s13_s12 = sadd.s32 1, %s1411_s12  }
 0x144   : > { %p10_p4 = scmp.ge.s32.totalorder %s13_s12, 4  }
 0x146   :  { %12 = sbr.rel (!%p10_p4) target bundleno = 1 (0x1), region = 62 }

// kernel: disnet_forward.12
= control target key start
LH: loop header
LB: loop body
LE: loop exit
PB: predicated region body
PF: predicated region fallthrough
CT: control target
= control target key end

     0   :  { %s985_s15 = smov 0   ;;  %s1129_s0 = inlined_call_operand.vmem [shape: bf16[32,576], index: 0, kind: input, shape index: {}]   ;;  %s1130_s1 = inlined_call_operand.vmem [shape: bf16[576,128], index: 1, kind: input, shape index: {}]   ;;  %s1131_s2 = inlined_call_operand.vmem [shape: f32[1,128], index: 2, kind: input, shape index: {}]   ;;  %s1132_s3 = inlined_call_operand.vmem [shape: bf16[32,128], index: 3, kind: input, shape index: {}]   ;;  %s1133_s4 = inlined_call_operand.vmem [shape: bf16[32,128], index: 4, kind: output, shape index: {}]  }
   0x1 LB: > { %s766_s16 = sadd.s32 4294967295, %s956_s15   ;;  %p770_p0 = scmp.ge.s32.totalorder %s956_s15, 1  ;;  %s956_s15 = sphi %s985_s15, %s14_s15  }
   0x2   : > { %p175_p1 = scmp.lt.s32.totalorder %s956_s15, 3 }
   0x4   : > { %p176_p2 = pnand %p770_p0, %p175_p1 }
   0x5   : > { %v907_v0 = vld [vmem:[%s1130_s1 + $0x40] sm:$0xff] (!%p176_p2)   ;;  %v911_v4 = vld [vmem:[%s1130_s1 + $0x48] sm:$0xff] (!%p176_p2)   ;;  %v915_v8 = vld [vmem:[%s1130_s1 + $0x50] sm:$0xff] (!%p176_p2)   ;;  %s771_s21 = sshll.u32 (!%p176_p2), %s766_s16, 1  ;;  %v958_v33 = vmov (!%p176_p2), 0.0   ;;  %vm959_vm0 = vmmov (!%p176_p2), 0  }
   0x6   : > { %179 = sbr.rel (%p176_p2) target bundleno = 277 (0x115), region = 36  ;;  %v908_v1 = vld [vmem:[%s1130_s1] sm:$0xff] (!%p176_p2)   ;;  %835 = vmatprep.subr.bf16.mxu0 (!%p176_p2), %v907_v0  ;;  %v912_v5 = vld [vmem:[%s1130_s1 + $0x8] sm:$0xff] (!%p176_p2)   ;;  %v916_v9 = vld [vmem:[%s1130_s1 + $0x10] sm:$0xff] (!%p176_p2)   ;;  %p208_p3 = scmp.lt.s32.totalorder (!%p176_p2), %s771_s21, 3  ;;  %vm553_vm1 = vcmask (!%p176_p2), 523264  }
   0x7   : > { %v909_v2 = vld [vmem:[%s1130_s1 + $0xc0] sm:$0xff] (!%p176_p2)   ;;  %836 = vmatpush3.bf16.msra.mxu0 (!%p176_p2), %v908_v1  ;;  %v913_v6 = vld [vmem:[%s1130_s1 + $0xc8] sm:$0xff] (!%p176_p2)   ;;  %v917_v10 = vld [vmem:[%s1130_s1 + $0xd0] sm:$0xff] (!%p176_p2)  }
   0x8   : > { %v910_v3 = vld [vmem:[%s1130_s1 + $0x80] sm:$0xff] (!%p176_p2)   ;;  %857 = vmatprep.subr.bf16.mxu1 (!%p176_p2), %v909_v2  ;;  %837 = vmatprep.subr.bf16.mxu0 (!%p176_p2), %v911_v4  ;;  %v914_v7 = vld [vmem:[%s1130_s1 + $0x88] sm:$0xff] (!%p176_p2)   ;;  %v918_v11 = vld [vmem:[%s1130_s1 + $0x90] sm:$0xff] (!%p176_p2)  }
   0x9   : > { %858 = vmatpush3.bf16.msra.mxu1 (!%p176_p2), %v910_v3  ;;  %v919_v12 = vld [vmem:[%s1130_s1 + $0x58] sm:$0xff] (!%p176_p2)   ;;  %v923_v16 = vld [vmem:[%s1130_s1 + $0x60] sm:$0xff] (!%p176_p2)   ;;  %v927_v20 = vld [vmem:[%s1130_s1 + $0x68] sm:$0xff] (!%p176_p2)  }
   0xa   : > { %859 = vmatprep.subr.bf16.mxu1 (!%p176_p2), %v913_v6  ;;  %v920_v13 = vld [vmem:[%s1130_s1 + $0x18] sm:$0xff] (!%p176_p2)   ;;  %v924_v17 = vld [vmem:[%s1130_s1 + $0x20] sm:$0xff] (!%p176_p2)   ;;  %v928_v21 = vld [vmem:[%s1130_s1 + $0x28] sm:$0xff] (!%p176_p2)  }
   0xb   : > { %838 = vmatpush3.bf16.msra.mxu0 (!%p176_p2), %v912_v5  ;;  %v921_v14 = vld [vmem:[%s1130_s1 + $0xd8] sm:$0xff] (!%p176_p2)   ;;  %v925_v18 = vld [vmem:[%s1130_s1 + $0xe0] sm:$0xff] (!%p176_p2)   ;;  %v929_v22 = vld [vmem:[%s1130_s1 + $0xe8] sm:$0xff] (!%p176_p2)  }
   0xc   : > { %839 = vmatprep.subr.bf16.mxu0 (!%p176_p2), %v915_v8  ;;  %v922_v15 = vld [vmem:[%s1130_s1 + $0x98] sm:$0xff] (!%p176_p2)   ;;  %v926_v19 = vld [vmem:[%s1130_s1 + $0xa0] sm:$0xff] (!%p176_p2)   ;;  %v930_v23 = vld [vmem:[%s1130_s1 + $0xa8] sm:$0xff] (!%p176_p2)  }
   0xd   : > { %860 = vmatpush3.bf16.msra.mxu1 %v914_v7  ;;  %s1135_s21 = smov (!%p208_p3, %s771_s21), 3  ;;  %v931_v24 = vld [vmem:[%s1130_s1 + $0x70] sm:$0xff]   ;;  %v935_v28 = vld [vmem:[%s1130_s1 + $0x78] sm:$0xff]   ;;  %v945_v37 = vld [vmem:[%s1130_s1 + $0x100] sm:$0xff]  }
   0xe   : > { %861 = vmatprep.subr.bf16.mxu1 %v917_v10  ;;  %s896_s19 = smul.u32 20, %s1135_s21  ;;  %v932_v25 = vld [vmem:[%s1130_s1 + $0x30] sm:$0xff]   ;;  %v936_v29 = vld [vmem:[%s1130_s1 + $0x38] sm:$0xff]   ;;  %v946_v38 = vld [vmem:[%s1130_s1 + $0x108] sm:$0xff]   ;;  %s774_s24 = sshll.u32 %s1135_s21, 2 }
   0xf   : > { %840 = vmatpush3.bf16.msra.mxu0 %v916_v9  ;;  %v933_v26 = vld [vmem:[%s1130_s1 + $0xf0] sm:$0xff]   ;;  %v937_v30 = vld [vmem:[%s1130_s1 + $0xf8] sm:$0xff]   ;;  %v777_v43 = vld [vmem:[%s1131_s2] ss:$0 sm:$0xff]  ;;  %s218_s27 = scalar_lea.vmem %s1132_s3, %s774_s24  ;;  %s224_s21 = scalar_lea.vmem %s1133_s4, %s774_s24 }
  0x10   : > { %841 = vmatprep.subr.bf16.mxu0 %v919_v12  ;;  %v934_v27 = vld [vmem:[%s1130_s1 + $0xb0] sm:$0xff]   ;;  %s1088_s30 = scalar_lea.vmem %s1129_s0, %s896_s19  ;;  %v941_v34 = vld [vmem:[%s1130_s1 + $0xb8] sm:$0xff]   ;;  %v827_v60 = vld [vmem:[%s218_s27] sm:$0xff]  }
  0x11   : > { %862 = vmatpush3.bf16.msra.mxu1 %v918_v11  ;;  %v938_v31 = vld [vmem:[%s1088_s30] ss:$20 sps:$4 sm:$0xff]   ;;  %v940_v32 = vld [vmem:[%s1088_s30 + $0x4] ss:$20 sps:$4 sm:$0xff]   ;;  %v942_v35 = vld [vmem:[%s1088_s30 + $0x8] ss:$20 sps:$4 sm:$0xff]   ;;  %v828_v1 = vunpack.c.l.bf16 %v827_v60  ;;  %v829_v3 = vunpack.c.h.bf16 %v827_v60 }
  0x12   : > { %863 = vmatprep.subr.bf16.mxu1 %v921_v14  ;;  %589 = vmatprep.mubr.bf16.mxu0 %v940_v32  ;;  %v944_v36 = vld [vmem:[%s1088_s30 + $0xc] ss:$20 sps:$4 sm:$0xff]   ;;  %v947_v39 = vld [vmem:[%s1130_s1 + $0x110] sm:$0xff]   ;;  %v948_v40 = vld [vmem:[%s1130_s1 + $0x118] sm:$0xff]  }
  0x13   : > { %842 = vmatpush3.bf16.msra.mxu0 %v920_v13  ;;  %630 = vmatprep.mubr.bf16.mxu1 %v944_v36  ;;  %v949_v41 = vld [vmem:[%s1088_s30 + $0x10] ss:$20 sps:$4 sm:$0xff]  }
  0x14   : > { %843 = vmatprep.subr.bf16.mxu0 %v923_v16 }
  0x15   : > { %864 = vmatpush3.bf16.msra.mxu1 %v922_v15 }
  0x16   : > { %865 = vmatprep.subr.bf16.mxu1 %v925_v18 }
  0x17   : > { %844 = vmatpush3.bf16.msra.mxu0 %v924_v17 }
  0x18   : > { %845 = vmatprep.subr.bf16.mxu0 %v927_v20 }
  0x19   : > { %866 = vmatpush3.bf16.msra.mxu1 %v926_v19 }
  0x1a   : > { %867 = vmatprep.subr.bf16.mxu1 %v929_v22 }
  0x1b   : > { %846 = vmatpush3.bf16.msra.mxu0 %v928_v21 }
  0x1c   : > { %847 = vmatprep.subr.bf16.mxu0 %v931_v24 }
  0x1d   : > { %868 = vmatpush3.bf16.msra.mxu1 %v930_v23 }
  0x1e   : > { %869 = vmatprep.subr.bf16.mxu1 %v933_v26 }
  0x1f   : > { %848 = vmatpush3.bf16.msra.mxu0 %v932_v25 }
  0x20   : > { %849 = vmatprep.subr.bf16.mxu0 %v935_v28 }
  0x21   : > { %870 = vmatpush3.bf16.msra.mxu1 %v934_v27 }
  0x22   : > { %871 = vmatprep.subr.bf16.mxu1 %v937_v30 }
  0x23   : > { %850 = vmatpush3.bf16.msra.mxu0 %v936_v29 }
  0x24   : > { %884 = vmatprep.subr.bf16.mxu0 %v958_v33 }
  0x25   : > { %872 = vmatpush3.bf16.msra.mxu1 %v941_v34 }
  0x26   : > { %590 = vmatmul.mubr.bf16.vlgmr.msra.gmra.mrb[0].mxu0 %v938_v31 }
  0x27   : > { %892 = vmatprep.mubr.msk.bf16.mxu0 %vm959_vm0, %v958_v33  ;;  %885 = vmatpush3.bf16.msra.mxu0 %v945_v37 }
  0x28   : > { %631 = vmatmul.mubr.bf16.vlgmr.msra.gmra.mrb[0].mxu1 %v942_v35  ;;  %886 = vmatprep.subr.bf16.mxu0 %v958_v33 }
  0x2b   : > { %887 = vmatpush3.bf16.msra.mxu0 %v946_v38 }
  0x2c   : > { %888 = vmatprep.subr.bf16.mxu0 %v958_v33 }
  0x2f   : > { %889 = vmatpush3.bf16.msra.mxu0 %v947_v39 }
  0x30   : > { %890 = vmatprep.subr.bf16.mxu0 %v958_v33 }
  0x33   : > { %891 = vmatpush3.bf16.msra.mxu0 %v948_v40 }
  0x36   : > { %893 = vmatmul.mubr.msk.bf16.vlgmr.msra.gmra.mrb[4].mxu0 %vm553_vm1, %v949_v41 }
  0xf9   : > { %v851_v42 = vpop.f32.mrb[0].mxu0 }
  0xfa   : > { %v852_v44 = vpop.f32.mrb[1].mxu0 }
  0xfb   : > { %v853_v45 = vadd.f32 %v852_v44, %v851_v42  ;;  %v854_v46 = vpop.f32.mrb[2].mxu0  ;;  %v873_v47 = vpop.f32.mrb[0].mxu1 }
  0xfc   : > { %v855_v48 = vpop.f32.mrb[3].mxu0  ;;  %v874_v51 = vpop.f32.mrb[1].mxu1 }
  0xfd   : > { %v592_v49 = vadd.f32 %v853_v45, %v777_v43  ;;  %v856_v50 = vadd.f32 %v855_v48, %v854_v46  ;;  %v875_v52 = vadd.f32 %v874_v51, %v873_v47  ;;  %v876_v53 = vpop.f32.mrb[2].mxu1 }
  0xfe   : > { %v877_v55 = vpop.f32.mrb[3].mxu1 }
  0xff   : > { %v595_v54 = vadd.f32 %v856_v50, %v777_v43  ;;  %v878_v56 = vadd.f32 %v877_v55, %v876_v53  ;;  %v633_v57 = vadd.f32 %v875_v52, %v592_v49 }
 0x101   : > { %v636_v58 = vadd.f32 %v878_v56, %v595_v54 }
 0x109   : > { %v673_v59 = vpop.f32.mrb[4].mxu0 }
 0x10a   : > { %v674_v61 = vadd.f32 %v673_v59, %v633_v57  ;;  %v894_v62 = vpop.f32.mrb[5].mxu0 }
 0x10b   : > { %v676_v63 = vpop.f32.mrb[6].mxu0 }
 0x10c   : > { %v680_v0 = vmax.f32 %v674_v61, 0.0  ;;  %v677_v2 = vadd.f32 %v676_v63, %v636_v58  ;;  %v895_v4 = vpop.f32.mrb[7].mxu0 }
 0x10e   : > { %v681_v5 = vmax.f32 %v677_v2, 0.0  ;;  %v686_v6 = vadd.f32 %v828_v1, %v680_v0 }
 0x110   : > { %v687_v7 = vadd.f32 %v829_v3, %v681_v5 }
 0x112   : > { %v833_v8 = vpack.c.bf16 %v687_v7, %v686_v6 }
 0x114   : > { %834 = vst [vmem:[%s224_s21] sm:$0xff] %v833_v8  }
 0x115 PF: > { %s14_s15 = sadd.s32 1, %s956_s15  }
 0x116   : > { %p11_p4 = scmp.ge.s32.totalorder %s14_s15, 4  }
 0x118   :  { %13 = sbr.rel (!%p11_p4) target bundleno = 1 (0x1), region = 69 }

// kernel: disnet_forward.13
= control target key start
LH: loop header
LB: loop body
LE: loop exit
PB: predicated region body
PF: predicated region fallthrough
CT: control target
= control target key end

     0   :  { %v245_v0 = vmov 0.0|0.0   ;;  %vm246_vm0 = vmmov 0   ;;  %v247_v4 = vmov 0.0   ;;  %vm66_vm1 = vcmask 1041409   ;;  %s336_s1 = inlined_call_operand.vmem [shape: f32[128,1], index: 1, kind: input, shape index: {}]   ;;  %s337_s2 = inlined_call_operand.<no memory space> [shape: f32[1,1], index: 2, kind: input, shape index: {}]   ;;  %s338_s0 = inlined_call_operand.vmem [shape: bf16[2,16,128], index: 0, kind: input, shape index: {}]   ;;  %s339_s3 = inlined_call_operand.vmem [shape: f32[2,1], index: 3, kind: output, shape index: {}]  }
   0x1   :  { %214 = vmatprep.subr.bf16.mxu0 %v245_v0  ;;  %v41_v1 = vld [vmem:[%s336_s1] sm:$0xff]  ;;  %v42_v2 = vld [vmem:[%s336_s1 + $0x8] sm:$0xff]  ;;  %v43_v3 = vld [vmem:[%s336_s1 + $0x10] sm:$0xff]  ;;  %211 = vmatprep.mubr.msk.f32.mxu0 %vm246_vm0, %v247_v4  ;;  %v8_v5 = vstv %s337_s2  ;;  %vm145_vm2 = vcmask 1024  }
   0x2   :  { %v215_v6 = vpack.c.bf16 %v42_v2, %v41_v1  ;;  %v44_v7 = vld [vmem:[%s336_s1 + $0x18] sm:$0xff]  ;;  %9 = vst [vmem:[#allocation2] sm:$0x1] %v8_v5  ;;  %v45_v9 = vld [vmem:[%s336_s1 + $0x20] sm:$0xff]  ;;  %v46_v10 = vld [vmem:[%s336_s1 + $0x28] sm:$0xff] }
   0x3   :  { %v218_v8 = vpack.c.bf16 %v44_v7, %v43_v3  ;;  %v154_v11 = vld [vmem:[%s338_s0] sm:$0xff]   ;;  %v161_v12 = vld [vmem:[%s338_s0 + $0x8] sm:$0xff]   ;;  %v221_v16 = vpack.c.bf16 %v46_v10, %v45_v9  ;;  %v47_v18 = vld [vmem:[%s336_s1 + $0x30] sm:$0xff] }
   0x4   :  { %216 = vmatpush3.bf16.msra.mxu0 %v215_v6  ;;  %v155_v13 = vunpack.c.l.bf16 %v154_v11  ;;  %v156_v14 = vunpack.c.h.bf16 %v154_v11  ;;  %v159_v15 = vunpack.c.l.bf16 %v161_v12  ;;  %v160_v17 = vunpack.c.h.bf16 %v161_v12  ;;  %v48_v19 = vld [vmem:[%s336_s1 + $0x38] sm:$0xff]  ;;  %v49_v25 = vld [vmem:[%s336_s1 + $0x40] sm:$0xff]  ;;  %v50_v26 = vld [vmem:[%s336_s1 + $0x48] sm:$0xff] }
   0x5   :  { %217 = vmatprep.subr.bf16.mxu0 %v245_v0  ;;  %v224_v23 = vpack.c.bf16 %v48_v19, %v47_v18  ;;  %v227_v30 = vpack.c.bf16 %v50_v26, %v49_v25  ;;  %v51_v32 = vld [vmem:[%s336_s1 + $0x50] sm:$0xff]  ;;  %v52_v33 = vld [vmem:[%s336_s1 + $0x58] sm:$0xff]  ;;  %v53_v39 = vld [vmem:[%s336_s1 + $0x60] sm:$0xff] }
   0x6   :  { %v24_v20 = vadd.f32 %v156_v14, %v155_v13  ;;  %v31_v21 = vadd.f32 %v160_v17, %v159_v15  ;;  %v230_v36 = vpack.c.bf16 %v52_v33, %v51_v32  ;;  %v54_v40 = vld [vmem:[%s336_s1 + $0x68] sm:$0xff]  ;;  %v55_v44 = vld [vmem:[%s336_s1 + $0x70] sm:$0xff]  ;;  %v56_v45 = vld [vmem:[%s336_s1 + $0x78] sm:$0xff] }
   0x7   :  { %v233_v41 = vpack.c.bf16 %v54_v40, %v53_v39  ;;  %v236_v46 = vpack.c.bf16 %v56_v45, %v55_v44 }
   0x8   :  { %219 = vmatpush3.bf16.msra.mxu0 %v218_v8  ;;  %v25_v22 = vrot.slane %v24_v20, 4  ;;  %v32_v24 = vrot.slane %v31_v21, 4 }
   0x9   :  { %220 = vmatprep.subr.bf16.mxu0 %v245_v0  ;;  %v151_v50 = vld [vmem:[#allocation2] ss:$0 sm:$0xff] }
   0xa   :  { %v26_v27 = vadd.f32 %v25_v22, %v24_v20  ;;  %v33_v28 = vadd.f32 %v32_v24, %v31_v21 }
   0xc   :  { %222 = vmatpush3.bf16.msra.mxu0 %v221_v16  ;;  %v27_v29 = vrot.slane %v26_v27, 2  ;;  %v34_v31 = vrot.slane %v33_v28, 2 }
   0xd   :  { %223 = vmatprep.subr.bf16.mxu0 %v245_v0 }
   0xe   :  { %v28_v34 = vadd.f32 %v27_v29, %v26_v27  ;;  %v35_v35 = vadd.f32 %v34_v31, %v33_v28 }
  0x10   :  { %225 = vmatpush3.bf16.msra.mxu0 %v224_v23  ;;  %v29_v37 = vrot.slane %v28_v34, 1  ;;  %v36_v38 = vrot.slane %v35_v35, 1 }
  0x11   :  { %226 = vmatprep.subr.bf16.mxu0 %v245_v0 }
  0x12   :  { %v30_v42 = vadd.f32 %v29_v37, %v28_v34  ;;  %v37_v43 = vadd.f32 %v36_v38, %v35_v35 }
  0x14   :  { %228 = vmatpush3.bf16.msra.mxu0 %v227_v30  ;;  %v39_v47 = vmul.f32 0.0625, %v30_v42  ;;  %v40_v48 = vmul.f32 0.0625, %v37_v43 }
  0x15   :  { %229 = vmatprep.subr.bf16.mxu0 %v245_v0 }
  0x16   :  { %v67_v49 = vsel %vm66_vm1, %v40_v48, %v39_v47 }
  0x18   :  { %231 = vmatpush3.bf16.msra.mxu0 %v230_v36 }
  0x19   :  { %232 = vmatprep.subr.bf16.mxu0 %v245_v0 }
  0x1c   :  { %234 = vmatpush3.bf16.msra.mxu0 %v233_v41 }
  0x1d   :  { %235 = vmatprep.subr.bf16.mxu0 %v245_v0 }
  0x20   :  { %237 = vmatpush3.bf16.msra.mxu0 %v236_v46 }
  0x23   :  { %212 = vmatmul.mubr.f32.vlgmr.msra.gmra.mrb[0].mxu0 %v67_v49 }
  0xf6   :  { %v135_v51 = vpop.f32.mrb[0].mxu0 }
  0xf7   :  { %v136_v52 = vadd.f32 %v151_v50, %v135_v51  ;;  %v213_v53 = vpop.f32.mrb[1].mxu0 }
  0xf9   :  { %v152_v54 = vmul.f32 -1.442695, %v136_v52 }
  0xfb   :  { %241 = vpow2.f32 %v152_v54 }
 0x105   :  { %v242_v55 = vpop.eup %241 }
 0x106   :  { %v142_v56 = vadd.f32 1.0, %v242_v55 }
 0x108   :  { %243 = vrcp.f32 %v142_v56 }
 0x112   :  { %v244_v57 = vpop.eup %243 }
 0x113   :  { %146 = vst.msk [vmem:[%s339_s3] sm:$0x3] %vm145_vm2, %v244_v57 }

</bundles_post_ra>
